<compile_context>
chip_gen: v5e
topology: v5e:2x2
jax: 0.10.0
libtpu: 0.0.40
codegen_flags: <defaults>
</compile_context>

<pallas_src>
import functools
from typing import NamedTuple

import jax
import jax.numpy as jnp
from jax.experimental import pallas as pl
from jax.experimental.pallas import tpu as pltpu


def _round_up(x, m):
    return (x + m - 1) // m * m


class _Config(NamedTuple):
    input_dim: int
    k_pad: int
    n1: int
    n2: int
    output_dim: int
    n_out: int


# --------------------------------------------------------------------------
# Kernel
# --------------------------------------------------------------------------
def _mlp_kernel(*refs, k_pad, n_block1, n_block2):
    """Whole-MLP forward on one batch tile.

    refs = (x, w1, b1, [wb1, bb1], w2, b2, [wb2, bb2], w3, b3, out)
    Big-matmul weights arrive pre-cast to bf16; MXU runs native
    bf16 x bf16 -> f32; bias-add / ReLU stay f32.
    """
    f32, bf16 = jnp.float32, jnp.bfloat16
    it = iter(refs)
    x_ref, w1_ref, b1_ref = next(it), next(it), next(it)
    wb1_ref, bb1_ref = (next(it), next(it)) if n_block1 else (None, None)
    w2_ref, b2_ref = next(it), next(it)
    wb2_ref, bb2_ref = (next(it), next(it)) if n_block2 else (None, None)
    w3_ref, b3_ref = next(it), next(it)
    o_ref = next(it)

    # ---- layer1 + ReLU: tiny K (input_dim padded to 8) on the VPU in f32 ---
    # Keeps full input precision and the MXU free; padded columns are zeros.
    x = x_ref[...]                                     # (tile_m, k_pad) f32
    if k_pad <= 16:
        acc = x[:, 0:1] * w1_ref[0:1, :]
        for i in range(1, k_pad):
            acc = acc + x[:, i:i + 1] * w1_ref[i:i + 1, :]
    else:
        acc = jnp.dot(x, w1_ref[...], preferred_element_type=f32)
    h = jnp.maximum(acc + b1_ref[...], 0.0)            # (tile_m, 128) f32

    # ---- linear_block1: (Linear(128,128) + ReLU) * n_block1 ---------------
    for i in range(n_block1):
        acc = jnp.dot(h.astype(bf16), wb1_ref[i], preferred_element_type=f32)
        h = jnp.maximum(acc + bb1_ref[i:i + 1, :], 0.0)

    # ---- layer2 + ReLU ------------------------------------------------------
    acc = jnp.dot(h.astype(bf16), w2_ref[...], preferred_element_type=f32)
    h = jnp.maximum(acc + b2_ref[...], 0.0)            # (tile_m, 256) f32

    # ---- linear_block2: (Linear(256,256) + ReLU) * n_block2 ---------------
    for i in range(n_block2):
        acc = jnp.dot(h.astype(bf16), wb2_ref[i], preferred_element_type=f32)
        h = jnp.maximum(acc + bb2_ref[i:i + 1, :], 0.0)

    # ---- layer3 (no activation): lane-dense 128-wide padded f32 slab ------
    y = jnp.dot(h.astype(bf16), w3_ref[...], preferred_element_type=f32)
    o_ref[...] = y + b3_ref[...]


# --------------------------------------------------------------------------
# One-time parameter preparation (hoisted out of the per-call forward)
# --------------------------------------------------------------------------
def prepare_params(params):
    """Stack / pad / pre-cast weights once. Returns (static cfg, array dict)."""
    f32, bf16 = jnp.float32, jnp.bfloat16

    w1, b1 = params["layer1"]
    input_dim = int(w1.shape[0])
    k_pad = _round_up(max(input_dim, 1), 8)

    block1 = params["block1"]
    block2 = params["block2"]
    n1, n2 = len(block1), len(block2)

    w3, b3 = params["layer3"]
    output_dim = int(w3.shape[1])
    n_out = _round_up(max(output_dim, 1), 128)

    arrays = {
        "w1": jnp.pad(w1.astype(f32), ((0, k_pad - input_dim), (0, 0))),
        "b1": b1.astype(f32).reshape(1, 128),
        "w2": params["layer2"][0].astype(bf16),
        "b2": params["layer2"][1].astype(f32).reshape(1, 256),
        "w3": jnp.pad(w3.astype(f32), ((0, 0), (0, n_out - output_dim))).astype(bf16),
        "b3": jnp.pad(b3.astype(f32), (0, n_out - output_dim)).reshape(1, n_out),
    }
    if n1:
        arrays["wb1"] = jnp.stack([w for w, _ in block1]).astype(bf16)   # (n1,128,128)
        arrays["bb1"] = jnp.stack([b for _, b in block1]).astype(f32)    # (n1,128)
    if n2:
        arrays["wb2"] = jnp.stack([w for w, _ in block2]).astype(bf16)   # (n2,256,256)
        arrays["bb2"] = jnp.stack([b for _, b in block2]).astype(f32)    # (n2,256)

    cfg = _Config(input_dim=input_dim, k_pad=k_pad, n1=n1, n2=n2,
                  output_dim=output_dim, n_out=n_out)
    return cfg, arrays


def _choose_tile_m(M, tile_m):
    m_pad8 = _round_up(max(M, 8), 8)
    if tile_m is not None:
        return min(_round_up(tile_m, 8), m_pad8)
    if m_pad8 < 512:
        return m_pad8                      # single grid step; splitting wouldn't help
    # >= 2 grid steps so the "parallel" axis shards across both v7x TensorCores;
    # cap at 2048 rows (well inside VMEM on v5e/v6e/v7x with the explicit limit).
    half = _round_up(-(-m_pad8 // 2), 128)
    return max(256, min(2048, half))


# --------------------------------------------------------------------------
# Forward wrapper (jit-cached)
# --------------------------------------------------------------------------
def point_cloud_forward(cfg, arrays, x, *, tile_m=None):
    """Fused forward pass of the whole point_cloud MLP in one pallas_call."""
    M = x.shape[0]
    assert x.shape[1] == cfg.input_dim
    x = x.astype(jnp.float32)
    if cfg.k_pad != cfg.input_dim:
        x = jnp.pad(x, ((0, 0), (0, cfg.k_pad - cfg.input_dim)))

    tm = _choose_tile_m(M, tile_m)
    m_pad = _round_up(M, tm)
    if m_pad != M:
        x = jnp.pad(x, ((0, m_pad - M), (0, 0)))
    grid = (m_pad // tm,)

    def const_spec(*block_shape):
        nd = len(block_shape)
        return pl.BlockSpec(block_shape, lambda i, _nd=nd: (0,) * _nd)

    # Assemble inputs / specs; weight blocks use constant index_maps so they
    # stay VMEM resident across grid steps. Absent blocks are simply skipped.
    inputs = [x, arrays["w1"], arrays["b1"]]
    in_specs = [
        pl.BlockSpec((tm, cfg.k_pad), lambda i: (i, 0)),
        const_spec(cfg.k_pad, 128),
        const_spec(1, 128),
    ]
    if cfg.n1:
        inputs += [arrays["wb1"], arrays["bb1"]]
        in_specs += [const_spec(cfg.n1, 128, 128), const_spec(cfg.n1, 128)]
    inputs += [arrays["w2"], arrays["b2"]]
    in_specs += [const_spec(128, 256), const_spec(1, 256)]
    if cfg.n2:
        inputs += [arrays["wb2"], arrays["bb2"]]
        in_specs += [const_spec(cfg.n2, 256, 256), const_spec(cfg.n2, 256)]
    inputs += [arrays["w3"], arrays["b3"]]
    in_specs += [const_spec(256, cfg.n_out), const_spec(1, cfg.n_out)]

    flops = 2 * m_pad * (cfg.k_pad * 128 + cfg.n1 * 128 * 128 + 128 * 256
                         + cfg.n2 * 256 * 256 + 256 * cfg.n_out)
    bytes_accessed = (int(x.size) * 4
                      + sum(int(a.size) * a.dtype.itemsize for a in inputs[1:])
                      + m_pad * cfg.n_out * 4)
    cost = pl.CostEstimate(flops=flops, transcendentals=0,
                           bytes_accessed=int(bytes_accessed))

    kernel = functools.partial(_mlp_kernel, k_pad=cfg.k_pad,
                               n_block1=cfg.n1, n_block2=cfg.n2)

    out = pl.pallas_call(
        kernel,
        out_shape=jax.ShapeDtypeStruct((m_pad, cfg.n_out), jnp.float32),
        grid=grid,
        in_specs=in_specs,
        out_specs=pl.BlockSpec((tm, cfg.n_out), lambda i: (i, 0)),
        compiler_params=pltpu.CompilerParams(
            dimension_semantics=("parallel",),
            # v5e's default scoped-VMEM limit is 16 MiB; 48 MiB keeps large
            # batch tiles viable on all generations (v7x physical is 64 MiB).
            vmem_limit_bytes=48 * 1024 * 1024,
        ),
        cost_estimate=cost,
    )(*inputs)

    return out[:M, :cfg.output_dim]


# --------------------------------------------------------------------------
# Init + references
# --------------------------------------------------------------------------
def init_linear_params(key, in_f, out_f):
    """Deterministic init mimicking torch.nn.Linear (kaiming-uniform-ish)."""
    kw, kb = jax.random.split(key)
    bound = 1.0 / jnp.sqrt(jnp.float32(in_f))
    w = jax.random.uniform(kw, (in_f, out_f), jnp.float32, -bound, bound)
    b = jax.random.uniform(kb, (out_f,), jnp.float32, -bound, bound)
    return w, b


def init_point_cloud_params(key, input_dim, hidden_num1, hidden_num2, output_dim):
    params = {}
    keys = jax.random.split(key, 3 + hidden_num1 + hidden_num2)
    ki = iter(range(len(keys)))
    params["layer1"] = init_linear_params(keys[next(ki)], input_dim, 128)
    params["block1"] = [
        init_linear_params(keys[next(ki)], 128, 128) for _ in range(hidden_num1)
    ]
    params["layer2"] = init_linear_params(keys[next(ki)], 128, 256)
    params["block2"] = [
        init_linear_params(keys[next(ki)], 256, 256) for _ in range(hidden_num2)
    ]
    params["layer3"] = init_linear_params(keys[next(ki)], 256, output_dim)
    return params


def reference_forward(params, x):
    """Pure-JAX f32 reference."""
    w, b = params["layer1"]
    h = jnp.maximum(x @ w + b, 0.0)
    for w, b in params["block1"]:
        h = jnp.maximum(h @ w + b, 0.0)
    w, b = params["layer2"]
    h = jnp.maximum(h @ w + b, 0.0)
    for w, b in params["block2"]:
        h = jnp.maximum(h @ w + b, 0.0)
    w, b = params["layer3"]
    return h @ w + b


def reference_forward_bf16(params, x):
    """Reference matching the kernel's math: bf16 matmul operands, f32 accum."""
    f32, bf16 = jnp.float32, jnp.bfloat16

    def mm(h, w):
        return jnp.dot(h.astype(bf16), w.astype(bf16), preferred_element_type=f32)

    w, b = params["layer1"]
    h = jnp.maximum(x.astype(f32) @ w + b, 0.0)          # layer1 stays f32 (VPU path)
    for w, b in params["block1"]:
        h = jnp.maximum(mm(h, w) + b, 0.0)
    w, b = params["layer2"]
    h = jnp.maximum(mm(h, w) + b, 0.0)
    for w, b in params["block2"]:
        h = jnp.maximum(mm(h, w) + b, 0.0)
    w, b = params["layer3"]
    return mm(h, w) + b


# --------------------------------------------------------------------------
if __name__ == "__main__":
    # Point-cloud coords (xyz) -> small MLP, shapes consistent with the module.
    batch = 256
    input_dim = 3
    hidden_num1 = 2
    hidden_num2 = 2
    output_dim = 4

    key = jax.random.PRNGKey(0)
    kx, kp = jax.random.split(key)
    x = jax.random.normal(kx, (batch, input_dim), jnp.float32)
    params = init_point_cloud_params(kp, input_dim, hidden_num1, hidden_num2,
                                     output_dim)

    cfg, arrays = prepare_params(params)                 # one-time prep
    fwd = jax.jit(point_cloud_forward, static_argnames=("cfg", "tile_m"))

    def check(out, xin, atol_bf=2e-3, atol_f32=5e-2):
        ref_bf = reference_forward_bf16(params, xin)
        ref_f32 = reference_forward(params, xin)
        # Tight check vs math-matched (bf16 operand / f32 accum) reference.
        assert jnp.allclose(out, ref_bf, atol=atol_bf, rtol=atol_bf), float(
            jnp.max(jnp.abs(out - ref_bf)))
        # Loose sanity check vs full-f32 reference (bf16 weight rounding).
        assert jnp.allclose(out, ref_f32, atol=atol_f32, rtol=atol_f32), float(
            jnp.max(jnp.abs(out - ref_f32)))

    # Default tiling (single grid step for small batch).
    out = jax.block_until_ready(fwd(cfg, arrays, x))
    assert out.shape == (batch, output_dim)
    check(out, x)

    # Batch not a multiple of 8 -> exercises the padding path.
    x2 = jax.random.normal(jax.random.PRNGKey(1), (37, input_dim), jnp.float32)
    out2 = jax.block_until_ready(fwd(cfg, arrays, x2))
    assert out2.shape == (37, output_dim)
    check(out2, x2)

    # Larger batch -> >= 2 parallel grid steps (both v7x TensorCores busy).
    x3 = jax.random.normal(jax.random.PRNGKey(2), (1024, input_dim), jnp.float32)
    out3 = jax.block_until_ready(fwd(cfg, arrays, x3))
    assert out3.shape == (1024, output_dim)
    check(out3, x3)

    print("KERNEL_OK")
</pallas_src>

<mosaic_0001>
module attributes {stable_mosaic.version = 11 : i64} {
  func.func @_mlp_kernel(%arg0: i32, %arg1: memref<256x8xf32, #tpu.memory_space<vmem>>, %arg2: memref<8x128xf32, #tpu.memory_space<vmem>>, %arg3: memref<1x128xf32, #tpu.memory_space<vmem>>, %arg4: memref<2x128x128xbf16, #tpu.memory_space<vmem>>, %arg5: memref<2x128xf32, #tpu.memory_space<vmem>>, %arg6: memref<128x256xbf16, #tpu.memory_space<vmem>>, %arg7: memref<1x256xf32, #tpu.memory_space<vmem>>, %arg8: memref<2x256x256xbf16, #tpu.memory_space<vmem>>, %arg9: memref<2x256xf32, #tpu.memory_space<vmem>>, %arg10: memref<256x128xbf16, #tpu.memory_space<vmem>>, %arg11: memref<1x128xf32, #tpu.memory_space<vmem>>, %arg12: memref<256x128xf32, #tpu.memory_space<vmem>>) attributes {dimension_semantics = [#tpu.dimension_semantics<parallel>], iteration_bounds = array<i64: 1>, scalar_prefetch = 0 : i64, scratch_operands = 0 : i64, tpu.core_type = #tpu.core_type<tc>, window_params = [{transform_indices = @transform_0, window_bounds = array<i64: 256, 8>}, {pipeline_mode = #tpu.pipeline_mode<synchronous>, transform_indices = @transform_1, window_bounds = array<i64: 8, 128>}, {pipeline_mode = #tpu.pipeline_mode<synchronous>, transform_indices = @transform_2, window_bounds = array<i64: 1, 128>}, {pipeline_mode = #tpu.pipeline_mode<synchronous>, transform_indices = @transform_3, window_bounds = array<i64: 2, 128, 128>}, {pipeline_mode = #tpu.pipeline_mode<synchronous>, transform_indices = @transform_4, window_bounds = array<i64: 2, 128>}, {pipeline_mode = #tpu.pipeline_mode<synchronous>, transform_indices = @transform_5, window_bounds = array<i64: 128, 256>}, {pipeline_mode = #tpu.pipeline_mode<synchronous>, transform_indices = @transform_6, window_bounds = array<i64: 1, 256>}, {pipeline_mode = #tpu.pipeline_mode<synchronous>, transform_indices = @transform_7, window_bounds = array<i64: 2, 256, 256>}, {pipeline_mode = #tpu.pipeline_mode<synchronous>, transform_indices = @transform_8, window_bounds = array<i64: 2, 256>}, {pipeline_mode = #tpu.pipeline_mode<synchronous>, transform_indices = @transform_9, window_bounds = array<i64: 256, 128>}, {pipeline_mode = #tpu.pipeline_mode<synchronous>, transform_indices = @transform_10, window_bounds = array<i64: 1, 128>}, {transform_indices = @transform_11, window_bounds = array<i64: 256, 128>}]} {
    %c0 = arith.constant 0 : index
    %c0_0 = arith.constant 0 : index
    %0 = vector.load %arg1[%c0, %c0_0] : memref<256x8xf32, #tpu.memory_space<vmem>>, vector<256x8xf32>
    %1 = vector.extract_strided_slice %0 {offsets = [0, 0], sizes = [256, 1], strides = [1, 1]} : vector<256x8xf32> to vector<256x1xf32>
    %c0_1 = arith.constant 0 : index
    %c0_2 = arith.constant 0 : index
    %2 = vector.load %arg2[%c0_1, %c0_2] : memref<8x128xf32, #tpu.memory_space<vmem>>, vector<1x128xf32>
    %3 = vector.broadcast %1 : vector<256x1xf32> to vector<256x128xf32>
    %4 = vector.broadcast %2 : vector<1x128xf32> to vector<256x128xf32>
    %5 = arith.mulf %3, %4 : vector<256x128xf32>
    %6 = vector.extract_strided_slice %0 {offsets = [0, 1], sizes = [256, 1], strides = [1, 1]} : vector<256x8xf32> to vector<256x1xf32>
    %c1 = arith.constant 1 : index
    %c0_3 = arith.constant 0 : index
    %7 = vector.load %arg2[%c1, %c0_3] : memref<8x128xf32, #tpu.memory_space<vmem>>, vector<1x128xf32>
    %8 = vector.broadcast %6 : vector<256x1xf32> to vector<256x128xf32>
    %9 = vector.broadcast %7 : vector<1x128xf32> to vector<256x128xf32>
    %10 = arith.mulf %8, %9 : vector<256x128xf32>
    %11 = arith.addf %5, %10 : vector<256x128xf32>
    %12 = vector.extract_strided_slice %0 {offsets = [0, 2], sizes = [256, 1], strides = [1, 1]} : vector<256x8xf32> to vector<256x1xf32>
    %c2 = arith.constant 2 : index
    %c0_4 = arith.constant 0 : index
    %13 = vector.load %arg2[%c2, %c0_4] : memref<8x128xf32, #tpu.memory_space<vmem>>, vector<1x128xf32>
    %14 = vector.broadcast %12 : vector<256x1xf32> to vector<256x128xf32>
    %15 = vector.broadcast %13 : vector<1x128xf32> to vector<256x128xf32>
    %16 = arith.mulf %14, %15 : vector<256x128xf32>
    %17 = arith.addf %11, %16 : vector<256x128xf32>
    %18 = vector.extract_strided_slice %0 {offsets = [0, 3], sizes = [256, 1], strides = [1, 1]} : vector<256x8xf32> to vector<256x1xf32>
    %c3 = arith.constant 3 : index
    %c0_5 = arith.constant 0 : index
    %19 = vector.load %arg2[%c3, %c0_5] : memref<8x128xf32, #tpu.memory_space<vmem>>, vector<1x128xf32>
    %20 = vector.broadcast %18 : vector<256x1xf32> to vector<256x128xf32>
    %21 = vector.broadcast %19 : vector<1x128xf32> to vector<256x128xf32>
    %22 = arith.mulf %20, %21 : vector<256x128xf32>
    %23 = arith.addf %17, %22 : vector<256x128xf32>
    %24 = vector.extract_strided_slice %0 {offsets = [0, 4], sizes = [256, 1], strides = [1, 1]} : vector<256x8xf32> to vector<256x1xf32>
    %c4 = arith.constant 4 : index
    %c0_6 = arith.constant 0 : index
    %25 = vector.load %arg2[%c4, %c0_6] : memref<8x128xf32, #tpu.memory_space<vmem>>, vector<1x128xf32>
    %26 = vector.broadcast %24 : vector<256x1xf32> to vector<256x128xf32>
    %27 = vector.broadcast %25 : vector<1x128xf32> to vector<256x128xf32>
    %28 = arith.mulf %26, %27 : vector<256x128xf32>
    %29 = arith.addf %23, %28 : vector<256x128xf32>
    %30 = vector.extract_strided_slice %0 {offsets = [0, 5], sizes = [256, 1], strides = [1, 1]} : vector<256x8xf32> to vector<256x1xf32>
    %c5 = arith.constant 5 : index
    %c0_7 = arith.constant 0 : index
    %31 = vector.load %arg2[%c5, %c0_7] : memref<8x128xf32, #tpu.memory_space<vmem>>, vector<1x128xf32>
    %32 = vector.broadcast %30 : vector<256x1xf32> to vector<256x128xf32>
    %33 = vector.broadcast %31 : vector<1x128xf32> to vector<256x128xf32>
    %34 = arith.mulf %32, %33 : vector<256x128xf32>
    %35 = arith.addf %29, %34 : vector<256x128xf32>
    %36 = vector.extract_strided_slice %0 {offsets = [0, 6], sizes = [256, 1], strides = [1, 1]} : vector<256x8xf32> to vector<256x1xf32>
    %c6 = arith.constant 6 : index
    %c0_8 = arith.constant 0 : index
    %37 = vector.load %arg2[%c6, %c0_8] : memref<8x128xf32, #tpu.memory_space<vmem>>, vector<1x128xf32>
    %38 = vector.broadcast %36 : vector<256x1xf32> to vector<256x128xf32>
    %39 = vector.broadcast %37 : vector<1x128xf32> to vector<256x128xf32>
    %40 = arith.mulf %38, %39 : vector<256x128xf32>
    %41 = arith.addf %35, %40 : vector<256x128xf32>
    %42 = vector.extract_strided_slice %0 {offsets = [0, 7], sizes = [256, 1], strides = [1, 1]} : vector<256x8xf32> to vector<256x1xf32>
    %c7 = arith.constant 7 : index
    %c0_9 = arith.constant 0 : index
    %43 = vector.load %arg2[%c7, %c0_9] : memref<8x128xf32, #tpu.memory_space<vmem>>, vector<1x128xf32>
    %44 = vector.broadcast %42 : vector<256x1xf32> to vector<256x128xf32>
    %45 = vector.broadcast %43 : vector<1x128xf32> to vector<256x128xf32>
    %46 = arith.mulf %44, %45 : vector<256x128xf32>
    %47 = arith.addf %41, %46 : vector<256x128xf32>
    %c0_10 = arith.constant 0 : index
    %c0_11 = arith.constant 0 : index
    %48 = vector.load %arg3[%c0_10, %c0_11] : memref<1x128xf32, #tpu.memory_space<vmem>>, vector<1x128xf32>
    %49 = vector.broadcast %48 : vector<1x128xf32> to vector<256x128xf32>
    %50 = arith.addf %47, %49 : vector<256x128xf32>
    %cst = arith.constant 0.000000e+00 : f32
    %51 = vector.broadcast %cst : f32 to vector<256x128xf32>
    %52 = arith.maximumf %50, %51 : vector<256x128xf32>
    %53 = arith.truncf %52 : vector<256x128xf32> to vector<256x128xbf16>
    %c0_12 = arith.constant 0 : index
    %c0_13 = arith.constant 0 : index
    %c0_14 = arith.constant 0 : index
    %54 = vector.load %arg4[%c0_12, %c0_13, %c0_14] : memref<2x128x128xbf16, #tpu.memory_space<vmem>>, vector<1x128x128xbf16>
    %55 = vector.shape_cast %54 : vector<1x128x128xbf16> to vector<128x128xbf16>
    %cst_15 = arith.constant dense<0.000000e+00> : vector<256x128xf32>
    %56 = tpu.matmul %53, %55, %cst_15 {dimension_numbers = #tpu.dot_dimension_numbers<[1], [0], [0], [1], [0, 0, 1, 1], [], []>} : vector<256x128xbf16>, vector<128x128xbf16>, vector<256x128xf32> -> vector<256x128xf32>
    %c0_16 = arith.constant 0 : index
    %c0_17 = arith.constant 0 : index
    %57 = vector.load %arg5[%c0_16, %c0_17] : memref<2x128xf32, #tpu.memory_space<vmem>>, vector<1x128xf32>
    %58 = vector.broadcast %57 : vector<1x128xf32> to vector<256x128xf32>
    %59 = arith.addf %56, %58 : vector<256x128xf32>
    %cst_18 = arith.constant 0.000000e+00 : f32
    %60 = vector.broadcast %cst_18 : f32 to vector<256x128xf32>
    %61 = arith.maximumf %59, %60 : vector<256x128xf32>
    %62 = arith.truncf %61 : vector<256x128xf32> to vector<256x128xbf16>
    %c1_19 = arith.constant 1 : index
    %c0_20 = arith.constant 0 : index
    %c0_21 = arith.constant 0 : index
    %63 = vector.load %arg4[%c1_19, %c0_20, %c0_21] : memref<2x128x128xbf16, #tpu.memory_space<vmem>>, vector<1x128x128xbf16>
    %64 = vector.shape_cast %63 : vector<1x128x128xbf16> to vector<128x128xbf16>
    %cst_22 = arith.constant dense<0.000000e+00> : vector<256x128xf32>
    %65 = tpu.matmul %62, %64, %cst_22 {dimension_numbers = #tpu.dot_dimension_numbers<[1], [0], [0], [1], [0, 0, 1, 1], [], []>} : vector<256x128xbf16>, vector<128x128xbf16>, vector<256x128xf32> -> vector<256x128xf32>
    %c1_23 = arith.constant 1 : index
    %c0_24 = arith.constant 0 : index
    %66 = vector.load %arg5[%c1_23, %c0_24] : memref<2x128xf32, #tpu.memory_space<vmem>>, vector<1x128xf32>
    %67 = vector.broadcast %66 : vector<1x128xf32> to vector<256x128xf32>
    %68 = arith.addf %65, %67 : vector<256x128xf32>
    %cst_25 = arith.constant 0.000000e+00 : f32
    %69 = vector.broadcast %cst_25 : f32 to vector<256x128xf32>
    %70 = arith.maximumf %68, %69 : vector<256x128xf32>
    %71 = arith.truncf %70 : vector<256x128xf32> to vector<256x128xbf16>
    %c0_26 = arith.constant 0 : index
    %c0_27 = arith.constant 0 : index
    %72 = vector.load %arg6[%c0_26, %c0_27] : memref<128x256xbf16, #tpu.memory_space<vmem>>, vector<128x256xbf16>
    %cst_28 = arith.constant dense<0.000000e+00> : vector<256x256xf32>
    %73 = tpu.matmul %71, %72, %cst_28 {dimension_numbers = #tpu.dot_dimension_numbers<[1], [0], [0], [1], [0, 0, 1, 1], [], []>} : vector<256x128xbf16>, vector<128x256xbf16>, vector<256x256xf32> -> vector<256x256xf32>
    %c0_29 = arith.constant 0 : index
    %c0_30 = arith.constant 0 : index
    %74 = vector.load %arg7[%c0_29, %c0_30] : memref<1x256xf32, #tpu.memory_space<vmem>>, vector<1x256xf32>
    %75 = vector.broadcast %74 : vector<1x256xf32> to vector<256x256xf32>
    %76 = arith.addf %73, %75 : vector<256x256xf32>
    %cst_31 = arith.constant 0.000000e+00 : f32
    %77 = vector.broadcast %cst_31 : f32 to vector<256x256xf32>
    %78 = arith.maximumf %76, %77 : vector<256x256xf32>
    %79 = arith.truncf %78 : vector<256x256xf32> to vector<256x256xbf16>
    %c0_32 = arith.constant 0 : index
    %c0_33 = arith.constant 0 : index
    %c0_34 = arith.constant 0 : index
    %80 = vector.load %arg8[%c0_32, %c0_33, %c0_34] : memref<2x256x256xbf16, #tpu.memory_space<vmem>>, vector<1x256x256xbf16>
    %81 = vector.shape_cast %80 : vector<1x256x256xbf16> to vector<256x256xbf16>
    %cst_35 = arith.constant dense<0.000000e+00> : vector<256x256xf32>
    %82 = tpu.matmul %79, %81, %cst_35 {dimension_numbers = #tpu.dot_dimension_numbers<[1], [0], [0], [1], [0, 0, 1, 1], [], []>} : vector<256x256xbf16>, vector<256x256xbf16>, vector<256x256xf32> -> vector<256x256xf32>
    %c0_36 = arith.constant 0 : index
    %c0_37 = arith.constant 0 : index
    %83 = vector.load %arg9[%c0_36, %c0_37] : memref<2x256xf32, #tpu.memory_space<vmem>>, vector<1x256xf32>
    %84 = vector.broadcast %83 : vector<1x256xf32> to vector<256x256xf32>
    %85 = arith.addf %82, %84 : vector<256x256xf32>
    %cst_38 = arith.constant 0.000000e+00 : f32
    %86 = vector.broadcast %cst_38 : f32 to vector<256x256xf32>
    %87 = arith.maximumf %85, %86 : vector<256x256xf32>
    %88 = arith.truncf %87 : vector<256x256xf32> to vector<256x256xbf16>
    %c1_39 = arith.constant 1 : index
    %c0_40 = arith.constant 0 : index
    %c0_41 = arith.constant 0 : index
    %89 = vector.load %arg8[%c1_39, %c0_40, %c0_41] : memref<2x256x256xbf16, #tpu.memory_space<vmem>>, vector<1x256x256xbf16>
    %90 = vector.shape_cast %89 : vector<1x256x256xbf16> to vector<256x256xbf16>
    %cst_42 = arith.constant dense<0.000000e+00> : vector<256x256xf32>
    %91 = tpu.matmul %88, %90, %cst_42 {dimension_numbers = #tpu.dot_dimension_numbers<[1], [0], [0], [1], [0, 0, 1, 1], [], []>} : vector<256x256xbf16>, vector<256x256xbf16>, vector<256x256xf32> -> vector<256x256xf32>
    %c1_43 = arith.constant 1 : index
    %c0_44 = arith.constant 0 : index
    %92 = vector.load %arg9[%c1_43, %c0_44] : memref<2x256xf32, #tpu.memory_space<vmem>>, vector<1x256xf32>
    %93 = vector.broadcast %92 : vector<1x256xf32> to vector<256x256xf32>
    %94 = arith.addf %91, %93 : vector<256x256xf32>
    %cst_45 = arith.constant 0.000000e+00 : f32
    %95 = vector.broadcast %cst_45 : f32 to vector<256x256xf32>
    %96 = arith.maximumf %94, %95 : vector<256x256xf32>
    %97 = arith.truncf %96 : vector<256x256xf32> to vector<256x256xbf16>
    %c0_46 = arith.constant 0 : index
    %c0_47 = arith.constant 0 : index
    %98 = vector.load %arg10[%c0_46, %c0_47] : memref<256x128xbf16, #tpu.memory_space<vmem>>, vector<256x128xbf16>
    %cst_48 = arith.constant dense<0.000000e+00> : vector<256x128xf32>
    %99 = tpu.matmul %97, %98, %cst_48 {dimension_numbers = #tpu.dot_dimension_numbers<[1], [0], [0], [1], [0, 0, 1, 1], [], []>} : vector<256x256xbf16>, vector<256x128xbf16>, vector<256x128xf32> -> vector<256x128xf32>
    %c0_49 = arith.constant 0 : index
    %c0_50 = arith.constant 0 : index
    %100 = vector.load %arg11[%c0_49, %c0_50] : memref<1x128xf32, #tpu.memory_space<vmem>>, vector<1x128xf32>
    %101 = vector.broadcast %100 : vector<1x128xf32> to vector<256x128xf32>
    %102 = arith.addf %99, %101 : vector<256x128xf32>
    %c0_51 = arith.constant 0 : index
    %c0_52 = arith.constant 0 : index
    %103 = vector.load %arg12[%c0_51, %c0_52] : memref<256x128xf32, #tpu.memory_space<vmem>>, vector<256x128xf32>
    tpu.vector_store %arg12[%c0_51, %c0_52], %102 {strides = array<i32>} : memref<256x128xf32, #tpu.memory_space<vmem>>, vector<256x128xf32>,
    return
  }
  func.func @transform_0(%arg0: i32) -> (i32, i32) {
    %c0_i32 = arith.constant 0 : i32
    %c0_i32_0 = arith.constant 0 : i32
    return %arg0, %c0_i32 : i32, i32
  }
  func.func @transform_1(%arg0: i32) -> (i32, i32) {
    %c0_i32 = arith.constant 0 : i32
    %c0_i32_0 = arith.constant 0 : i32
    %c0_i32_1 = arith.constant 0 : i32
    return %c0_i32, %c0_i32_0 : i32, i32
  }
  func.func @transform_2(%arg0: i32) -> (i32, i32) {
    %c0_i32 = arith.constant 0 : i32
    %c0_i32_0 = arith.constant 0 : i32
    %c0_i32_1 = arith.constant 0 : i32
    return %c0_i32, %c0_i32_0 : i32, i32
  }
  func.func @transform_3(%arg0: i32) -> (i32, i32, i32) {
    %c0_i32 = arith.constant 0 : i32
    %c0_i32_0 = arith.constant 0 : i32
    %c0_i32_1 = arith.constant 0 : i32
    %c0_i32_2 = arith.constant 0 : i32
    return %c0_i32, %c0_i32_0, %c0_i32_1 : i32, i32, i32
  }
  func.func @transform_4(%arg0: i32) -> (i32, i32) {
    %c0_i32 = arith.constant 0 : i32
    %c0_i32_0 = arith.constant 0 : i32
    %c0_i32_1 = arith.constant 0 : i32
    return %c0_i32, %c0_i32_0 : i32, i32
  }
  func.func @transform_5(%arg0: i32) -> (i32, i32) {
    %c0_i32 = arith.constant 0 : i32
    %c0_i32_0 = arith.constant 0 : i32
    %c0_i32_1 = arith.constant 0 : i32
    return %c0_i32, %c0_i32_0 : i32, i32
  }
  func.func @transform_6(%arg0: i32) -> (i32, i32) {
    %c0_i32 = arith.constant 0 : i32
    %c0_i32_0 = arith.constant 0 : i32
    %c0_i32_1 = arith.constant 0 : i32
    return %c0_i32, %c0_i32_0 : i32, i32
  }
  func.func @transform_7(%arg0: i32) -> (i32, i32, i32) {
    %c0_i32 = arith.constant 0 : i32
    %c0_i32_0 = arith.constant 0 : i32
    %c0_i32_1 = arith.constant 0 : i32
    %c0_i32_2 = arith.constant 0 : i32
    return %c0_i32, %c0_i32_0, %c0_i32_1 : i32, i32, i32
  }
  func.func @transform_8(%arg0: i32) -> (i32, i32) {
    %c0_i32 = arith.constant 0 : i32
    %c0_i32_0 = arith.constant 0 : i32
    %c0_i32_1 = arith.constant 0 : i32
    return %c0_i32, %c0_i32_0 : i32, i32
  }
  func.func @transform_9(%arg0: i32) -> (i32, i32) {
    %c0_i32 = arith.constant 0 : i32
    %c0_i32_0 = arith.constant 0 : i32
    %c0_i32_1 = arith.constant 0 : i32
    return %c0_i32, %c0_i32_0 : i32, i32
  }
  func.func @transform_10(%arg0: i32) -> (i32, i32) {
    %c0_i32 = arith.constant 0 : i32
    %c0_i32_0 = arith.constant 0 : i32
    %c0_i32_1 = arith.constant 0 : i32
    return %c0_i32, %c0_i32_0 : i32, i32
  }
  func.func @transform_11(%arg0: i32) -> (i32, i32) {
    %c0_i32 = arith.constant 0 : i32
    %c0_i32_0 = arith.constant 0 : i32
    return %arg0, %c0_i32 : i32, i32
  }
}

</mosaic_0001>

<bundles_post_ra>
// kernel: point_cloud_forward.1
= control target key start
LH: loop header
LB: loop body
LE: loop exit
PB: predicated region body
PF: predicated region fallthrough
CT: control target
= control target key end

     0   :  { %16 = vsyncpa [#allocation3], 0  ;;  %s8436_s0 = inlined_call_operand.vmem [shape: f32[256,8], index: 0, kind: input, shape index: {}]   ;;  %s8437_s1 = inlined_call_operand.vmem [shape: f32[8,128], index: 1, kind: input, shape index: {}]   ;;  %s8438_s2 = inlined_call_operand.hbm [shape: f32[1,128], index: 2, kind: input, shape index: {}]   ;;  %s8439_s3 = inlined_call_operand.vmem [shape: bf16[2,128,128], index: 3, kind: input, shape index: {}]   ;;  %s8440_s4 = inlined_call_operand.vmem [shape: f32[2,128], index: 4, kind: input, shape index: {}]   ;;  %s8441_s5 = inlined_call_operand.vmem [shape: bf16[128,256], index: 5, kind: input, shape index: {}]   ;;  %s8442_s6 = inlined_call_operand.hbm [shape: f32[1,256], index: 6, kind: input, shape index: {}]   ;;  %s8443_s7 = inlined_call_operand.vmem [shape: bf16[2,256,256], index: 7, kind: input, shape index: {}]   ;;  %s8444_s8 = inlined_call_operand.hbm [shape: f32[2,256], index: 8, kind: input, shape index: {}]   ;;  %s8445_s9 = inlined_call_operand.hbm [shape: bf16[256,128], index: 9, kind: input, shape index: {}]   ;;  %s8446_s10 = inlined_call_operand.hbm [shape: f32[1,128], index: 10, kind: input, shape index: {}]   ;;  %s8447_s11 = inlined_call_operand.vmem [shape: f32[256,128], index: 11, kind: output, shape index: {}]  }
   0x1   :  { %17 = vsyncpa [#allocation5], 0  ;;  %s45_s19 = sshll.u32 %s8442_s6, 4  ;;  %s46_s19 = int_to_ptr.hbm [resolvable:$true] %s45_s19 }
   0x2   :  { %18 = vsyncpa [#allocation8], 0  ;;  %s5222_s20 = smov [#allocation4]   ;;  %s68_s24 = sshll.u32 %s8445_s9, 4  ;;  %s69_s24 = int_to_ptr.hbm [resolvable:$true] %s68_s24 }
   0x3   :  { %s47_s21 = sshll.u32 %s5222_s20, 4  ;;  %s5223_s25 = smov [#allocation7]   ;;  %s48_s21 = int_to_ptr.vmem [resolvable:$true] %s47_s21 }
   0x4   :  { %50 = dma.hbm_to_vmem [thread:$0]  %s46_s19, 32, %s48_s21, [#allocation5]  }
   0x5   :  { %s70_s26 = sshll.u32 %s5223_s25, 4  ;;  %s5224_s27 = smov 64   ;;  %s71_s26 = int_to_ptr.vmem [resolvable:$true] %s70_s26 }
   0x6   :  { %s5225_s28 = smov 4   ;;  %s28_s6 = sshll.u32 %s8438_s2, 4  ;;  %s29_s6 = int_to_ptr.hbm [resolvable:$true] %s28_s6 }
   0x7   :  { %76 = dma.hbm_to_vmem [thread:$0]  %s69_s24, 2048, %s71_s26, [#allocation8], %s5224_s27, %s5224_s27, %s5225_s28  }
   0x8   :  { %s5226_s12 = smov [#allocation2]   ;;  %s58_s9 = sshll.u32 %s8444_s8, 4  ;;  %s59_s9 = int_to_ptr.hbm [resolvable:$true] %s58_s9 }
   0x9   :  { %s30_s13 = sshll.u32 %s5226_s12, 4  ;;  %s5227_s16 = smov [#allocation6]   ;;  %s31_s13 = int_to_ptr.vmem [resolvable:$true] %s30_s13 }
   0xa   :  { %33 = dma.hbm_to_vmem [thread:$0]  %s29_s6, 16, %s31_s13, [#allocation3]  }
   0xb   :  { %s60_s17 = sshll.u32 %s5227_s16, 4  ;;  %s82_s20 = sshll.u32 %s8446_s10, 4  ;;  %s61_s17 = int_to_ptr.vmem [resolvable:$true] %s60_s17  ;;  %s83_s20 = int_to_ptr.hbm [resolvable:$true] %s82_s20 }
   0xc   :  { %63 = dma.hbm_to_vmem [thread:$0]  %s59_s9, 64, %s61_s17, [#allocation5]  }
   0xd   :  { %s5228_s2 = smov [#allocation9]  }
   0xe   :  { %s84_s21 = sshll.u32 %s5228_s2, 4  ;;  %s85_s21 = int_to_ptr.vmem [resolvable:$true] %s84_s21 }
   0xf   :  { %87 = dma.hbm_to_vmem [thread:$0]  %s83_s20, 16, %s85_s21, [#allocation8]  }
  0x10   :  { %5216 = dma.done.wait [#allocation3], 16  }
  0x11   :  { %5217 = vsyncadd [#allocation3], 4294967280 }
  0x12   :  { %5218 = dma.done.wait [#allocation5], 96  }
  0x13   :  { %5219 = vsyncadd [#allocation5], 4294967200 }
  0x14   :  { %5220 = dma.done.wait [#allocation8], 2064  }
  0x15   :  { %5221 = vsyncadd [#allocation8], 4294965232  ;;  %v8448_v0 = vmov 0   ;;  %v5318_v1 = vld [vmem:[%s8436_s0 + $0x20] sm:$0xff]  ;;  %v5323_v2 = vld [vmem:[%s8436_s0 + $0x10] sm:$0xff]  ;;  %v8454_v28 = vmov 2  }
  0x16   :  { %4851 = vset.pattern.permute.xlu2 %v8448_v0  ;;  %4850 = vset.pattern.permute.xlu1 %v8448_v0  ;;  %v5328_v3 = vld [vmem:[%s8436_s0] sm:$0xff]  ;;  %v5336_v4 = vld [vmem:[%s8436_s0 + $0x28] sm:$0xff]  ;;  %v5341_v5 = vld [vmem:[%s8436_s0 + $0x18] sm:$0xff]  ;;  %v8462_v29 = vmov 1   ;;  %v8452_v30 = vmov 6   ;;  %v8450_v31 = vmov 3  }
  0x17   :  { %4849 = vset.pattern.permute.xlu0 %v8448_v0  ;;  %163 = vperm.xlu2 %4851, %v5318_v1   ;;  %v5346_v6 = vld [vmem:[%s8436_s0 + $0x8] sm:$0xff]  ;;  %v5354_v7 = vld [vmem:[%s8436_s0 + $0x40] sm:$0xff]  ;;  %v5359_v8 = vld [vmem:[%s8436_s0 + $0x38] sm:$0xff]  ;;  %v8460_v33 = vmov 4   ;;  %v8456_v36 = vmov 5   ;;  %v8458_v46 = vmov 7  }
  0x18   :  { %153 = vperm.xlu1 %4850, %v5323_v2   ;;  %143 = vperm.xlu0 %4849, %v5328_v3   ;;  %v5364_v9 = vld [vmem:[%s8436_s0 + $0x30] sm:$0xff]  ;;  %v5372_v10 = vld [vmem:[%s8436_s0 + $0x58] sm:$0xff]  ;;  %v5382_v12 = vld [vmem:[%s8436_s0 + $0x48] sm:$0xff] }
  0x19   :  { %v5377_v11 = vld [vmem:[%s8436_s0 + $0x50] sm:$0xff]  ;;  %v5395_v14 = vld [vmem:[%s8436_s0 + $0x68] sm:$0xff]  ;;  %v5400_v15 = vld [vmem:[%s8436_s0 + $0x60] sm:$0xff] }
  0x1a   :  { %8471 = vst [vmem:[#allocation13_spill] sm:$0xff] %v5377_v11  ;;  %v5390_v13 = vld [vmem:[%s8436_s0 + $0x70] sm:$0xff]  ;;  %v5408_v16 = vld [vmem:[%s8436_s0 + $0x88] sm:$0xff]  ;;  %v5413_v17 = vld [vmem:[%s8436_s0 + $0x80] sm:$0xff] }
  0x1b   :  { %v5418_v18 = vld [vmem:[%s8436_s0 + $0x78] sm:$0xff]  ;;  %v5426_v19 = vld [vmem:[%s8436_s0 + $0xa0] sm:$0xff]  ;;  %v5436_v21 = vld [vmem:[%s8436_s0 + $0x90] sm:$0xff] }
  0x1c   :  { %v5431_v20 = vld [vmem:[%s8436_s0 + $0x98] sm:$0xff]  ;;  %v5449_v23 = vld [vmem:[%s8436_s0 + $0xb0] sm:$0xff]  ;;  %v5454_v24 = vld [vmem:[%s8436_s0 + $0xa8] sm:$0xff] }
  0x1d   :  { %v5444_v22 = vld [vmem:[%s8436_s0 + $0xb8] sm:$0xff]  ;;  %8473 = vst [vmem:[#allocation15_spill] sm:$0xff] %v5449_v23  ;;  %v5462_v25 = vld [vmem:[%s8436_s0 + $0xd0] sm:$0xff]  ;;  %v5467_v26 = vld [vmem:[%s8436_s0 + $0xc8] sm:$0xff] }
  0x1e   :  { %8472 = vst [vmem:[#allocation14_spill] sm:$0xff] %v5444_v22  ;;  %v5472_v27 = vld [vmem:[%s8436_s0 + $0xc0] sm:$0xff] }
  0x1f   :  { %168 = vperm.xlu2 %4851, %v5336_v4   ;;  %8474 = vst [vmem:[#allocation16_spill] sm:$0xff] %v5472_v27 }
  0x20   :  { %158 = vperm.xlu1 %4850, %v5341_v5   ;;  %148 = vperm.xlu0 %4849, %v5346_v6  }
  0x27   :  { %183 = vperm.xlu2 %4851, %v5354_v7  }
  0x28   :  { %178 = vperm.xlu1 %4850, %v5359_v8   ;;  %173 = vperm.xlu0 %4849, %v5364_v9  }
  0x2f   :  { %198 = vperm.xlu2 %4851, %v5372_v10  }
  0x30   :  { %193 = vperm.xlu1 %4850, %v5377_v11   ;;  %188 = vperm.xlu0 %4849, %v5382_v12  }
  0x37   :  { %213 = vperm.xlu2 %4851, %v5390_v13  }
  0x38   :  { %208 = vperm.xlu1 %4850, %v5395_v14   ;;  %203 = vperm.xlu0 %4849, %v5400_v15  }
  0x3f   :  { %228 = vperm.xlu2 %4851, %v5408_v16  }
  0x40   :  { %223 = vperm.xlu1 %4850, %v5413_v17   ;;  %218 = vperm.xlu0 %4849, %v5418_v18  }
  0x47   :  { %243 = vperm.xlu2 %4851, %v5426_v19  }
  0x48   :  { %238 = vperm.xlu1 %4850, %v5431_v20   ;;  %233 = vperm.xlu0 %4849, %v5436_v21  }
  0x4f   :  { %258 = vperm.xlu2 %4851, %v5444_v22  }
  0x50   :  { %253 = vperm.xlu1 %4850, %v5449_v23   ;;  %248 = vperm.xlu0 %4849, %v5454_v24  }
  0x57   :  { %273 = vperm.xlu2 %4851, %v5462_v25  }
  0x58   :  { %268 = vperm.xlu1 %4850, %v5467_v26   ;;  %263 = vperm.xlu0 %4849, %v5472_v27  }
  0x5f   :  { %4853 = vset.pattern.permute.xlu2 %v8454_v28 }
  0x60   :  { %4852 = vset.pattern.permute.xlu1 %v8462_v29  ;;  %4864 = vset.pattern.permute.xlu0 %v8452_v30 }
  0x61   :  { %340 = vperm.xlu1 %4852, %v5346_v6   ;;  %530 = vperm.xlu2 %4853, %v5328_v3  }
  0x62   :  { %1310 = vperm.xlu0 %4864, %v5346_v6  }
  0x69   :  { %4854 = vset.pattern.permute.xlu1 %v8454_v28  ;;  %4855 = vset.pattern.permute.xlu2 %v8450_v31 }
  0x6a   :  { %1322 = vperm.xlu0 %4864, %v5318_v1   ;;  %534 = vperm.xlu1 %4854, %v5346_v6  }
  0x6b   :  { %724 = vperm.xlu2 %4855, %v5328_v3  }
  0x71   :  { %v5489_v32 = vpop.permute.xlu2 %163 }
  0x72   :  { %1390 = vperm.xlu0 %4864, %v5454_v24   ;;  %8475 = vst [vmem:[#allocation17_spill] sm:$0xff] %v5489_v32  ;;  %4856 = vset.pattern.permute.xlu1 %v8460_v33 }
  0x73   :  { %4857 = vset.pattern.permute.xlu2 %v8460_v33  ;;  %918 = vperm.xlu1 %4856, %v5328_v3  }
  0x74   :  { %922 = vperm.xlu2 %4857, %v5346_v6  }
  0x79   :  { %v5496_v34 = vpop.permute.xlu2 %168 }
  0x7a   :  { %4921 = vset.pattern.permute.xlu0 %v8450_v31  ;;  %8476 = vst [vmem:[#allocation18_spill] sm:$0xff] %v5496_v34 }
  0x7b   :  { %728 = vperm.xlu0 %4921, %v5346_v6   ;;  %4858 = vset.pattern.permute.xlu1 %v8462_v29 }
  0x7c   :  { %4859 = vset.pattern.permute.xlu2 %v8462_v29  ;;  %400 = vperm.xlu1 %4858, %v5413_v17  }
  0x7d   :  { %404 = vperm.xlu2 %4859, %v5408_v16  }
  0x81   :  { %v5503_v35 = vpop.permute.xlu2 %183 }
  0x82   :  { %8477 = vst [vmem:[#allocation19_spill] sm:$0xff] %v5503_v35 }
  0x83   :  { %732 = vperm.xlu0 %4921, %v5323_v2  }
  0x84   :  { %4860 = vset.pattern.permute.xlu1 %v8456_v36 }
  0x85   :  { %4861 = vset.pattern.permute.xlu2 %v8454_v28  ;;  %1116 = vperm.xlu1 %4860, %v5346_v6  }
  0x86   :  { %594 = vperm.xlu2 %4861, %v5413_v17  }
  0x89   :  { %v5510_v37 = vpop.permute.xlu2 %198 }
  0x8a   :  { %8478 = vst [vmem:[#allocation20_spill] sm:$0xff] %v5510_v37  ;;  %v5512_v38 = vpop.permute.xlu1 %153  ;;  %v5515_v39 = vpop.permute.xlu0 %143 }
  0x8b   :  { %800 = vperm.xlu0 %4921, %v5431_v20  }
  0x8d   :  { %4862 = vset.pattern.permute.xlu1 %v8454_v28 }
  0x8e   :  { %4863 = vset.pattern.permute.xlu2 %v8452_v30  ;;  %598 = vperm.xlu1 %4862, %v5408_v16  }
  0x8f   :  { %1306 = vperm.xlu2 %4863, %v5328_v3  }
  0x91   :  { %v5521_v40 = vpop.permute.xlu2 %213 }
  0x92   :  { %8479 = vst [vmem:[#allocation21_spill] sm:$0xff] %v5521_v40  ;;  %v5523_v41 = vpop.permute.xlu1 %158  ;;  %v5526_v42 = vpop.permute.xlu0 %148  ;;  %v5645_v40 = vld [vmem:[%s8437_s1 + $0x2] ss:$0 sm:$0xff] }
  0x93   :  { %812 = vperm.xlu0 %4921, %v5449_v23  }
  0x96   :  { %4865 = vset.pattern.permute.xlu1 %v8450_v31 }
  0x97   :  { %4866 = vset.pattern.permute.xlu2 %v8450_v31  ;;  %788 = vperm.xlu1 %4865, %v5413_v17  }
  0x98   :  { %792 = vperm.xlu2 %4866, %v5408_v16  }
  0x99   :  { %v5532_v43 = vpop.permute.xlu2 %228 }
  0x9a   :  { %v5534_v44 = vpop.permute.xlu1 %178  ;;  %v5537_v45 = vpop.permute.xlu0 %173 }
  0x9b   :  { %8480 = vst [vmem:[#allocation22_spill] sm:$0xff] %v5534_v44  ;;  %760 = vperm.xlu0 %4921, %v5382_v12   ;;  %v8500_v44 = vmov 6  }
  0x9c   :  { %8481 = vst [vmem:[#allocation23_spill] sm:$0xff] %v5537_v45  ;;  %v5684_v45 = vld [vmem:[%s8437_s1 + $0x5] ss:$0 sm:$0xff] }
  0x9f   :  { %4867 = vset.pattern.permute.xlu1 %v8458_v46 }
  0xa0   :  { %4868 = vset.pattern.permute.xlu2 %v8458_v46  ;;  %1500 = vperm.xlu1 %4867, %v5328_v3  }
  0xa1   :  { %1504 = vperm.xlu2 %4868, %v5346_v6   ;;  %v5543_v47 = vpop.permute.xlu2 %243 }
  0xa2   :  { %8482 = vst [vmem:[#allocation24_spill] sm:$0xff] %v5543_v47  ;;  %v5545_v48 = vpop.permute.xlu1 %193  ;;  %v5548_v49 = vpop.permute.xlu0 %188 }
  0xa3   :  { %8483 = vst [vmem:[#allocation25_spill] sm:$0xff] %v5545_v48  ;;  %4946 = vset.pattern.permute.xlu0 %v8454_v28  ;;  %v5656_v48 = vld [vmem:[%s8437_s1 + $0x3] ss:$0 sm:$0xff] }
  0xa4   :  { %8484 = vst [vmem:[#allocation26_spill] sm:$0xff] %v5548_v49  ;;  %602 = vperm.xlu0 %4946, %v5436_v21  }
  0xa8   :  { %4869 = vset.pattern.permute.xlu1 %v8460_v33 }
  0xa9   :  { %4870 = vset.pattern.permute.xlu2 %v8462_v29  ;;  %986 = vperm.xlu1 %4869, %v5408_v16   ;;  %v5555_v50 = vpop.permute.xlu2 %258 }
  0xaa   :  { %344 = vperm.xlu2 %4870, %v5323_v2   ;;  %8485 = vst [vmem:[#allocation27_spill] sm:$0xff] %v5555_v50  ;;  %v5557_v51 = vpop.permute.xlu1 %208  ;;  %v5559_v52 = vpop.permute.xlu0 %203  ;;  %v8499_v50 = vmov 2  }
  0xab   :  { %8486 = vst [vmem:[#allocation28_spill] sm:$0xff] %v5557_v51  ;;  %v136_v51 = vld [vmem:[%s8436_s0 + $0xe0] sm:$0xff] }
  0xac   :  { %8487 = vst [vmem:[#allocation29_spill] sm:$0xff] %v5559_v52  ;;  %550 = vperm.xlu0 %4946, %v5336_v4  }
  0xb1   :  { %4871 = vset.pattern.permute.xlu1 %v8462_v29  ;;  %v5570_v55 = vpop.permute.xlu2 %273 }
  0xb2   :  { %4872 = vset.pattern.permute.xlu2 %v8456_v36  ;;  %v5564_v53 = vpop.permute.xlu1 %223  ;;  %348 = vperm.xlu1 %4871, %v5341_v5   ;;  %v5568_v54 = vpop.permute.xlu0 %218  ;;  %8489 = vst [vmem:[#allocation31_spill] sm:$0xff] %v5570_v55 }
  0xb3   :  { %1176 = vperm.xlu2 %4872, %v5413_v17   ;;  %8488 = vst [vmem:[#allocation30_spill] sm:$0xff] %v5568_v54  ;;  %v8497_v54 = vmov 5  }
  0xb4   :  { %562 = vperm.xlu0 %4946, %v5354_v7  }
  0xba   :  { %v5573_v56 = vpop.permute.xlu1 %238  ;;  %4873 = vset.pattern.permute.xlu1 %v8454_v28  ;;  %v5577_v57 = vpop.permute.xlu0 %233 }
  0xbb   :  { %8490 = vst [vmem:[#allocation32_spill] sm:$0xff] %v5573_v56  ;;  %4874 = vset.pattern.permute.xlu2 %v8454_v28  ;;  %538 = vperm.xlu1 %4873, %v5323_v2   ;;  %v5581_v58 = vpop.permute.xlu2 %530 }
  0xbc   :  { %542 = vperm.xlu2 %4874, %v5341_v5   ;;  %630 = vperm.xlu0 %4946, %v5467_v26  }
  0xc2   :  { %v5584_v59 = vpop.permute.xlu1 %253  ;;  %v5586_v60 = vpop.permute.xlu0 %248 }
  0xc3   :  { %8491 = vst [vmem:[#allocation33_spill] sm:$0xff] %v5584_v59  ;;  %4875 = vset.pattern.permute.xlu1 %v8452_v30 }
  0xc4   :  { %8492 = vst [vmem:[#allocation34_spill] sm:$0xff] %v5586_v60  ;;  %4876 = vset.pattern.permute.xlu2 %v8452_v30  ;;  %4955 = vset.pattern.permute.xlu0 %v8456_v36  ;;  %v4712_v60 = vld [vmem:[%s8439_s3 + $0x30] sm:$0xff] }
  0xc5   :  { %1370 = vperm.xlu1 %4875, %v5413_v17   ;;  %v5592_v61 = vpop.permute.xlu2 %724  ;;  %1374 = vperm.xlu2 %4876, %v5408_v16  }
  0xc6   :  { %1112 = vperm.xlu0 %4955, %v5328_v3  }
  0xca   :  { %v5596_v62 = vpop.permute.xlu1 %268  ;;  %v5598_v63 = vpop.permute.xlu0 %263 }
  0xcb   :  { %8493 = vst [vmem:[#allocation35_spill] sm:$0xff] %v5596_v62 }
  0xcc   :  { %8494 = vst [vmem:[#allocation36_spill] sm:$0xff] %v5598_v63 }
  0xcd   :  { %4877 = vset.pattern.permute.xlu1 %v8450_v31  ;;  %4878 = vset.pattern.permute.xlu2 %v8458_v46 }
  0xce   :  { %1180 = vperm.xlu0 %4955, %v5408_v16   ;;  %v923_v6 = vpop.permute.xlu2 %922  ;;  %736 = vperm.xlu1 %4877, %v5341_v5  }
  0xcf   :  { %1564 = vperm.xlu2 %4878, %v5413_v17  }
  0xd3   :  { %v341_v12 = vpop.permute.xlu1 %340 }
  0xd4   :  { %v1311_v0 = vpop.permute.xlu0 %1310 }
  0xd6   :  { %1192 = vperm.xlu0 %4955, %v5426_v19   ;;  %4879 = vset.pattern.permute.xlu1 %v8458_v46 }
  0xd7   :  { %4880 = vset.pattern.permute.xlu2 %v8460_v33  ;;  %1568 = vperm.xlu1 %4879, %v5408_v16   ;;  %v5610_v31 = vpop.permute.xlu2 %404  ;;  %v5629_v33 = vld [vmem:[%s8437_s1 + $0x1] ss:$0 sm:$0xff] }
  0xd8   :  { %926 = vperm.xlu2 %4880, %v5323_v2   ;;  %v465_v55 = vmul.f32 %v5629_v33, %v341_v12 }
  0xdc   :  { %v5612_v30 = vpop.permute.xlu0 %1322  ;;  %v535_v28 = vpop.permute.xlu1 %534 }
  0xdd   :  { %8495 = vst [vmem:[#allocation37_spill] sm:$0xff] %v5612_v30  ;;  %v659_v62 = vmul.f32 %v5645_v40, %v535_v28 }
  0xde   :  { %1140 = vperm.xlu0 %4955, %v5359_v8  }
  0xdf   :  { %4881 = vset.pattern.permute.xlu1 %v8462_v29 }
  0xe0   :  { %4882 = vset.pattern.permute.xlu2 %v8462_v29  ;;  %v5617_v36 = vpop.permute.xlu2 %594  ;;  %408 = vperm.xlu1 %4881, %v5436_v21  }
  0xe1   :  { %412 = vperm.xlu2 %4882, %v5431_v20  }
  0xe4   :  { %v5621_v16 = vpop.permute.xlu0 %1390 }
  0xe5   :  { %8496 = vst [vmem:[#allocation38_spill] sm:$0xff] %v5621_v16  ;;  %v5624_v46 = vpop.permute.xlu1 %918 }
  0xe6   :  { %1216 = vperm.xlu0 %4955, %v5462_v25   ;;  %v5640_v25 = vld [vmem:[%s8437_s1] ss:$0 sm:$0xff] }
  0xe7   :  { %v303_v52 = vmul.f32 %v5640_v25, %v5526_v42 }
  0xe8   :  { %4883 = vset.pattern.permute.xlu1 %v8497_v54 }
  0xe9   :  { %4884 = vset.pattern.permute.xlu2 %v8497_v54  ;;  %v5633_v29 = vpop.permute.xlu2 %1306  ;;  %1120 = vperm.xlu1 %4883, %v5323_v2   ;;  %v497_v59 = vadd.f32 %v465_v55, %v303_v52 }
  0xea   :  { %8498 = vst [vmem:[#allocation39_spill] sm:$0xff] %v5633_v29  ;;  %1124 = vperm.xlu2 %4884, %v5341_v5  }
  0xeb   :  { %v691_v12 = vadd.f32 %v659_v62, %v497_v59  ;;  %v8502_v59 = vmov 4  }
  0xed   :  { %v729_v37 = vpop.permute.xlu0 %728 }
  0xee   :  { %1224 = vperm.xlu0 %4955, %v136_v51   ;;  %v5659_v35 = vpop.permute.xlu1 %400  ;;  %v853_v49 = vmul.f32 %v5656_v48, %v729_v37  ;;  %v5669_v51 = vld [vmem:[%s8437_s1 + $0x4] ss:$0 sm:$0xff]  ;;  %v5677_v37 = vld [vmem:[%s8437_s1 + $0x6] ss:$0 sm:$0xff] }
  0xef   :  { %v1047_v28 = vmul.f32 %v5669_v51, %v923_v6  ;;  %v1435_v6 = vmul.f32 %v5677_v37, %v1311_v0 }
  0xf0   :  { %v885_v52 = vadd.f32 %v853_v49, %v691_v12  ;;  %v8503_v49 = vmov 3  }
  0xf1   :  { %4885 = vset.pattern.permute.xlu1 %v8499_v50 }
  0xf2   :  { %4886 = vset.pattern.permute.xlu2 %v8500_v44  ;;  %v5664_v42 = vpop.permute.xlu2 %792  ;;  %606 = vperm.xlu1 %4885, %v5431_v20   ;;  %v1079_v47 = vadd.f32 %v1047_v28, %v885_v52  ;;  %v8506_v28 = vmov 7  }
  0xf3   :  { %1314 = vperm.xlu2 %4886, %v5323_v2  }
  0xf5   :  { %v5679_v55 = vpop.permute.xlu0 %732 }
  0xf6   :  { %8501 = vst [vmem:[#allocation40_spill] sm:$0xff] %v5679_v55  ;;  %5012 = vset.pattern.permute.xlu0 %v8502_v59 }
  0xf7   :  { %982 = vperm.xlu0 %5012, %v5413_v17   ;;  %v1117_v62 = vpop.permute.xlu1 %1116 }
  0xf8   :  { %v1241_v16 = vmul.f32 %v5684_v45, %v1117_v62 }
  0xfa   :  { %v1273_v30 = vadd.f32 %v1241_v16, %v1079_v47  ;;  %4887 = vset.pattern.permute.xlu1 %v8500_v44 }
  0xfb   :  { %4888 = vset.pattern.permute.xlu2 %v8503_v49  ;;  %v5692_v12 = vpop.permute.xlu2 %1504  ;;  %1318 = vperm.xlu1 %4887, %v5341_v5  }
  0xfc   :  { %796 = vperm.xlu2 %4888, %v5436_v21   ;;  %v5696_v34 = vadd.f32 %v1435_v6, %v1273_v30 }
  0xfd   :  { %v5698_v17 = vpop.permute.xlu0 %800 }
  0xfe   :  { %8504 = vst [vmem:[#allocation41_spill] sm:$0xff] %v5696_v34 }
  0xff   :  { %8505 = vst [vmem:[#allocation42_spill] sm:$0xff] %v5698_v17  ;;  %930 = vperm.xlu0 %5012, %v5341_v5  }
 0x100   :  { %v5701_v0 = vpop.permute.xlu1 %598 }
 0x103   :  { %4889 = vset.pattern.permute.xlu1 %v8506_v28 }
 0x104   :  { %4890 = vset.pattern.permute.xlu2 %v8506_v28  ;;  %1508 = vperm.xlu1 %4889, %v5323_v2   ;;  %v5707_v47 = vpop.permute.xlu2 %344 }
 0x105   :  { %1512 = vperm.xlu2 %4890, %v5341_v5   ;;  %v5709_v16 = vpop.permute.xlu0 %812  ;;  %v8510_v5 = vmov 1  }
 0x106   :  { %8507 = vst [vmem:[#allocation43_spill] sm:$0xff] %v5709_v16 }
 0x107   :  { %942 = vperm.xlu0 %5012, %v5364_v9  }
 0x109   :  { %v5712_v30 = vpop.permute.xlu1 %788 }
 0x10c   :  { %4891 = vset.pattern.permute.xlu1 %v8502_v59 }
 0x10d   :  { %4892 = vset.pattern.permute.xlu2 %v8502_v59  ;;  %v5716_v52 = vpop.permute.xlu0 %760  ;;  %v5718_v62 = vpop.permute.xlu2 %1176  ;;  %990 = vperm.xlu1 %4891, %v5436_v21  }
 0x10e   :  { %8508 = vst [vmem:[#allocation44_spill] sm:$0xff] %v5716_v52  ;;  %994 = vperm.xlu2 %4892, %v5431_v20  }
 0x10f   :  { %1010 = vperm.xlu0 %5012, %v5444_v22  }
 0x112   :  { %v5723_v2 = vpop.permute.xlu1 %1500 }
 0x113   :  { %8509 = vst [vmem:[#allocation45_spill] sm:$0xff] %v5723_v2 }
 0x115   :  { %4893 = vset.pattern.permute.xlu1 %v8510_v5 }
 0x116   :  { %4894 = vset.pattern.permute.xlu2 %v8497_v54  ;;  %v5727_v6 = vpop.permute.xlu0 %602  ;;  %v5729_v16 = vpop.permute.xlu2 %542  ;;  %356 = vperm.xlu1 %4893, %v5336_v4  }
 0x117   :  { %1184 = vperm.xlu2 %4894, %v5436_v21   ;;  %966 = vperm.xlu0 %5012, %v5400_v15   ;;  %v676_v29 = vmul.f32 %v5645_v40, %v5727_v6 }
 0x11b   :  { %v5734_v52 = vpop.permute.xlu1 %986 }
 0x11e   :  { %v5736_v32 = vpop.permute.xlu0 %550  ;;  %4895 = vset.pattern.permute.xlu1 %v8497_v54 }
 0x11f   :  { %8511 = vst [vmem:[#allocation46_spill] sm:$0xff] %v5736_v32  ;;  %4896 = vset.pattern.permute.xlu2 %v8499_v50  ;;  %974 = vperm.xlu0 %5012, %v5390_v13   ;;  %v5742_v17 = vpop.permute.xlu2 %1374 }
 0x120   :  { %1188 = vperm.xlu1 %4895, %v5431_v20   ;;  %546 = vperm.xlu2 %4896, %v5318_v1  }
 0x124   :  { %v5745_v56 = vpop.permute.xlu1 %348 }
 0x126   :  { %v5747_v11 = vpop.permute.xlu0 %562 }
 0x127   :  { %8512 = vst [vmem:[#allocation47_spill] sm:$0xff] %v5747_v11  ;;  %5021 = vset.pattern.permute.xlu0 %v8510_v5 }
 0x128   :  { %4897 = vset.pattern.permute.xlu1 %v8500_v44  ;;  %4898 = vset.pattern.permute.xlu2 %v8500_v44 }
 0x129   :  { %336 = vperm.xlu0 %5021, %v5328_v3   ;;  %v5753_v15 = vpop.permute.xlu2 %1564  ;;  %1378 = vperm.xlu1 %4897, %v5436_v21  }
 0x12a   :  { %1382 = vperm.xlu2 %4898, %v5431_v20  }
 0x12d   :  { %v5757_v13 = vpop.permute.xlu1 %538 }
 0x12e   :  { %v5759_v32 = vpop.permute.xlu0 %630 }
 0x12f   :  { %8513 = vst [vmem:[#allocation48_spill] sm:$0xff] %v5759_v32  ;;  %v4713_v32 = vld [vmem:[%s8439_s3 + $0x38] sm:$0xff] }
 0x130   :  { %4818 = vmatpush.bf16.msra.mxu2 %v4713_v32  ;;  %1842 = vmatpush.bf16.msra.mxu0 %v4713_v32 }
 0x131   :  { %352 = vperm.xlu0 %5021, %v5318_v1   ;;  %4899 = vset.pattern.permute.xlu1 %v8503_v49 }
 0x132   :  { %4900 = vset.pattern.permute.xlu2 %v8503_v49  ;;  %v5764_v11 = vpop.permute.xlu2 %926  ;;  %740 = vperm.xlu1 %4899, %v5318_v1  }
 0x133   :  { %8514 = vst [vmem:[#allocation49_spill] sm:$0xff] %v5764_v11  ;;  %744 = vperm.xlu2 %4900, %v5336_v4  }
 0x134   :  { %4819 = vmatpush.bf16.msra.mxu2 %v4712_v60  ;;  %1843 = vmatpush.bf16.msra.mxu0 %v4712_v60 }
 0x137   :  { %v5768_v3 = vpop.permute.xlu1 %1370 }
 0x138   :  { %v5770_v63 = vpop.permute.xlu0 %1112 }
 0x139   :  { %420 = vperm.xlu0 %5021, %v5454_v24  }
 0x13a   :  { %4901 = vset.pattern.permute.xlu1 %v8506_v28 }
 0x13b   :  { %4902 = vset.pattern.permute.xlu2 %v8502_v59  ;;  %1576 = vperm.xlu1 %4901, %v5431_v20   ;;  %v5780_v22 = vpop.permute.xlu2 %412  ;;  %v4711_v20 = vld [vmem:[%s8439_s3 + $0x28] sm:$0xff] }
 0x13c   :  { %934 = vperm.xlu2 %4902, %v5318_v1   ;;  %8515 = vst [vmem:[#allocation50_spill] sm:$0xff] %v5780_v22  ;;  %4820 = vmatpush.bf16.msra.mxu2 %v4711_v20  ;;  %v4710_v22 = vld [vmem:[%s8439_s3 + $0x20] sm:$0xff] }
 0x13d   :  { %1844 = vmatpush.bf16.msra.mxu0 %v4711_v20  ;;  %v5819_v20 = vld [vmem:[%s8436_s0 + $0xd8] sm:$0xff] }
 0x140   :  { %v5785_v11 = vpop.permute.xlu0 %1180  ;;  %v5788_v23 = vpop.permute.xlu1 %736  ;;  %4821 = vmatpush.bf16.msra.mxu2 %v4710_v22 }
 0x141   :  { %432 = vperm.xlu0 %5021, %v5472_v27   ;;  %8516 = vst [vmem:[#allocation51_spill] sm:$0xff] %v5788_v23  ;;  %1845 = vmatpush.bf16.msra.mxu0 %v4710_v22  ;;  %v4708_v22 = vld [vmem:[%s8439_s3 + $0x10] sm:$0xff]  ;;  %v4707_v23 = vld [vmem:[%s8439_s3 + $0x8] sm:$0xff] }
 0x143   :  { %4903 = vset.pattern.permute.xlu1 %v8502_v59 }
 0x144   :  { %4904 = vset.pattern.permute.xlu2 %v8510_v5  ;;  %v5795_v32 = vpop.permute.xlu2 %1124  ;;  %938 = vperm.xlu1 %4903, %v5336_v4  }
 0x145   :  { %8517 = vst [vmem:[#allocation52_spill] sm:$0xff] %v5795_v32  ;;  %416 = vperm.xlu2 %4904, %v5426_v19   ;;  %v4709_v32 = vld [vmem:[%s8439_s3 + $0x18] sm:$0xff] }
 0x146   :  { %4822 = vmatpush.bf16.msra.mxu2 %v4709_v32  ;;  %1846 = vmatpush.bf16.msra.mxu0 %v4709_v32 }
 0x148   :  { %v5802_v27 = vpop.permute.xlu0 %1192 }
 0x149   :  { %8518 = vst [vmem:[#allocation53_spill] sm:$0xff] %v5802_v27  ;;  %380 = vperm.xlu0 %5021, %v5372_v10   ;;  %v5805_v60 = vpop.permute.xlu1 %1568 }
 0x14a   :  { %4823 = vmatpush.bf16.msra.mxu2 %v4708_v22  ;;  %1847 = vmatpush.bf16.msra.mxu0 %v4708_v22 }
 0x14c   :  { %4905 = vset.pattern.permute.xlu1 %v8497_v54 }
 0x14d   :  { %4906 = vset.pattern.permute.xlu2 %v8497_v54  ;;  %v5812_v2 = vpop.permute.xlu2 %1314  ;;  %1128 = vperm.xlu1 %4905, %v5318_v1  }
 0x14e   :  { %8519 = vst [vmem:[#allocation54_spill] sm:$0xff] %v5812_v2  ;;  %1132 = vperm.xlu2 %4906, %v5336_v4   ;;  %v320_v2 = vmul.f32 %v5640_v25, %v5577_v57  ;;  %v5840_v57 = vld [vmem:[%s8436_s0 + $0xe8] sm:$0xff]  ;;  %4824 = vmatpush.bf16.msra.mxu2 %v4707_v23 }
 0x14f   :  { %8521 = vst [vmem:[#allocation56_spill] sm:$0xff] %v5840_v57  ;;  %1848 = vmatpush.bf16.msra.mxu0 %v4707_v23  ;;  %v139_v23 = vld [vmem:[%s8436_s0 + $0xf8] sm:$0xff] }
 0x150   :  { %v5824_v27 = vpop.permute.xlu0 %1140 }
 0x151   :  { %8520 = vst [vmem:[#allocation55_spill] sm:$0xff] %v5824_v27  ;;  %444 = vperm.xlu0 %5021, %v5819_v20   ;;  %v319_v27 = vmul.f32 %v5640_v25, %v5532_v43  ;;  %v480_v43 = vmul.f32 %v5629_v33, %v5659_v35  ;;  %v674_v35 = vmul.f32 %v5645_v40, %v5617_v36 }
 0x152   :  { %v409_v34 = vpop.permute.xlu1 %408  ;;  %v1451_v36 = vmul.f32 %v5677_v37, %v5742_v17 }
 0x153   :  { %v482_v55 = vmul.f32 %v5629_v33, %v409_v34 }
 0x155   :  { %v514_v32 = vadd.f32 %v482_v55, %v320_v2  ;;  %4907 = vset.pattern.permute.xlu1 %v8499_v50  ;;  %v4706_v55 = vld [vmem:[%s8439_s3] sm:$0xff]  ;;  %v481_v2 = vmul.f32 %v5629_v33, %v5610_v31 }
 0x156   :  { %4908 = vset.pattern.permute.xlu2 %v8499_v50  ;;  %610 = vperm.xlu1 %4907, %v5426_v19   ;;  %v5844_v6 = vpop.permute.xlu2 %796 }
 0x157   :  { %614 = vperm.xlu2 %4908, %v5454_v24   ;;  %8522 = vst [vmem:[#allocation57_spill] sm:$0xff] %v5844_v6  ;;  %v5846_v34 = vadd.f32 %v676_v29, %v514_v32  ;;  %v675_v29 = vmul.f32 %v5645_v40, %v5701_v0  ;;  %4825 = vmatpush.bf16.msra.mxu2 %v4706_v55 }
 0x158   :  { %v5848_v22 = vpop.permute.xlu0 %1216  ;;  %1849 = vmatpush.bf16.msra.mxu0 %v4706_v55  ;;  %v869_v0 = vmul.f32 %v5656_v48, %v5664_v42  ;;  %v318_v55 = vmul.f32 %v5640_v25, %v5564_v53  ;;  %v1257_v42 = vmul.f32 %v5684_v45, %v5785_v11  ;;  %v5892_v53 = vld [vmem:[%s8437_s1 + $0x7] ss:$0 sm:$0xff] }
 0x159   :  { %8523 = vst [vmem:[#allocation58_spill] sm:$0xff] %v5846_v34  ;;  %452 = vperm.xlu0 %5021, %v5840_v57  }
 0x15a   :  { %8524 = vst [vmem:[#allocation59_spill] sm:$0xff] %v5848_v22  ;;  %v513_v22 = vadd.f32 %v481_v2, %v319_v27  ;;  %v1063_v2 = vmul.f32 %v5669_v51, %v5734_v52  ;;  %v512_v6 = vadd.f32 %v480_v43, %v318_v55 }
 0x15b   :  { %v5860_v32 = vpop.permute.xlu1 %1120 }
 0x15c   :  { %v707_v34 = vadd.f32 %v675_v29, %v513_v22  ;;  %v868_v29 = vmul.f32 %v5656_v48, %v5712_v30  ;;  %v706_v52 = vadd.f32 %v674_v35, %v512_v6  ;;  %v1256_v6 = vmul.f32 %v5684_v45, %v5718_v62 }
 0x15e   :  { %4909 = vset.pattern.permute.xlu1 %v8500_v44  ;;  %v901_v57 = vadd.f32 %v869_v0, %v707_v34  ;;  %v1645_v34 = vmul.f32 %v5892_v53, %v5805_v60  ;;  %v1644_v60 = vmul.f32 %v5892_v53, %v5753_v15 }
 0x15f   :  { %4910 = vset.pattern.permute.xlu2 %v8503_v49  ;;  %v5867_v31 = vpop.permute.xlu2 %1512  ;;  %1326 = vperm.xlu1 %4909, %v5336_v4  }
 0x160   :  { %804 = vperm.xlu2 %4910, %v5426_v19   ;;  %v5875_v27 = vpop.permute.xlu0 %1224 }
 0x161   :  { %460 = vperm.xlu0 %5021, %v139_v23   ;;  %v1095_v23 = vadd.f32 %v1063_v2, %v901_v57  ;;  %v900_v57 = vadd.f32 %v868_v29, %v706_v52 }
 0x163   :  { %v1289_v43 = vadd.f32 %v1257_v42, %v1095_v23  ;;  %v5915_v23 = vld [vmem:[#allocation2] ss:$0 sm:$0xff] }
 0x164   :  { %v5885_v22 = vpop.permute.xlu1 %606 }
 0x165   :  { %v1483_v0 = vadd.f32 %v1451_v36, %v1289_v43 }
 0x167   :  { %4911 = vset.pattern.permute.xlu1 %v8503_v49  ;;  %v1677_v2 = vadd.f32 %v1645_v34, %v1483_v0 }
 0x168   :  { %4912 = vset.pattern.permute.xlu2 %v8506_v28  ;;  %808 = vperm.xlu1 %4911, %v5454_v24   ;;  %v5900_v11 = vpop.permute.xlu2 %994 }
 0x169   :  { %1516 = vperm.xlu2 %4912, %v5318_v1   ;;  %v983_v30 = vpop.permute.xlu0 %982  ;;  %5026 = vset.pattern.permute.xlu0 %v8506_v28  ;;  %v1450_v1 = vmul.f32 %v5677_v37, %v5768_v3  ;;  %v1713_v52 = vadd.f32 %v5915_v23, %v1677_v2 }
 0x16a   :  { %v1062_v17 = vmul.f32 %v5669_v51, %v983_v30  ;;  %1572 = vperm.xlu0 %5026, %v5436_v21  }
 0x16b   :  { %v1745_v43 = vmax.f32 %v1713_v52, 0.0  ;;  %v467_v52 = vmul.f32 %v5629_v33, %v5745_v56  ;;  %v852_v56 = vmul.f32 %v5656_v48, %v5592_v61  ;;  %v1629_v61 = vmul.f32 %v5892_v53, %v5692_v12 }
 0x16c   :  { %v1094_v55 = vadd.f32 %v1062_v17, %v900_v57 }
 0x16d   :  { %v5911_v42 = vpop.permute.xlu1 %1318 }
 0x16e   :  { %v1288_v35 = vadd.f32 %v1256_v6, %v1094_v55 }
 0x170   :  { %v1482_v29 = vadd.f32 %v1450_v1, %v1288_v35  ;;  %4913 = vset.pattern.permute.xlu1 %v8502_v59 }
 0x171   :  { %4914 = vset.pattern.permute.xlu2 %v8502_v59  ;;  %v5919_v21 = vpop.permute.xlu0 %930  ;;  %v5921_v62 = vpop.permute.xlu2 %1184  ;;  %998 = vperm.xlu1 %4913, %v5426_v19  }
 0x172   :  { %1002 = vperm.xlu2 %4914, %v5454_v24   ;;  %v1676_v3 = vadd.f32 %v1644_v60, %v1482_v29  ;;  %1520 = vperm.xlu0 %5026, %v5336_v4   ;;  %v302_v60 = vmul.f32 %v5640_v25, %v5515_v39  ;;  %v466_v39 = vmul.f32 %v5629_v33, %v5707_v47 }
 0x173   :  { %v1240_v47 = vmul.f32 %v5684_v45, %v5770_v63 }
 0x174   :  { %v1712_v15 = vadd.f32 %v5915_v23, %v1676_v3 }
 0x176   :  { %v1744_v36 = vmax.f32 %v1712_v15, 0.0  ;;  %v5928_v30 = vpop.permute.xlu1 %1508  ;;  %v658_v15 = vmul.f32 %v5645_v40, %v5581_v58 }
 0x178   :  { %v1768_v57 = vpack.c.bf16 %v1745_v43, %v1744_v36 }
 0x179   :  { %v5930_v34 = vpop.permute.xlu0 %942  ;;  %4915 = vset.pattern.permute.xlu1 %v8510_v5 }
 0x17a   :  { %4916 = vset.pattern.permute.xlu2 %v8510_v5  ;;  %360 = vperm.xlu1 %4915, %v5364_v9   ;;  %v5936_v17 = vpop.permute.xlu2 %546 }
 0x17b   :  { %364 = vperm.xlu2 %4916, %v5359_v8   ;;  %1890 = vmatmul.bf16.vlgmr.msra.gmra.mxu2 %v1768_v57  ;;  %v304_v57 = vmul.f32 %v5640_v25, %v5512_v38 }
 0x17c   :  { %1532 = vperm.xlu0 %5026, %v5354_v7  }
 0x17f   :  { %v5939_v4 = vpop.permute.xlu1 %990 }
 0x181   :  { %v5941_v6 = vpop.permute.xlu0 %1010 }
 0x182   :  { %4917 = vset.pattern.permute.xlu1 %v8497_v54 }
 0x183   :  { %4918 = vset.pattern.permute.xlu2 %v8499_v50  ;;  %1196 = vperm.xlu1 %4917, %v5454_v24  }
 0x184   :  { %554 = vperm.xlu2 %4918, %v5364_v9   ;;  %v5947_v0 = vpop.permute.xlu2 %1382  ;;  %1600 = vperm.xlu0 %5026, %v5467_v26  }
 0x188   :  { %v5950_v55 = vpop.permute.xlu1 %356 }
 0x189   :  { %v5952_v1 = vpop.permute.xlu0 %966 }
 0x18b   :  { %4919 = vset.pattern.permute.xlu1 %v8499_v50 }
 0x18c   :  { %4920 = vset.pattern.permute.xlu2 %v8500_v44  ;;  %558 = vperm.xlu1 %4919, %v5359_v8  }
 0x18d   :  { %1386 = vperm.xlu2 %4920, %v5426_v19   ;;  %v5958_v7 = vpop.permute.xlu2 %744  ;;  %1544 = vperm.xlu0 %5026, %v5372_v10  }
 0x191   :  { %v5963_v35 = vpop.permute.xlu0 %974 }
 0x192   :  { %v5961_v2 = vpop.permute.xlu1 %1188  ;;  %8525 = vst [vmem:[#allocation60_spill] sm:$0xff] %v5963_v35  ;;  %v8528_v35 = vld [vmem:[#allocation39_spill] sm:$0xff] }
 0x193   :  { %v1434_v63 = vmul.f32 %v5677_v37, %v8528_v35  ;;  %v8532_v35 = vld [vmem:[#allocation49_spill] sm:$0xff] }
 0x194   :  { %4922 = vset.pattern.permute.xlu1 %v8503_v49 }
 0x195   :  { %4923 = vset.pattern.permute.xlu2 %v8503_v49  ;;  %748 = vperm.xlu1 %4922, %v5364_v9  }
 0x196   :  { %752 = vperm.xlu2 %4923, %v5359_v8   ;;  %v5969_v26 = vpop.permute.xlu2 %934  ;;  %1552 = vperm.xlu0 %5026, %v5395_v14   ;;  %v305_v14 = vmul.f32 %v5640_v25, %v5523_v41  ;;  %v661_v41 = vmul.f32 %v5645_v40, %v5729_v16 }
 0x19b   :  { %v337_v10 = vpop.permute.xlu0 %336  ;;  %v5975_v3 = vpop.permute.xlu1 %1378 }
 0x19c   :  { %v464_v29 = vmul.f32 %v5629_v33, %v337_v10  ;;  %v498_v10 = vadd.f32 %v466_v39, %v304_v57  ;;  %v8529_v39 = vld [vmem:[#allocation41_spill] sm:$0xff] }
 0x19d   :  { %4924 = vset.pattern.permute.xlu1 %v8506_v28 }
 0x19e   :  { %v496_v36 = vadd.f32 %v464_v29, %v302_v60  ;;  %4925 = vset.pattern.permute.xlu2 %v8506_v28  ;;  %1580 = vperm.xlu1 %4924, %v5426_v19   ;;  %v499_v60 = vadd.f32 %v467_v52, %v305_v14  ;;  %v660_v19 = vmul.f32 %v5645_v40, %v5757_v13  ;;  %v8526_v29 = vld [vmem:[#allocation51_spill] sm:$0xff]  ;;  %v8527_v52 = vld [vmem:[#allocation40_spill] sm:$0xff] }
 0x19f   :  { %1584 = vperm.xlu2 %4925, %v5454_v24   ;;  %v5991_v58 = vpop.permute.xlu2 %416  ;;  %1560 = vperm.xlu0 %5026, %v5418_v18   ;;  %v1046_v24 = vmul.f32 %v5669_v51, %v5624_v46  ;;  %v855_v38 = vmul.f32 %v5656_v48, %v8526_v29  ;;  %v854_v13 = vmul.f32 %v5656_v48, %v8527_v52  ;;  %v8534_v52 = vld [vmem:[#allocation16_spill] sm:$0xff] }
 0x1a0   :  { %v690_v43 = vadd.f32 %v658_v15, %v496_v36  ;;  %v692_v36 = vadd.f32 %v660_v19, %v498_v10  ;;  %v693_v14 = vadd.f32 %v661_v41, %v499_v60  ;;  %v1049_v46 = vmul.f32 %v5669_v51, %v5919_v21  ;;  %v8531_v41 = vld [vmem:[#allocation15_spill] sm:$0xff]  ;;  %v8533_v10 = vld [vmem:[#allocation34_spill] sm:$0xff] }
 0x1a1   :  { %v323_v29 = vmul.f32 %v5640_v25, %v8533_v10 }
 0x1a2   :  { %v884_v18 = vadd.f32 %v852_v56, %v690_v43  ;;  %v1661_v56 = vadd.f32 %v1629_v61, %v8529_v39  ;;  %v887_v57 = vadd.f32 %v855_v38, %v693_v14  ;;  %v1048_v61 = vmul.f32 %v5669_v51, %v8532_v35 }
 0x1a3   :  { %v6008_v15 = vpop.permute.xlu0 %352 }
 0x1a4   :  { %v1078_v16 = vadd.f32 %v1046_v24, %v884_v18  ;;  %v6014_v12 = vpop.permute.xlu1 %740  ;;  %v8530_v24 = vld [vmem:[#allocation45_spill] sm:$0xff]  ;;  %v886_v18 = vadd.f32 %v854_v13, %v692_v36  ;;  %v1242_v13 = vmul.f32 %v5684_v45, %v5860_v32  ;;  %v1437_v32 = vmul.f32 %v5677_v37, %v5911_v42 }
 0x1a5   :  { %v1628_v19 = vmul.f32 %v5892_v53, %v8530_v24 }
 0x1a6   :  { %v1272_v43 = vadd.f32 %v1240_v47, %v1078_v16  ;;  %4926 = vset.pattern.permute.xlu1 %v8502_v59  ;;  %v1081_v47 = vadd.f32 %v1049_v46, %v887_v57  ;;  %v1697_v16 = vadd.f32 %v5915_v23, %v1661_v56  ;;  %v1080_v39 = vadd.f32 %v1048_v61, %v886_v18 }
 0x1a7   :  { %4927 = vset.pattern.permute.xlu2 %v8510_v5  ;;  %946 = vperm.xlu1 %4926, %v5359_v8   ;;  %v8535_v8 = vld [vmem:[#allocation52_spill] sm:$0xff]  ;;  %v1631_v18 = vmul.f32 %v5892_v53, %v5867_v31 }
 0x1a8   :  { %424 = vperm.xlu2 %4927, %v8531_v41   ;;  %v6025_v21 = vpop.permute.xlu2 %1132  ;;  %v1466_v60 = vadd.f32 %v1434_v63, %v1272_v43  ;;  %5035 = vset.pattern.permute.xlu0 %v8500_v44  ;;  %v1243_v14 = vmul.f32 %v5684_v45, %v8535_v8  ;;  %v1274_v10 = vadd.f32 %v1242_v13, %v1080_v39  ;;  %v8539_v8 = vld [vmem:[#allocation13_spill] sm:$0xff] }
 0x1a9   :  { %1402 = vperm.xlu0 %5035, %v8534_v52   ;;  %v8538_v52 = vld [vmem:[#allocation36_spill] sm:$0xff] }
 0x1aa   :  { %v1660_v38 = vadd.f32 %v1628_v19, %v1466_v60  ;;  %v1275_v43 = vadd.f32 %v1243_v14, %v1081_v47  ;;  %v1729_v19 = vmax.f32 %v1697_v16, 0.0  ;;  %v8536_v60 = vld [vmem:[#allocation54_spill] sm:$0xff]  ;;  %v1630_v47 = vmul.f32 %v5892_v53, %v5928_v30 }
 0x1ab   :  { %v421_v36 = vpop.permute.xlu0 %420  ;;  %v1436_v35 = vmul.f32 %v5677_v37, %v8536_v60  ;;  %v326_v42 = vmul.f32 %v5640_v25, %v8538_v52 }
 0x1ac   :  { %v485_v63 = vmul.f32 %v5629_v33, %v421_v36  ;;  %v1696_v46 = vadd.f32 %v5915_v23, %v1660_v38  ;;  %v1469_v61 = vadd.f32 %v1437_v32, %v1275_v43 }
 0x1ad   :  { %v6042_v24 = vpop.permute.xlu1 %1576  ;;  %v1468_v14 = vadd.f32 %v1436_v35, %v1274_v10 }
 0x1ae   :  { %v6040_v57 = vadd.f32 %v485_v63, %v323_v29  ;;  %v1728_v56 = vmax.f32 %v1696_v46, 0.0  ;;  %v8537_v29 = vld [vmem:[#allocation14_spill] sm:$0xff]  ;;  %v1663_v63 = vadd.f32 %v1631_v18, %v1469_v61  ;;  %v6094_v18 = vld [vmem:[%s8436_s0 + $0x60] sm:$0xff] }
 0x1af   :  { %4928 = vset.pattern.permute.xlu1 %v8510_v5  ;;  %v1662_v36 = vadd.f32 %v1630_v47, %v1468_v14  ;;  %v8540_v61 = vld [vmem:[#allocation50_spill] sm:$0xff] }
 0x1b0   :  { %4929 = vset.pattern.permute.xlu2 %v8497_v54  ;;  %v1760_v38 = vpack.c.bf16 %v1729_v19, %v1728_v56  ;;  %428 = vperm.xlu1 %4928, %v8537_v29   ;;  %v1699_v39 = vadd.f32 %v5915_v23, %v1663_v63  ;;  %v483_v47 = vmul.f32 %v5629_v33, %v8540_v61 }
 0x1b1   :  { %1136 = vperm.xlu2 %4929, %v5364_v9   ;;  %v6056_v16 = vpop.permute.xlu2 %614  ;;  %1346 = vperm.xlu0 %5035, %v8539_v8   ;;  %v1698_v9 = vadd.f32 %v5915_v23, %v1662_v36 }
 0x1b2   :  { %1850 = vmatmul.bf16.vlgmr.msra.gmra.mxu0 %v1760_v38  ;;  %v1731_v60 = vmax.f32 %v1699_v39, 0.0  ;;  %v8543_v39 = vld [vmem:[#allocation17_spill] sm:$0xff] }
 0x1b3   :  { %v433_v13 = vpop.permute.xlu0 %432  ;;  %v1730_v19 = vmax.f32 %v1698_v9, 0.0 }
 0x1b4   :  { %v488_v31 = vmul.f32 %v5629_v33, %v433_v13  ;;  %v468_v13 = vmul.f32 %v5629_v33, %v6008_v15 }
 0x1b5   :  { %v1761_v10 = vpack.c.bf16 %v1731_v60, %v1730_v19  ;;  %v306_v19 = vmul.f32 %v5640_v25, %v8543_v39  ;;  %v4721_v60 = vld [vmem:[%s8439_s3 + $0x78] sm:$0xff] }
 0x1b6   :  { %v6062_v46 = vadd.f32 %v488_v31, %v326_v42  ;;  %v6064_v30 = vpop.permute.xlu1 %938  ;;  %v677_v42 = vmul.f32 %v5645_v40, %v5885_v22  ;;  %v8542_v31 = vld [vmem:[#allocation42_spill] sm:$0xff]  ;;  %4826 = vmatpush.bf16.msra.mxu3 %v4721_v60  ;;  %2046 = vmatpush.bf16.msra.mxu1 %v4721_v60 }
 0x1b7   :  { %v871_v36 = vmul.f32 %v5656_v48, %v8542_v31  ;;  %v6118_v22 = vld [vmem:[%s8436_s0 + $0xb8] sm:$0xff]  ;;  %v500_v61 = vadd.f32 %v468_v13, %v306_v19  ;;  %v4720_v31 = vld [vmem:[%s8439_s3 + $0x70] sm:$0xff]  ;;  %v469_v13 = vmul.f32 %v5629_v33, %v5950_v55  ;;  %v1064_v55 = vmul.f32 %v5669_v51, %v5939_v4 }
 0x1b8   :  { %4930 = vset.pattern.permute.xlu1 %v8499_v50  ;;  %v8547_v60 = vld [vmem:[#allocation46_spill] sm:$0xff] }
 0x1b9   :  { %4931 = vset.pattern.permute.xlu2 %v8499_v50  ;;  %618 = vperm.xlu1 %4930, %v8531_v41   ;;  %v5056_v41 = vld [vmem:[%s8436_s0 + $0x30] sm:$0xff] }
 0x1ba   :  { %622 = vperm.xlu2 %4931, %v8537_v29   ;;  %v6072_v43 = vpop.permute.xlu2 %804  ;;  %1414 = vperm.xlu0 %5035, %v5819_v20   ;;  %v5057_v20 = vld [vmem:[%s8436_s0 + $0x38] sm:$0xff]  ;;  %v8541_v29 = vld [vmem:[#allocation32_spill] sm:$0xff]  ;;  %v6165_v4 = vld [vmem:[%s8436_s0 + $0xb0] sm:$0xff] }
 0x1bb   :  { %v6074_v56 = vpop.permute.xlu0 %380  ;;  %v321_v52 = vmul.f32 %v5640_v25, %v8541_v29  ;;  %v1065_v29 = vmul.f32 %v5669_v51, %v5900_v11  ;;  %4827 = vmatpush.bf16.msra.mxu3 %v4720_v31  ;;  %2047 = vmatpush.bf16.msra.mxu1 %v4720_v31 }
 0x1bd   :  { %v515_v8 = vadd.f32 %v483_v47, %v321_v52  ;;  %v662_v52 = vmul.f32 %v5645_v40, %v5936_v17  ;;  %v4719_v17 = vld [vmem:[%s8439_s3 + $0x68] sm:$0xff] }
 0x1bf   :  { %v6077_v35 = vpop.permute.xlu1 %1128  ;;  %v709_v63 = vadd.f32 %v677_v42, %v515_v8  ;;  %v8545_v42 = vld [vmem:[#allocation57_spill] sm:$0xff]  ;;  %v1259_v8 = vmul.f32 %v5684_v45, %v5961_v2  ;;  %v8546_v2 = vld [vmem:[#allocation18_spill] sm:$0xff]  ;;  %4828 = vmatpush.bf16.msra.mxu3 %v4719_v17  ;;  %2048 = vmatpush.bf16.msra.mxu1 %v4719_v17 }
 0x1c0   :  { %v307_v19 = vmul.f32 %v5640_v25, %v8546_v2  ;;  %v1050_v2 = vmul.f32 %v5669_v51, %v5969_v26  ;;  %v1258_v26 = vmul.f32 %v5684_v45, %v5921_v62  ;;  %v8549_v62 = vld [vmem:[#allocation37_spill] sm:$0xff] }
 0x1c1   :  { %4932 = vset.pattern.permute.xlu1 %v8500_v44  ;;  %v903_v47 = vadd.f32 %v871_v36, %v709_v63  ;;  %v694_v36 = vadd.f32 %v662_v52, %v500_v61  ;;  %v856_v61 = vmul.f32 %v5656_v48, %v6014_v12  ;;  %v1453_v52 = vmul.f32 %v5677_v37, %v5947_v0  ;;  %v5061_v0 = vld [vmem:[%s8436_s0 + $0x70] sm:$0xff] }
 0x1c2   :  { %4933 = vset.pattern.permute.xlu2 %v8500_v44  ;;  %1855 = vmatmul.bf16.gmra.mxu0 %v1761_v10  ;;  %v8544_v10 = vld [vmem:[#allocation56_spill] sm:$0xff]  ;;  %v501_v31 = vadd.f32 %v469_v13, %v307_v19  ;;  %v1647_v12 = vmul.f32 %v5892_v53, %v6042_v24  ;;  %v857_v24 = vmul.f32 %v5656_v48, %v5958_v7  ;;  %v4717_v7 = vld [vmem:[%s8439_s3 + $0x58] sm:$0xff] }
 0x1c3   :  { %1330 = vperm.xlu1 %4932, %v5056_v41   ;;  %v6084_v32 = vpop.permute.xlu2 %1516  ;;  %v6086_v38 = vpop.permute.xlu0 %444  ;;  %1334 = vperm.xlu2 %4933, %v5057_v20   ;;  %v1097_v63 = vadd.f32 %v1065_v29, %v903_v47  ;;  %v8548_v47 = vld [vmem:[#allocation58_spill] sm:$0xff]  ;;  %v1452_v19 = vmul.f32 %v5677_v37, %v5975_v3 }
 0x1c4   :  { %1354 = vperm.xlu0 %5035, %v6094_v18  }
 0x1c8   :  { %v6103_v14 = vpop.permute.xlu1 %610 }
 0x1cb   :  { %4934 = vset.pattern.permute.xlu1 %v8503_v49  ;;  %v6110_v9 = vpop.permute.xlu0 %452  ;;  %4935 = vset.pattern.permute.xlu2 %v8506_v28 }
 0x1cc   :  { %816 = vperm.xlu1 %4934, %v6118_v22   ;;  %1524 = vperm.xlu2 %4935, %v5056_v41   ;;  %v6121_v15 = vpop.permute.xlu2 %1002  ;;  %v870_v41 = vmul.f32 %v5656_v48, %v8545_v42  ;;  %v1291_v42 = vadd.f32 %v1259_v8, %v1097_v63  ;;  %v1244_v8 = vmul.f32 %v5684_v45, %v6077_v35 }
 0x1cd   :  { %1422 = vperm.xlu0 %5035, %v8544_v10   ;;  %v663_v10 = vmul.f32 %v5645_v40, %v8547_v60  ;;  %v888_v60 = vadd.f32 %v856_v61, %v694_v36  ;;  %v4718_v36 = vld [vmem:[%s8439_s3 + $0x60] sm:$0xff]  ;;  %v1438_v35 = vmul.f32 %v5677_v37, %v8549_v62 }
 0x1ce   :  { %v902_v29 = vadd.f32 %v870_v41, %v8548_v47  ;;  %v1485_v13 = vadd.f32 %v1453_v52, %v1291_v42  ;;  %4829 = vmatpush.bf16.msra.mxu3 %v4718_v36  ;;  %2049 = vmatpush.bf16.msra.mxu1 %v4718_v36 }
 0x1cf   :  { %v695_v63 = vadd.f32 %v663_v10, %v501_v31  ;;  %v1082_v17 = vadd.f32 %v1050_v2, %v888_v60  ;;  %v6199_v2 = vld [vmem:[%s8436_s0 + $0x40] sm:$0xff]  ;;  %v6207_v60 = vld [vmem:[%s8436_s0 + $0x48] sm:$0xff] }
 0x1d0   :  { %v1096_v41 = vadd.f32 %v1064_v55, %v902_v29  ;;  %v1679_v61 = vadd.f32 %v1647_v12, %v1485_v13  ;;  %v1051_v29 = vmul.f32 %v5669_v51, %v6064_v30  ;;  %v1245_v30 = vmul.f32 %v5684_v45, %v6025_v21  ;;  %v4716_v21 = vld [vmem:[%s8439_s3 + $0x50] sm:$0xff] }
 0x1d1   :  { %v6140_v11 = vpop.permute.xlu1 %1326  ;;  %v1276_v52 = vadd.f32 %v1244_v8, %v1082_v17  ;;  %v889_v3 = vadd.f32 %v857_v24, %v695_v63  ;;  %v1632_v8 = vmul.f32 %v5892_v53, %v6084_v32 }
 0x1d2   :  { %v1290_v55 = vadd.f32 %v1258_v26, %v1096_v41  ;;  %v1715_v12 = vadd.f32 %v5915_v23, %v1679_v61  ;;  %4830 = vmatpush.bf16.msra.mxu3 %v4717_v7  ;;  %2050 = vmatpush.bf16.msra.mxu1 %v4717_v7  ;;  %v1439_v36 = vmul.f32 %v5677_v37, %v6140_v11 }
 0x1d3   :  { %v6142_v39 = vpop.permute.xlu0 %460  ;;  %v1083_v26 = vadd.f32 %v1051_v29, %v889_v3  ;;  %v1470_v41 = vadd.f32 %v1438_v35, %v1276_v52  ;;  %v4715_v35 = vld [vmem:[%s8439_s3 + $0x48] sm:$0xff]  ;;  %v4714_v3 = vld [vmem:[%s8439_s3 + $0x40] sm:$0xff] }
 0x1d4   :  { %4936 = vset.pattern.permute.xlu1 %v8506_v28  ;;  %4937 = vset.pattern.permute.xlu2 %v8502_v59  ;;  %v1484_v42 = vadd.f32 %v1452_v19, %v1290_v55  ;;  %v1747_v62 = vmax.f32 %v1715_v12, 0.0  ;;  %v679_v12 = vmul.f32 %v5645_v40, %v6056_v16  ;;  %v1067_v16 = vmul.f32 %v5669_v51, %v6121_v15 }
 0x1d5   :  { %1528 = vperm.xlu1 %4936, %v5057_v20   ;;  %1006 = vperm.xlu2 %4937, %v6165_v4   ;;  %v6173_v20 = vpop.permute.xlu2 %364  ;;  %v1664_v24 = vadd.f32 %v1632_v8, %v1470_v41  ;;  %v1277_v19 = vadd.f32 %v1245_v30, %v1083_v26  ;;  %v484_v15 = vmul.f32 %v5629_v33, %v5991_v58 }
 0x1d6   :  { %1362 = vperm.xlu0 %5035, %v5061_v0   ;;  %4831 = vmatpush.bf16.msra.mxu3 %v4716_v21  ;;  %v872_v33 = vmul.f32 %v5656_v48, %v6072_v43 }
 0x1d7   :  { %2051 = vmatpush.bf16.msra.mxu1 %v4716_v21  ;;  %v1471_v55 = vadd.f32 %v1439_v36, %v1277_v19 }
 0x1da   :  { %v809_v47 = vpop.permute.xlu1 %808  ;;  %4832 = vmatpush.bf16.msra.mxu3 %v4715_v35 }
 0x1db   :  { %2052 = vmatpush.bf16.msra.mxu1 %v4715_v35  ;;  %v873_v8 = vmul.f32 %v5656_v48, %v809_v47 }
 0x1dc   :  { %v1573_v10 = vpop.permute.xlu0 %1572 }
 0x1dd   :  { %4938 = vset.pattern.permute.xlu1 %v8510_v5  ;;  %v1646_v31 = vmul.f32 %v5892_v53, %v1573_v10  ;;  %4939 = vset.pattern.permute.xlu2 %v8510_v5  ;;  %v1700_v10 = vadd.f32 %v5915_v23, %v1664_v24  ;;  %v8550_v24 = vld [vmem:[#allocation38_spill] sm:$0xff] }
 0x1de   :  { %368 = vperm.xlu1 %4938, %v6199_v2   ;;  %372 = vperm.xlu2 %4939, %v6207_v60   ;;  %v6210_v0 = vpop.permute.xlu2 %554  ;;  %v1455_v47 = vmul.f32 %v5677_v37, %v8550_v24 }
 0x1df   :  { %v1678_v13 = vadd.f32 %v1646_v31, %v1484_v42  ;;  %v1732_v31 = vmax.f32 %v1700_v10, 0.0  ;;  %4833 = vmatpush.bf16.msra.mxu3 %v4714_v3  ;;  %2053 = vmatpush.bf16.msra.mxu1 %v4714_v3  ;;  %v6270_v3 = vld [vmem:[%s8440_s4] ss:$0 sm:$0xff] }
 0x1e1   :  { %v1714_v63 = vadd.f32 %v5915_v23, %v1678_v13  ;;  %v711_v13 = vadd.f32 %v679_v12, %v6040_v57 }
 0x1e3   :  { %v6221_v17 = vpop.permute.xlu1 %998  ;;  %v1746_v61 = vmax.f32 %v1714_v63, 0.0  ;;  %v905_v36 = vadd.f32 %v873_v8, %v711_v13 }
 0x1e4   :  { %v1521_v32 = vpop.permute.xlu0 %1520 }
 0x1e5   :  { %v1633_v29 = vmul.f32 %v5892_v53, %v1521_v32  ;;  %v1769_v11 = vpack.c.bf16 %v1747_v62, %v1746_v61  ;;  %v1099_v19 = vadd.f32 %v1067_v16, %v905_v36 }
 0x1e6   :  { %4940 = vset.pattern.permute.xlu1 %v8497_v54  ;;  %4941 = vset.pattern.permute.xlu2 %v8497_v54 }
 0x1e7   :  { %1200 = vperm.xlu1 %4940, %v6165_v4   ;;  %v1665_v52 = vadd.f32 %v1633_v29, %v1471_v55  ;;  %1204 = vperm.xlu2 %4941, %v6118_v22   ;;  %v6232_v7 = vpop.permute.xlu2 %1386  ;;  %v8551_v29 = vld [vmem:[#allocation24_spill] sm:$0xff] }
 0x1e8   :  { %1895 = vmatmul.bf16.gmra.mxu2 %v1769_v11  ;;  %v322_v11 = vmul.f32 %v5640_v25, %v8551_v29 }
 0x1e9   :  { %v1701_v42 = vadd.f32 %v5915_v23, %v1665_v52  ;;  %v678_v52 = vmul.f32 %v5645_v40, %v6103_v14  ;;  %v1066_v40 = vmul.f32 %v5669_v51, %v6221_v17 }
 0x1ea   :  { %v516_v10 = vadd.f32 %v484_v15, %v322_v11 }
 0x1eb   :  { %v1733_v30 = vmax.f32 %v1701_v42, 0.0 }
 0x1ec   :  { %v6240_v26 = vpop.permute.xlu1 %360  ;;  %v710_v25 = vadd.f32 %v678_v52, %v516_v10 }
 0x1ed   :  { %v1762_v41 = vpack.c.bf16 %v1733_v30, %v1732_v31 }
 0x1ee   :  { %v904_v31 = vadd.f32 %v872_v33, %v710_v25  ;;  %v6331_v33 = vld [vmem:[%s8437_s1] ss:$0 sm:$0xff] }
 0x1ef   :  { %4942 = vset.pattern.permute.xlu1 %v8499_v50  ;;  %4943 = vset.pattern.permute.xlu2 %v8500_v44  ;;  %v8553_v25 = vld [vmem:[#allocation23_spill] sm:$0xff] }
 0x1f0   :  { %1860 = vmatmul.bf16.gmra.mxu0 %v1762_v41  ;;  %566 = vperm.xlu1 %4942, %v6207_v60   ;;  %v6248_v21 = vpop.permute.xlu2 %752  ;;  %v8552_v41 = vld [vmem:[#allocation53_spill] sm:$0xff] }
 0x1f1   :  { %1394 = vperm.xlu2 %4943, %v6165_v4  }
 0x1f5   :  { %v1197_v63 = vpop.permute.xlu1 %1196 }
 0x1f6   :  { %v1261_v61 = vmul.f32 %v5684_v45, %v1197_v63 }
 0x1f8   :  { %v1293_v62 = vadd.f32 %v1261_v61, %v1099_v19  ;;  %4944 = vset.pattern.permute.xlu1 %v8500_v44  ;;  %v6302_v61 = vld [vmem:[%s8436_s0 + $0xc8] sm:$0xff] }
 0x1f9   :  { %4945 = vset.pattern.permute.xlu2 %v8503_v49  ;;  %1398 = vperm.xlu1 %4944, %v6118_v22   ;;  %v1585_v57 = vpop.permute.xlu2 %1584 }
 0x1fa   :  { %756 = vperm.xlu2 %4945, %v6199_v2   ;;  %v1487_v32 = vadd.f32 %v1455_v47, %v1293_v62  ;;  %v1649_v48 = vmul.f32 %v5892_v53, %v1585_v57 }
 0x1fc   :  { %v1681_v16 = vadd.f32 %v1649_v48, %v1487_v32  ;;  %v8554_v48 = vld [vmem:[#allocation22_spill] sm:$0xff] }
 0x1fe   :  { %v1891_v35 = vpop.f32.mrf.mxu2  ;;  %v6261_v55 = vpop.permute.xlu1 %558  ;;  %v1717_v19 = vadd.f32 %v5915_v23, %v1681_v16 }
 0x1ff   :  { %v1892_v14 = vadd.f32 %v6270_v3, %v1891_v35  ;;  %v6315_v35 = vld [vmem:[%s8436_s0 + $0xc0] sm:$0xff] }
 0x200   :  { %v1749_v57 = vmax.f32 %v1717_v19, 0.0 }
 0x201   :  { %4947 = vset.pattern.permute.xlu1 %v8506_v28  ;;  %v1947_v8 = vmax.f32 %v1892_v14, 0.0  ;;  %v6338_v14 = vld [vmem:[%s8437_s1 + $0x1] ss:$0 sm:$0xff] }
 0x202   :  { %4948 = vset.pattern.permute.xlu2 %v8506_v28  ;;  %1588 = vperm.xlu1 %4947, %v6165_v4   ;;  %v6278_v58 = vpop.permute.xlu2 %424  ;;  %v1260_v4 = vmul.f32 %v5684_v45, %v8552_v41  ;;  %v1454_v45 = vmul.f32 %v5677_v37, %v6232_v7 }
 0x203   :  { %1592 = vperm.xlu2 %4948, %v6118_v22   ;;  %v1098_v22 = vadd.f32 %v1066_v40, %v904_v31  ;;  %v308_v40 = vmul.f32 %v6331_v33, %v8553_v25 }
 0x205   :  { %v1292_v17 = vadd.f32 %v1260_v4, %v1098_v22  ;;  %v471_v4 = vmul.f32 %v6338_v14, %v6173_v20  ;;  %v6360_v22 = vld [vmem:[%s8437_s1 + $0x3] ss:$0 sm:$0xff]  ;;  %v6371_v20 = vld [vmem:[%s8437_s1 + $0x4] ss:$0 sm:$0xff] }
 0x206   :  { %v1893_v42 = vpop.f32.mrf.mxu2  ;;  %v1052_v16 = vmul.f32 %v6371_v20, %v5930_v34 }
 0x207   :  { %v1894_v30 = vadd.f32 %v6270_v3, %v1893_v42  ;;  %v749_v12 = vpop.permute.xlu1 %748  ;;  %v1486_v63 = vadd.f32 %v1454_v45, %v1292_v17 }
 0x209   :  { %v1948_v13 = vmax.f32 %v1894_v30, 0.0  ;;  %v6351_v30 = vld [vmem:[%s8437_s1 + $0x2] ss:$0 sm:$0xff] }
 0x20a   :  { %4949 = vset.pattern.permute.xlu1 %v8502_v59  ;;  %v664_v41 = vmul.f32 %v6351_v30, %v6210_v0  ;;  %v665_v17 = vmul.f32 %v6351_v30, %v6261_v55 }
 0x20b   :  { %4950 = vset.pattern.permute.xlu2 %v8502_v59  ;;  %950 = vperm.xlu1 %4949, %v6199_v2   ;;  %v1971_v51 = vpack.c.bf16 %v1948_v13, %v1947_v8  ;;  %v6291_v43 = vpop.permute.xlu2 %1136  ;;  %v858_v8 = vmul.f32 %v6360_v22, %v749_v12 }
 0x20c   :  { %954 = vperm.xlu2 %4950, %v6207_v60  }
 0x20d   :  { %2094 = vmatmul.bf16.vlgmr.msra.gmra.mxu3 %v1971_v51  ;;  %v309_v51 = vmul.f32 %v6331_v33, %v8554_v48 }
 0x20f   :  { %v503_v12 = vadd.f32 %v471_v4, %v309_v51 }
 0x210   :  { %v1581_v36 = vpop.permute.xlu1 %1580 }
 0x211   :  { %v1648_v24 = vmul.f32 %v5892_v53, %v1581_v36  ;;  %v697_v19 = vadd.f32 %v665_v17, %v503_v12 }
 0x213   :  { %v1680_v47 = vadd.f32 %v1648_v24, %v1486_v63  ;;  %4951 = vset.pattern.permute.xlu1 %v8510_v5 }
 0x214   :  { %4952 = vset.pattern.permute.xlu2 %v8497_v54  ;;  %436 = vperm.xlu1 %4951, %v6302_v61   ;;  %v6306_v37 = vpop.permute.xlu2 %622 }
 0x215   :  { %1144 = vperm.xlu2 %4952, %v6199_v2   ;;  %v1716_v7 = vadd.f32 %v5915_v23, %v1680_v47  ;;  %v859_v47 = vmul.f32 %v6360_v22, %v6248_v21  ;;  %v6395_v21 = vld [vmem:[%s8437_s1 + $0x6] ss:$0 sm:$0xff] }
 0x217   :  { %v1748_v62 = vmax.f32 %v1716_v7, 0.0 }
 0x219   :  { %v947_v32 = vpop.permute.xlu1 %946  ;;  %v1770_v15 = vpack.c.bf16 %v1749_v57, %v1748_v62  ;;  %v6387_v57 = vld [vmem:[%s8437_s1 + $0x5] ss:$0 sm:$0xff] }
 0x21b   :  { %1900 = vmatmul.bf16.gmra.mxu2 %v1770_v15  ;;  %v1246_v15 = vmul.f32 %v6387_v57, %v6291_v43 }
 0x21c   :  { %4953 = vset.pattern.permute.xlu1 %v8497_v54 }
 0x21d   :  { %4954 = vset.pattern.permute.xlu2 %v8499_v50  ;;  %1148 = vperm.xlu1 %4953, %v6207_v60   ;;  %v6318_v29 = vpop.permute.xlu2 %1334 }
 0x21e   :  { %626 = vperm.xlu2 %4954, %v6315_v35  }
 0x222   :  { %v6320_v11 = vpop.permute.xlu1 %428 }
 0x225   :  { %4956 = vset.pattern.permute.xlu1 %v8500_v44 }
 0x226   :  { %4957 = vset.pattern.permute.xlu2 %v8500_v44  ;;  %1338 = vperm.xlu1 %4956, %v6199_v2   ;;  %v1525_v52 = vpop.permute.xlu2 %1524  ;;  %v470_v2 = vmul.f32 %v6338_v14, %v6240_v26 }
 0x227   :  { %1342 = vperm.xlu2 %4957, %v6207_v60   ;;  %v1634_v43 = vmul.f32 %v5892_v53, %v1525_v52 }
 0x228   :  { %v502_v26 = vadd.f32 %v470_v2, %v308_v40  ;;  %v891_v40 = vadd.f32 %v859_v47, %v697_v19 }
 0x22a   :  { %v696_v45 = vadd.f32 %v664_v41, %v502_v26  ;;  %v8555_v41 = vld [vmem:[#allocation55_spill] sm:$0xff] }
 0x22b   :  { %v6326_v10 = vpop.permute.xlu1 %618  ;;  %v1247_v26 = vmul.f32 %v6387_v57, %v8555_v41 }
 0x22c   :  { %v890_v63 = vadd.f32 %v858_v8, %v696_v45  ;;  %v1441_v45 = vmul.f32 %v6395_v21, %v6318_v29 }
 0x22e   :  { %4958 = vset.pattern.permute.xlu1 %v8503_v49  ;;  %v1084_v62 = vadd.f32 %v1052_v16, %v890_v63 }
 0x22f   :  { %4959 = vset.pattern.permute.xlu2 %v8503_v49  ;;  %v1851_v42 = vpop.f32.mrf.mxu0  ;;  %820 = vperm.xlu1 %4958, %v6315_v35   ;;  %v6346_v31 = vpop.permute.xlu2 %1006 }
 0x230   :  { %824 = vperm.xlu2 %4959, %v6302_v61   ;;  %v1852_v0 = vadd.f32 %v6270_v3, %v1851_v42  ;;  %v1278_v4 = vadd.f32 %v1246_v15, %v1084_v62 }
 0x232   :  { %v1931_v34 = vmax.f32 %v1852_v0, 0.0 }
 0x235   :  { %v1331_v13 = vpop.permute.xlu1 %1330 }
 0x236   :  { %v1440_v2 = vmul.f32 %v6395_v21, %v1331_v13  ;;  %v6407_v13 = vld [vmem:[%s8436_s0 + $0x50] sm:$0xff] }
 0x237   :  { %v1853_v36 = vpop.f32.mrf.mxu0  ;;  %4960 = vset.pattern.permute.xlu1 %v8506_v28 }
 0x238   :  { %4961 = vset.pattern.permute.xlu2 %v8502_v59  ;;  %v1854_v55 = vadd.f32 %v6270_v3, %v1853_v36  ;;  %1536 = vperm.xlu1 %4960, %v6207_v60   ;;  %v6380_v24 = vpop.permute.xlu2 %372  ;;  %v1053_v60 = vmul.f32 %v6371_v20, %v947_v32  ;;  %v1472_v32 = vadd.f32 %v1440_v2, %v1278_v4  ;;  %v6433_v2 = vld [vmem:[%s8436_s0 + $0x58] sm:$0xff] }
 0x239   :  { %1014 = vperm.xlu2 %4961, %v6315_v35  }
 0x23a   :  { %v1932_v7 = vmax.f32 %v1854_v55, 0.0  ;;  %v1085_v8 = vadd.f32 %v1053_v60, %v891_v40  ;;  %v1666_v0 = vadd.f32 %v1634_v43, %v1472_v32  ;;  %v8557_v43 = vld [vmem:[#allocation26_spill] sm:$0xff] }
 0x23b   :  { %v311_v32 = vmul.f32 %v6331_v33, %v8557_v43 }
 0x23c   :  { %v1963_v25 = vpack.c.bf16 %v1932_v7, %v1931_v34  ;;  %v1279_v17 = vadd.f32 %v1247_v26, %v1085_v8  ;;  %v1702_v19 = vadd.f32 %v5915_v23, %v1666_v0  ;;  %v487_v26 = vmul.f32 %v6338_v14, %v6320_v11  ;;  %v8556_v8 = vld [vmem:[#allocation27_spill] sm:$0xff] }
 0x23d   :  { %v473_v11 = vmul.f32 %v6338_v14, %v6380_v24  ;;  %v486_v0 = vmul.f32 %v6338_v14, %v6278_v58  ;;  %v1069_v58 = vmul.f32 %v6371_v20, %v5941_v6  ;;  %v1068_v6 = vmul.f32 %v6371_v20, %v6346_v31  ;;  %v6489_v31 = vld [vmem:[%s8437_s1 + $0x7] ss:$0 sm:$0xff] }
 0x23e   :  { %v817_v42 = vpop.permute.xlu1 %816  ;;  %2054 = vmatmul.bf16.vlgmr.msra.gmra.mxu1 %v1963_v25  ;;  %v1473_v36 = vadd.f32 %v1441_v45, %v1279_v17  ;;  %v1734_v15 = vmax.f32 %v1702_v19, 0.0  ;;  %v681_v17 = vmul.f32 %v6351_v30, %v6306_v37 }
 0x23f   :  { %v1856_v48 = vpop.f32.mrf.mxu0  ;;  %v505_v37 = vadd.f32 %v473_v11, %v311_v32 }
 0x240   :  { %4962 = vset.pattern.permute.xlu1 %v8502_v59  ;;  %v1857_v16 = vadd.f32 %v6270_v3, %v1856_v48  ;;  %v325_v48 = vmul.f32 %v6331_v33, %v8556_v8 }
 0x241   :  { %4963 = vset.pattern.permute.xlu2 %v8510_v5  ;;  %1018 = vperm.xlu1 %4962, %v6302_v61   ;;  %v6410_v51 = vpop.permute.xlu2 %1204 }
 0x242   :  { %376 = vperm.xlu2 %4963, %v6407_v13   ;;  %v1933_v34 = vmax.f32 %v1857_v16, 0.0  ;;  %v519_v45 = vadd.f32 %v487_v26, %v325_v48  ;;  %v8558_v16 = vld [vmem:[#allocation33_spill] sm:$0xff] }
 0x247   :  { %v1529_v52 = vpop.permute.xlu1 %1528  ;;  %v1858_v63 = vpop.f32.mrf.mxu0 }
 0x248   :  { %v1635_v12 = vmul.f32 %v5892_v53, %v1529_v52  ;;  %v1859_v55 = vadd.f32 %v6270_v3, %v1858_v63  ;;  %v324_v52 = vmul.f32 %v6331_v33, %v8558_v16  ;;  %v8559_v63 = vld [vmem:[#allocation44_spill] sm:$0xff] }
 0x249   :  { %4964 = vset.pattern.permute.xlu1 %v8497_v54 }
 0x24a   :  { %v1667_v47 = vadd.f32 %v1635_v12, %v1473_v36  ;;  %4965 = vset.pattern.permute.xlu2 %v8497_v54  ;;  %v1934_v7 = vmax.f32 %v1859_v55, 0.0  ;;  %1208 = vperm.xlu1 %4964, %v6315_v35   ;;  %v680_v36 = vmul.f32 %v6351_v30, %v6326_v10  ;;  %v861_v55 = vmul.f32 %v6360_v22, %v8559_v63 }
 0x24b   :  { %1212 = vperm.xlu2 %4965, %v6302_v61   ;;  %v6422_v29 = vpop.permute.xlu2 %1394  ;;  %v518_v24 = vadd.f32 %v486_v0, %v324_v52 }
 0x24c   :  { %v1703_v53 = vadd.f32 %v5915_v23, %v1667_v47  ;;  %v1964_v62 = vpack.c.bf16 %v1934_v7, %v1933_v34  ;;  %v713_v47 = vadd.f32 %v681_v17, %v519_v45  ;;  %v8560_v7 = vld [vmem:[#allocation43_spill] sm:$0xff]  ;;  %v1456_v0 = vmul.f32 %v6395_v21, %v6422_v29 }
 0x24d   :  { %v8561_v29 = vmov 0  }
 0x24e   :  { %v1735_v60 = vmax.f32 %v1703_v53, 0.0  ;;  %2059 = vmatmul.bf16.gmra.mxu1 %v1964_v62  ;;  %v874_v53 = vmul.f32 %v6360_v22, %v8560_v7  ;;  %v712_v62 = vadd.f32 %v680_v36, %v518_v24 }
 0x250   :  { %v6425_v25 = vpop.permute.xlu1 %368  ;;  %v1763_v40 = vpack.c.bf16 %v1735_v60, %v1734_v15  ;;  %v906_v26 = vadd.f32 %v874_v53, %v712_v62  ;;  %v6504_v53 = vld [vmem:[%s8436_s0 + $0xd8] sm:$0xff]  ;;  %v6510_v62 = vld [vmem:[%s8436_s0 + $0xd0] sm:$0xff] }
 0x252   :  { %1865 = vmatmul.bf16.gmra.mxu0 %v1763_v40  ;;  %4966 = vset.pattern.permute.xlu1 %v8499_v50  ;;  %v1263_v40 = vmul.f32 %v6387_v57, %v6410_v51  ;;  %v1100_v45 = vadd.f32 %v1068_v6, %v906_v26 }
 0x253   :  { %4967 = vset.pattern.permute.xlu2 %v8499_v50  ;;  %570 = vperm.xlu1 %4966, %v6407_v13  }
 0x254   :  { %574 = vperm.xlu2 %4967, %v6433_v2   ;;  %v6436_v23 = vpop.permute.xlu2 %756 }
 0x259   :  { %v1201_v41 = vpop.permute.xlu1 %1200 }
 0x25b   :  { %4968 = vset.pattern.permute.xlu1 %v8500_v44 }
 0x25c   :  { %4969 = vset.pattern.permute.xlu2 %v8503_v49  ;;  %1406 = vperm.xlu1 %4968, %v6302_v61   ;;  %v875_v61 = vmul.f32 %v6360_v22, %v817_v42 }
 0x25d   :  { %764 = vperm.xlu2 %4969, %v6407_v13   ;;  %v1593_v4 = vpop.permute.xlu2 %1592 }
 0x25e   :  { %v907_v42 = vadd.f32 %v875_v61, %v713_v47 }
 0x260   :  { %v1101_v60 = vadd.f32 %v1069_v58, %v907_v42 }
 0x262   :  { %v567_v12 = vpop.permute.xlu1 %566  ;;  %v1295_v17 = vadd.f32 %v1263_v40, %v1101_v60  ;;  %v6513_v40 = vld [vmem:[#allocation2] ss:$0 sm:$0xff] }
 0x263   :  { %v667_v19 = vmul.f32 %v6351_v30, %v567_v12 }
 0x264   :  { %4970 = vset.pattern.permute.xlu1 %v8503_v49 }
 0x265   :  { %4971 = vset.pattern.permute.xlu2 %v8506_v28  ;;  %v699_v34 = vadd.f32 %v667_v19, %v505_v37  ;;  %768 = vperm.xlu1 %4970, %v6433_v2  }
 0x266   :  { %1596 = vperm.xlu2 %4971, %v6315_v35   ;;  %v6468_v10 = vpop.permute.xlu2 %954  ;;  %v1262_v35 = vmul.f32 %v6387_v57, %v1201_v41  ;;  %v1651_v41 = vmul.f32 %v6489_v31, %v1593_v4 }
 0x267   :  { %v6472_v15 = vadd.f32 %v861_v55, %v699_v34 }
 0x268   :  { %v1294_v61 = vadd.f32 %v1262_v35, %v1100_v45 }
 0x26a   :  { %v1488_v37 = vadd.f32 %v1456_v0, %v1294_v61  ;;  %v472_v61 = vmul.f32 %v6338_v14, %v6425_v25 }
 0x26b   :  { %v1896_v8 = vpop.f32.mrf.mxu2  ;;  %v1399_v48 = vpop.permute.xlu1 %1398 }
 0x26c   :  { %v1457_v43 = vmul.f32 %v6395_v21, %v1399_v48  ;;  %v1897_v16 = vadd.f32 %v6270_v3, %v1896_v8 }
 0x26d   :  { %v1861_v32 = vpop.f32.mrf.mxu0  ;;  %4972 = vset.pattern.permute.xlu1 %v8502_v59 }
 0x26e   :  { %4973 = vset.pattern.permute.xlu2 %v8502_v59  ;;  %958 = vperm.xlu1 %4972, %v6407_v13   ;;  %v1489_v11 = vadd.f32 %v1457_v43, %v1295_v17  ;;  %v1862_v52 = vadd.f32 %v6270_v3, %v1861_v32  ;;  %v1949_v19 = vmax.f32 %v1897_v16, 0.0 }
 0x26f   :  { %962 = vperm.xlu2 %4973, %v6433_v2   ;;  %v6484_v51 = vpop.permute.xlu2 %1144 }
 0x270   :  { %v1683_v12 = vadd.f32 %v1651_v41, %v1489_v11  ;;  %v1935_v42 = vmax.f32 %v1862_v52, 0.0  ;;  %v1533_v52 = vpop.permute.xlu0 %1532 }
 0x272   :  { %v1719_v26 = vadd.f32 %v6513_v40, %v1683_v12 }
 0x273   :  { %v1898_v36 = vpop.f32.mrf.mxu2 }
 0x274   :  { %v1899_v63 = vadd.f32 %v6270_v3, %v1898_v36  ;;  %v1589_v55 = vpop.permute.xlu1 %1588  ;;  %v1751_v43 = vmax.f32 %v1719_v26, 0.0  ;;  %v8562_v36 = vld [vmem:[#allocation19_spill] sm:$0xff] }
 0x275   :  { %v1863_v47 = vpop.f32.mrf.mxu0  ;;  %v1650_v4 = vmul.f32 %v6489_v31, %v1589_v55  ;;  %v310_v12 = vmul.f32 %v6331_v33, %v8562_v36 }
 0x276   :  { %v1950_v24 = vmax.f32 %v1899_v63, 0.0  ;;  %v1864_v58 = vadd.f32 %v6270_v3, %v1863_v47  ;;  %4974 = vset.pattern.permute.xlu1 %v8561_v29  ;;  %v8563_v63 = vld [vmem:[#allocation47_spill] sm:$0xff] }
 0x277   :  { %4975 = vset.pattern.permute.xlu2 %v8510_v5  ;;  %v1682_v34 = vadd.f32 %v1650_v4, %v1488_v37  ;;  %278 = vperm.xlu1 %4974, %v6504_v53   ;;  %v666_v55 = vmul.f32 %v6351_v30, %v8563_v63  ;;  %v504_v37 = vadd.f32 %v472_v61, %v310_v12 }
 0x278   :  { %v1936_v7 = vmax.f32 %v1864_v58, 0.0  ;;  %440 = vperm.xlu2 %4975, %v6510_v62   ;;  %v1972_v60 = vpack.c.bf16 %v1950_v24, %v1949_v19  ;;  %v6516_v6 = vpop.permute.xlu2 %626  ;;  %v860_v19 = vmul.f32 %v6360_v22, %v6436_v23  ;;  %v6552_v4 = vpop.permute.xlu0 %1600 }
 0x279   :  { %v1718_v48 = vadd.f32 %v6513_v40, %v1682_v34  ;;  %v698_v25 = vadd.f32 %v666_v55, %v504_v37  ;;  %v1248_v34 = vmul.f32 %v6387_v57, %v6484_v51 }
 0x27a   :  { %2099 = vmatmul.bf16.gmra.mxu3 %v1972_v60  ;;  %v1965_v8 = vpack.c.bf16 %v1936_v7, %v1935_v42  ;;  %v1055_v7 = vmul.f32 %v6371_v20, %v6468_v10 }
 0x27b   :  { %v1750_v35 = vmax.f32 %v1718_v48, 0.0  ;;  %v892_v58 = vadd.f32 %v860_v19, %v698_v25  ;;  %v6581_v19 = vld [vmem:[%s8436_s0 + $0x68] sm:$0xff] }
 0x27c   :  { %2064 = vmatmul.bf16.gmra.mxu1 %v1965_v8  ;;  %v1087_v51 = vadd.f32 %v1055_v7, %v6472_v15 }
 0x27d   :  { %v951_v32 = vpop.permute.xlu1 %950  ;;  %v1771_v17 = vpack.c.bf16 %v1751_v43, %v1750_v35  ;;  %v1636_v35 = vmul.f32 %v6489_v31, %v1533_v52 }
 0x27f   :  { %4976 = vset.pattern.permute.xlu1 %v8497_v54  ;;  %1905 = vmatmul.bf16.gmra.mxu2 %v1771_v17 }
 0x280   :  { %4977 = vset.pattern.permute.xlu2 %v8497_v54  ;;  %1152 = vperm.xlu1 %4976, %v6407_v13  }
 0x281   :  { %v1343_v45 = vpop.permute.xlu2 %1342  ;;  %1156 = vperm.xlu2 %4977, %v6433_v2  }
 0x286   :  { %v6523_v41 = vpop.permute.xlu1 %436 }
 0x288   :  { %4978 = vset.pattern.permute.xlu1 %v8499_v50 }
 0x289   :  { %4979 = vset.pattern.permute.xlu2 %v8499_v50  ;;  %634 = vperm.xlu1 %4978, %v6510_v62  }
 0x28a   :  { %v6528_v11 = vpop.permute.xlu2 %824  ;;  %638 = vperm.xlu2 %4979, %v6504_v53  }
 0x28f   :  { %v1149_v0 = vpop.permute.xlu1 %1148 }
 0x290   :  { %v1249_v8 = vmul.f32 %v6387_v57, %v1149_v0  ;;  %v1443_v0 = vmul.f32 %v6395_v21, %v1343_v45 }
 0x291   :  { %4980 = vset.pattern.permute.xlu1 %v8500_v44 }
 0x292   :  { %4981 = vset.pattern.permute.xlu2 %v8503_v49  ;;  %1350 = vperm.xlu1 %4980, %v6433_v2   ;;  %v1054_v2 = vmul.f32 %v6371_v20, %v951_v32  ;;  %v6569_v32 = vpop.permute.xlu0 %1544  ;;  %v1281_v61 = vadd.f32 %v1249_v8, %v1087_v51  ;;  %v682_v51 = vmul.f32 %v6351_v30, %v6516_v6 }
 0x293   :  { %v6536_v16 = vpop.permute.xlu2 %1014  ;;  %828 = vperm.xlu2 %4981, %v6510_v62  }
 0x294   :  { %v1086_v23 = vadd.f32 %v1054_v2, %v892_v58  ;;  %v1475_v15 = vadd.f32 %v1443_v0, %v1281_v61  ;;  %v714_v61 = vadd.f32 %v682_v51, %v6062_v46  ;;  %v877_v46 = vmul.f32 %v6360_v22, %v6528_v11 }
 0x296   :  { %v1280_v48 = vadd.f32 %v1248_v34, %v1086_v23 }
 0x298   :  { %v1339_v47 = vpop.permute.xlu1 %1338 }
 0x299   :  { %v1442_v60 = vmul.f32 %v6395_v21, %v1339_v47 }
 0x29a   :  { %4982 = vset.pattern.permute.xlu1 %v8503_v49 }
 0x29b   :  { %4983 = vset.pattern.permute.xlu2 %v8506_v28  ;;  %832 = vperm.xlu1 %4982, %v6504_v53   ;;  %v1474_v43 = vadd.f32 %v1442_v60, %v1280_v48 }
 0x29c   :  { %1540 = vperm.xlu2 %4983, %v6407_v13   ;;  %v6550_v24 = vpop.permute.xlu2 %376 }
 0x29d   :  { %v1668_v12 = vadd.f32 %v1636_v35, %v1474_v43  ;;  %v489_v43 = vmul.f32 %v6338_v14, %v6523_v41 }
 0x29e   :  { %v1901_v42 = vpop.f32.mrf.mxu2 }
 0x29f   :  { %v1902_v10 = vadd.f32 %v6270_v3, %v1901_v42  ;;  %v1704_v45 = vadd.f32 %v6513_v40, %v1668_v12  ;;  %v6587_v42 = vpop.permute.xlu0 %1552 }
 0x2a1   :  { %v821_v26 = vpop.permute.xlu1 %820  ;;  %v1951_v63 = vmax.f32 %v1902_v10, 0.0  ;;  %v1736_v34 = vmax.f32 %v1704_v45, 0.0 }
 0x2a2   :  { %v876_v10 = vmul.f32 %v6360_v22, %v821_v26  ;;  %v1070_v26 = vmul.f32 %v6371_v20, %v6536_v16 }
 0x2a3   :  { %4984 = vset.pattern.permute.xlu1 %v8502_v59 }
 0x2a4   :  { %4985 = vset.pattern.permute.xlu2 %v8502_v59  ;;  %1022 = vperm.xlu1 %4984, %v6510_v62  }
 0x2a5   :  { %v6563_v13 = vpop.permute.xlu2 %1212  ;;  %1026 = vperm.xlu2 %4985, %v6504_v53  }
 0x2a6   :  { %v1903_v17 = vpop.f32.mrf.mxu2  ;;  %v1265_v11 = vmul.f32 %v6387_v57, %v6563_v13 }
 0x2a7   :  { %v1904_v36 = vadd.f32 %v6270_v3, %v1903_v17  ;;  %v6595_v48 = vpop.permute.xlu0 %1560  ;;  %v8564_v17 = vld [vmem:[#allocation35_spill] sm:$0xff] }
 0x2a8   :  { %v327_v0 = vmul.f32 %v6331_v33, %v8564_v17 }
 0x2a9   :  { %v1952_v55 = vmax.f32 %v1904_v36, 0.0  ;;  %v8565_v36 = vld [vmem:[#allocation48_spill] sm:$0xff] }
 0x2aa   :  { %v1537_v37 = vpop.permute.xlu1 %1536  ;;  %v683_v12 = vmul.f32 %v6351_v30, %v8565_v36  ;;  %v521_v41 = vadd.f32 %v489_v43, %v327_v0  ;;  %v1653_v43 = vmul.f32 %v6489_v31, %v6552_v4 }
 0x2ab   :  { %v1637_v52 = vmul.f32 %v6489_v31, %v1537_v37  ;;  %v1973_v47 = vpack.c.bf16 %v1952_v55, %v1951_v63  ;;  %v908_v63 = vadd.f32 %v876_v10, %v714_v61 }
 0x2ac   :  { %4986 = vset.pattern.permute.xlu1 %v8510_v5 }
 0x2ad   :  { %v1669_v25 = vadd.f32 %v1637_v52, %v1475_v15  ;;  %4987 = vset.pattern.permute.xlu2 %v8510_v5  ;;  %384 = vperm.xlu1 %4986, %v6094_v18   ;;  %v715_v15 = vadd.f32 %v683_v12, %v521_v41  ;;  %v1102_v52 = vadd.f32 %v1070_v26, %v908_v63 }
 0x2ae   :  { %388 = vperm.xlu2 %4987, %v6581_v19   ;;  %v6584_v2 = vpop.permute.xlu2 %574  ;;  %2104 = vmatmul.bf16.gmra.mxu3 %v1973_v47 }
 0x2af   :  { %v1705_v58 = vadd.f32 %v6513_v40, %v1669_v25  ;;  %v1403_v37 = vpop.permute.xlu0 %1402  ;;  %v909_v16 = vadd.f32 %v877_v46, %v715_v15 }
 0x2b1   :  { %v1737_v23 = vmax.f32 %v1705_v58, 0.0  ;;  %v1458_v58 = vmul.f32 %v6395_v21, %v1403_v37 }
 0x2b3   :  { %v1019_v7 = vpop.permute.xlu1 %1018  ;;  %v1764_v60 = vpack.c.bf16 %v1737_v23, %v1736_v34 }
 0x2b4   :  { %v1071_v25 = vmul.f32 %v6371_v20, %v1019_v7 }
 0x2b5   :  { %4988 = vset.pattern.permute.xlu1 %v8497_v54  ;;  %1870 = vmatmul.bf16.gmra.mxu0 %v1764_v60 }
 0x2b6   :  { %4989 = vset.pattern.permute.xlu2 %v8499_v50  ;;  %1220 = vperm.xlu1 %4988, %v6504_v53   ;;  %v1103_v23 = vadd.f32 %v1071_v25, %v909_v16  ;;  %v491_v16 = vmul.f32 %v6338_v14, %v6086_v38 }
 0x2b7   :  { %v6592_v8 = vpop.permute.xlu2 %764  ;;  %578 = vperm.xlu2 %4989, %v6094_v18  }
 0x2b8   :  { %v1297_v17 = vadd.f32 %v1265_v11, %v1103_v23 }
 0x2bc   :  { %v1209_v35 = vpop.permute.xlu1 %1208 }
 0x2bd   :  { %v1264_v55 = vmul.f32 %v6387_v57, %v1209_v35 }
 0x2be   :  { %4990 = vset.pattern.permute.xlu1 %v8499_v50 }
 0x2bf   :  { %4991 = vset.pattern.permute.xlu2 %v8500_v44  ;;  %582 = vperm.xlu1 %4990, %v6581_v19   ;;  %v1296_v45 = vadd.f32 %v1264_v55, %v1102_v52 }
 0x2c0   :  { %1410 = vperm.xlu2 %4991, %v6510_v62   ;;  %v1597_v6 = vpop.permute.xlu2 %1596 }
 0x2c1   :  { %v1490_v60 = vadd.f32 %v1458_v58, %v1296_v45  ;;  %v1652_v7 = vmul.f32 %v6489_v31, %v1597_v6  ;;  %v6656_v45 = vld [vmem:[%s8436_s0 + $0xe8] sm:$0xff] }
 0x2c3   :  { %v1684_v10 = vadd.f32 %v1652_v7, %v1490_v60 }
 0x2c5   :  { %v6616_v47 = vpop.permute.xlu1 %570  ;;  %v1720_v61 = vadd.f32 %v6513_v40, %v1684_v10  ;;  %v8566_v10 = vld [vmem:[#allocation25_spill] sm:$0xff] }
 0x2c7   :  { %4992 = vset.pattern.permute.xlu1 %v8503_v49  ;;  %v1752_v63 = vmax.f32 %v1720_v61, 0.0  ;;  %v475_v61 = vmul.f32 %v6338_v14, %v6074_v56 }
 0x2c8   :  { %4993 = vset.pattern.permute.xlu2 %v8503_v49  ;;  %772 = vperm.xlu1 %4992, %v6094_v18  }
 0x2c9   :  { %776 = vperm.xlu2 %4993, %v6581_v19   ;;  %v6624_v34 = vpop.permute.xlu2 %962 }
 0x2ce   :  { %v1407_v51 = vpop.permute.xlu1 %1406 }
 0x2cf   :  { %v1866_v35 = vpop.f32.mrf.mxu0  ;;  %v1459_v18 = vmul.f32 %v6395_v21, %v1407_v51  ;;  %v5082_v51 = vld [vmem:[%s8436_s0 + $0x60] sm:$0xff] }
 0x2d0   :  { %4994 = vset.pattern.permute.xlu1 %v8506_v28  ;;  %v1867_v4 = vadd.f32 %v6270_v3, %v1866_v35 }
 0x2d1   :  { %v1491_v0 = vadd.f32 %v1459_v18, %v1297_v17  ;;  %4995 = vset.pattern.permute.xlu2 %v8506_v28  ;;  %1604 = vperm.xlu1 %4994, %v6510_v62   ;;  %v6648_v62 = vld [vmem:[%s8436_s0 + $0xe0] sm:$0xff]  ;;  %v312_v17 = vmul.f32 %v6331_v33, %v8566_v10  ;;  %v668_v18 = vmul.f32 %v6351_v30, %v6616_v47 }
 0x2d2   :  { %1608 = vperm.xlu2 %4995, %v6504_v53   ;;  %v6637_v6 = vpop.permute.xlu2 %440  ;;  %v1937_v37 = vmax.f32 %v1867_v4, 0.0  ;;  %v862_v4 = vmul.f32 %v6360_v22, %v6592_v8 }
 0x2d3   :  { %v1685_v13 = vadd.f32 %v1653_v43, %v1491_v0  ;;  %v474_v43 = vmul.f32 %v6338_v14, %v6550_v24 }
 0x2d5   :  { %v1721_v36 = vadd.f32 %v6513_v40, %v1685_v13  ;;  %v506_v13 = vadd.f32 %v474_v43, %v312_v17  ;;  %v1639_v17 = vmul.f32 %v6489_v31, %v6569_v32 }
 0x2d7   :  { %v1868_v12 = vpop.f32.mrf.mxu0  ;;  %v769_v41 = vpop.permute.xlu1 %768  ;;  %v1753_v55 = vmax.f32 %v1721_v36, 0.0  ;;  %v700_v36 = vadd.f32 %v668_v18, %v506_v13 }
 0x2d8   :  { %v1869_v26 = vadd.f32 %v6270_v3, %v1868_v12  ;;  %v8567_v12 = vld [vmem:[#allocation20_spill] sm:$0xff] }
 0x2d9   :  { %4996 = vset.pattern.permute.xlu1 %v8502_v59  ;;  %v1772_v53 = vpack.c.bf16 %v1753_v55, %v1752_v63  ;;  %v313_v47 = vmul.f32 %v6331_v33, %v8567_v12  ;;  %v863_v55 = vmul.f32 %v6360_v22, %v769_v41  ;;  %v894_v8 = vadd.f32 %v862_v4, %v700_v36 }
 0x2da   :  { %v1938_v15 = vmax.f32 %v1869_v26, 0.0  ;;  %4997 = vset.pattern.permute.xlu2 %v8561_v29  ;;  %970 = vperm.xlu1 %4996, %v6581_v19   ;;  %v669_v26 = vmul.f32 %v6351_v30, %v6584_v2 }
 0x2db   :  { %283 = vperm.xlu2 %4997, %v6648_v62   ;;  %1910 = vmatmul.bf16.gmra.mxu2 %v1772_v53  ;;  %v1157_v52 = vpop.permute.xlu2 %1156  ;;  %v507_v56 = vadd.f32 %v475_v61, %v313_v47  ;;  %v490_v47 = vmul.f32 %v6338_v14, %v6637_v6 }
 0x2dc   :  { %v1966_v46 = vpack.c.bf16 %v1938_v15, %v1937_v37  ;;  %v1347_v15 = vpop.permute.xlu0 %1346 }
 0x2dd   :  { %v701_v53 = vadd.f32 %v669_v26, %v507_v56 }
 0x2de   :  { %2069 = vmatmul.bf16.gmra.mxu1 %v1966_v46 }
 0x2e0   :  { %v959_v25 = vpop.permute.xlu1 %958 }
 0x2e1   :  { %v1056_v63 = vmul.f32 %v6371_v20, %v959_v25  ;;  %v1251_v25 = vmul.f32 %v6387_v57, %v1157_v52 }
 0x2e2   :  { %4998 = vset.pattern.permute.xlu1 %v8561_v29 }
 0x2e3   :  { %4999 = vset.pattern.permute.xlu2 %v8510_v5  ;;  %288 = vperm.xlu1 %4998, %v6656_v45   ;;  %v1088_v46 = vadd.f32 %v1056_v63, %v894_v8  ;;  %v8568_v8 = vld [vmem:[#allocation31_spill] sm:$0xff] }
 0x2e4   :  { %448 = vperm.xlu2 %4999, %v6648_v62   ;;  %v639_v58 = vpop.permute.xlu2 %638 }
 0x2e5   :  { %v685_v23 = vmul.f32 %v6351_v30, %v639_v58 }
 0x2e9   :  { %v279_v11 = vpop.permute.xlu1 %278 }
 0x2ea   :  { %v329_v60 = vmul.f32 %v6331_v33, %v279_v11  ;;  %v895_v11 = vadd.f32 %v863_v55, %v701_v53 }
 0x2eb   :  { %5000 = vset.pattern.permute.xlu1 %v8497_v54 }
 0x2ec   :  { %v523_v7 = vadd.f32 %v491_v16, %v329_v60  ;;  %5001 = vset.pattern.permute.xlu2 %v8497_v54  ;;  %1160 = vperm.xlu1 %5000, %v5082_v51   ;;  %v1057_v16 = vmul.f32 %v6371_v20, %v6624_v34  ;;  %v1444_v60 = vmul.f32 %v6395_v21, %v1347_v15 }
 0x2ed   :  { %1164 = vperm.xlu2 %5001, %v6581_v19   ;;  %v6670_v35 = vpop.permute.xlu2 %828 }
 0x2ee   :  { %v6672_v38 = vadd.f32 %v685_v23, %v523_v7  ;;  %v1089_v41 = vadd.f32 %v1057_v16, %v895_v11  ;;  %v878_v11 = vmul.f32 %v6360_v22, %v6670_v35  ;;  %v6743_v35 = vld [vmem:[%s8436_s0 + $0x78] sm:$0xff] }
 0x2f0   :  { %v1283_v18 = vadd.f32 %v1251_v25, %v1089_v41  ;;  %v8569_v25 = vld [vmem:[#allocation59_spill] sm:$0xff] }
 0x2f2   :  { %v1153_v0 = vpop.permute.xlu1 %1152 }
 0x2f3   :  { %v1250_v37 = vmul.f32 %v6387_v57, %v1153_v0 }
 0x2f4   :  { %5002 = vset.pattern.permute.xlu1 %v8499_v50 }
 0x2f5   :  { %5003 = vset.pattern.permute.xlu2 %v8499_v50  ;;  %642 = vperm.xlu1 %5002, %v6648_v62   ;;  %v1282_v23 = vadd.f32 %v1250_v37, %v1088_v46  ;;  %v328_v37 = vmul.f32 %v6331_v33, %v8568_v8 }
 0x2f6   :  { %646 = vperm.xlu2 %5003, %v6656_v45   ;;  %v1541_v24 = vpop.permute.xlu2 %1540 }
 0x2f7   :  { %v1476_v7 = vadd.f32 %v1444_v60, %v1282_v23  ;;  %v1638_v34 = vmul.f32 %v6489_v31, %v1541_v24  ;;  %v522_v16 = vadd.f32 %v490_v47, %v328_v37  ;;  %v1415_v37 = vpop.permute.xlu0 %1414 }
 0x2f9   :  { %v1670_v0 = vadd.f32 %v1638_v34, %v1476_v7  ;;  %v1266_v7 = vmul.f32 %v6387_v57, %v8569_v25 }
 0x2fb   :  { %v635_v58 = vpop.permute.xlu1 %634  ;;  %v1706_v4 = vadd.f32 %v6513_v40, %v1670_v0 }
 0x2fc   :  { %v684_v15 = vmul.f32 %v6351_v30, %v635_v58 }
 0x2fd   :  { %5004 = vset.pattern.permute.xlu1 %v8500_v44  ;;  %v1738_v63 = vmax.f32 %v1706_v4, 0.0 }
 0x2fe   :  { %5005 = vset.pattern.permute.xlu2 %v8503_v49  ;;  %1358 = vperm.xlu1 %5004, %v6581_v19   ;;  %v716_v23 = vadd.f32 %v684_v15, %v522_v16 }
 0x2ff   :  { %836 = vperm.xlu2 %5005, %v6648_v62   ;;  %v6702_v2 = vpop.permute.xlu2 %1026 }
 0x300   :  { %v910_v58 = vadd.f32 %v878_v11, %v716_v23 }
 0x302   :  { %v1906_v43 = vpop.f32.mrf.mxu2 }
 0x303   :  { %v1907_v36 = vadd.f32 %v6270_v3, %v1906_v43  ;;  %v6737_v43 = vld [vmem:[%s8436_s0 + $0x70] sm:$0xff] }
 0x304   :  { %v1351_v10 = vpop.permute.xlu1 %1350 }
 0x305   :  { %v1445_v13 = vmul.f32 %v6395_v21, %v1351_v10  ;;  %v1953_v55 = vmax.f32 %v1907_v36, 0.0 }
 0x306   :  { %5006 = vset.pattern.permute.xlu1 %v8503_v49 }
 0x307   :  { %v1477_v19 = vadd.f32 %v1445_v13, %v1283_v18  ;;  %5007 = vset.pattern.permute.xlu2 %v8506_v28  ;;  %840 = vperm.xlu1 %5006, %v6656_v45   ;;  %v6755_v13 = vld [vmem:[%s8436_s0 + $0xf0] sm:$0xff] }
 0x308   :  { %1548 = vperm.xlu2 %5007, %v5082_v51   ;;  %v6712_v61 = vpop.permute.xlu2 %388  ;;  %1426 = vperm.xlu0 %5035, %v6755_v13  }
 0x309   :  { %v1671_v52 = vadd.f32 %v1639_v17, %v1477_v19 }
 0x30a   :  { %v1908_v32 = vpop.f32.mrf.mxu2 }
 0x30b   :  { %v1707_v24 = vadd.f32 %v6513_v40, %v1671_v52  ;;  %v1909_v12 = vadd.f32 %v6270_v3, %v1908_v32 }
 0x30d   :  { %v833_v26 = vpop.permute.xlu1 %832  ;;  %v1739_v56 = vmax.f32 %v1707_v24, 0.0  ;;  %v1954_v51 = vmax.f32 %v1909_v12, 0.0  ;;  %v1073_v12 = vmul.f32 %v6371_v20, %v6702_v2 }
 0x30e   :  { %v879_v4 = vmul.f32 %v6360_v22, %v833_v26 }
 0x30f   :  { %5008 = vset.pattern.permute.xlu1 %v8502_v59  ;;  %v1765_v53 = vpack.c.bf16 %v1739_v56, %v1738_v63  ;;  %v1974_v46 = vpack.c.bf16 %v1954_v51, %v1953_v55  ;;  %v8570_v63 = vld [vmem:[#allocation29_spill] sm:$0xff] }
 0x310   :  { %5009 = vset.pattern.permute.xlu2 %v8502_v59  ;;  %1030 = vperm.xlu1 %5008, %v6648_v62   ;;  %v911_v47 = vadd.f32 %v879_v4, %v6672_v38  ;;  %v314_v56 = vmul.f32 %v6331_v33, %v8570_v63 }
 0x311   :  { %1034 = vperm.xlu2 %5009, %v6656_v45   ;;  %1875 = vmatmul.bf16.gmra.mxu0 %v1765_v53  ;;  %v579_v6 = vpop.permute.xlu2 %578  ;;  %v1461_v53 = vmul.f32 %v6395_v21, %v1415_v37 }
 0x312   :  { %2109 = vmatmul.bf16.gmra.mxu3 %v1974_v46  ;;  %5043 = vset.pattern.permute.xlu0 %v8506_v28  ;;  %v670_v51 = vmul.f32 %v6351_v30, %v579_v6  ;;  %v1105_v15 = vadd.f32 %v1073_v12, %v911_v47 }
 0x316   :  { %v1023_v60 = vpop.permute.xlu1 %1022 }
 0x317   :  { %v1072_v41 = vmul.f32 %v6371_v20, %v1023_v60  ;;  %v6784_v60 = vld [vmem:[%s8440_s4] ss:$0 sm:$0xff] }
 0x318   :  { %5010 = vset.pattern.permute.xlu1 %v8510_v5 }
 0x319   :  { %v1104_v34 = vadd.f32 %v1072_v41, %v910_v58  ;;  %5011 = vset.pattern.permute.xlu2 %v8510_v5  ;;  %392 = vperm.xlu1 %5010, %v6737_v43   ;;  %v1058_v58 = vmul.f32 %v6371_v20, %v5952_v1 }
 0x31a   :  { %396 = vperm.xlu2 %5011, %v6743_v35   ;;  %v1411_v10 = vpop.permute.xlu2 %1410 }
 0x31b   :  { %v1298_v17 = vadd.f32 %v1266_v7, %v1104_v34 }
 0x31f   :  { %v385_v18 = vpop.permute.xlu1 %384 }
 0x320   :  { %v476_v24 = vmul.f32 %v6338_v14, %v385_v18 }
 0x321   :  { %5013 = vset.pattern.permute.xlu1 %v8497_v54 }
 0x322   :  { %1228 = vperm.xlu1 %5013, %v6656_v45   ;;  %5014 = vset.pattern.permute.xlu2 %v8499_v50  ;;  %v508_v8 = vadd.f32 %v476_v24, %v314_v56 }
 0x323   :  { %586 = vperm.xlu2 %5014, %v6737_v43   ;;  %v6750_v0 = vpop.permute.xlu2 %776 }
 0x324   :  { %v702_v11 = vadd.f32 %v670_v51, %v508_v8  ;;  %v6810_v8 = vld [vmem:[%s8436_s0 + $0xf8] sm:$0xff] }
 0x328   :  { %v1221_v19 = vpop.permute.xlu1 %1220 }
 0x329   :  { %v1267_v55 = vmul.f32 %v6387_v57, %v1221_v19 }
 0x32a   :  { %5015 = vset.pattern.permute.xlu1 %v8499_v50 }
 0x32b   :  { %590 = vperm.xlu1 %5015, %v6743_v35   ;;  %5016 = vset.pattern.permute.xlu2 %v8500_v44  ;;  %v1299_v38 = vadd.f32 %v1267_v55, %v1105_v15  ;;  %v493_v15 = vmul.f32 %v6338_v14, %v6110_v9 }
 0x32c   :  { %1418 = vperm.xlu2 %5016, %v6648_v62   ;;  %v1609_v52 = vpop.permute.xlu2 %1608 }
 0x32d   :  { %v1655_v34 = vmul.f32 %v6489_v31, %v1609_v52 }
 0x331   :  { %v6764_v36 = vpop.permute.xlu1 %582 }
 0x332   :  { %v1871_v32 = vpop.f32.mrf.mxu0 }
 0x333   :  { %5017 = vset.pattern.permute.xlu1 %v8503_v49  ;;  %v1872_v2 = vadd.f32 %v6270_v3, %v1871_v32  ;;  %v1460_v32 = vmul.f32 %v6395_v21, %v1411_v10 }
 0x334   :  { %780 = vperm.xlu1 %5017, %v6737_v43   ;;  %5018 = vset.pattern.permute.xlu2 %v8503_v49 }
 0x335   :  { %784 = vperm.xlu2 %5018, %v6743_v35   ;;  %v284_v26 = vpop.permute.xlu2 %283  ;;  %v1939_v3 = vmax.f32 %v1872_v2, 0.0 }
 0x336   :  { %v330_v25 = vmul.f32 %v6331_v33, %v284_v26 }
 0x33a   :  { %v773_v46 = vpop.permute.xlu1 %772  ;;  %v1873_v16 = vpop.f32.mrf.mxu0 }
 0x33b   :  { %v864_v23 = vmul.f32 %v6360_v22, %v773_v46  ;;  %v1874_v6 = vadd.f32 %v6784_v60, %v1873_v16  ;;  %v1493_v22 = vadd.f32 %v1461_v53, %v1299_v38 }
 0x33c   :  { %5019 = vset.pattern.permute.xlu1 %v8506_v28 }
 0x33d   :  { %v896_v41 = vadd.f32 %v864_v23, %v702_v11  ;;  %v1940_v7 = vmax.f32 %v1874_v6, 0.0  ;;  %1612 = vperm.xlu1 %5019, %v6648_v62   ;;  %5020 = vset.pattern.permute.xlu2 %v8506_v28  ;;  %v1687_v12 = vadd.f32 %v1655_v34, %v1493_v22  ;;  %v1492_v62 = vadd.f32 %v1460_v32, %v1298_v17  ;;  %v6836_v11 = vld [vmem:[%s8437_s1] ss:$0 sm:$0xff]  ;;  %v8571_v23 = vld [vmem:[#allocation28_spill] sm:$0xff] }
 0x33e   :  { %1616 = vperm.xlu2 %5020, %v6656_v45   ;;  %v449_v18 = vpop.permute.xlu2 %448  ;;  %v315_v6 = vmul.f32 %v6836_v11, %v8571_v23  ;;  %v6894_v23 = vld [vmem:[%s8437_s1 + $0x4] ss:$0 sm:$0xff] }
 0x33f   :  { %v1967_v19 = vpack.c.bf16 %v1940_v7, %v1939_v3  ;;  %v492_v1 = vmul.f32 %v6338_v14, %v449_v18  ;;  %v1090_v4 = vadd.f32 %v1058_v58, %v896_v41  ;;  %v1723_v45 = vadd.f32 %v6513_v40, %v1687_v12  ;;  %v6847_v7 = vld [vmem:[%s8437_s1 + $0x3] ss:$0 sm:$0xff] }
 0x340   :  { %v671_v58 = vmul.f32 %v6351_v30, %v6764_v36  ;;  %v865_v22 = vmul.f32 %v6847_v7, %v6750_v0 }
 0x341   :  { %2074 = vmatmul.bf16.gmra.mxu1 %v1967_v19  ;;  %v6797_v24 = vadd.f32 %v492_v1, %v330_v25  ;;  %v1755_v55 = vmax.f32 %v1723_v45, 0.0  ;;  %v1641_v45 = vmul.f32 %v6489_v31, %v6587_v42 }
 0x343   :  { %v1605_v47 = vpop.permute.xlu1 %1604 }
 0x344   :  { %v1654_v63 = vmul.f32 %v6489_v31, %v1605_v47 }
 0x345   :  { %5022 = vset.pattern.permute.xlu1 %v8502_v59 }
 0x346   :  { %v1686_v52 = vadd.f32 %v1654_v63, %v1492_v62  ;;  %978 = vperm.xlu1 %5022, %v6743_v35   ;;  %5023 = vset.pattern.permute.xlu2 %v8561_v29 }
 0x347   :  { %293 = vperm.xlu2 %5023, %v6755_v13   ;;  %v1165_v10 = vpop.permute.xlu2 %1164 }
 0x348   :  { %v1722_v56 = vadd.f32 %v6513_v40, %v1686_v52  ;;  %v1253_v62 = vmul.f32 %v6387_v57, %v1165_v10 }
 0x34a   :  { %v1754_v26 = vmax.f32 %v1722_v56, 0.0 }
 0x34c   :  { %v971_v51 = vpop.permute.xlu1 %970  ;;  %v1773_v17 = vpack.c.bf16 %v1755_v55, %v1754_v26  ;;  %v6867_v26 = vld [vmem:[%s8437_s1 + $0x6] ss:$0 sm:$0xff] }
 0x34d   :  { %v1059_v19 = vmul.f32 %v6371_v20, %v971_v51 }
 0x34e   :  { %5024 = vset.pattern.permute.xlu1 %v8561_v29  ;;  %1915 = vmatmul.bf16.gmra.mxu2 %v1773_v17 }
 0x34f   :  { %298 = vperm.xlu1 %5024, %v6810_v8   ;;  %5025 = vset.pattern.permute.xlu2 %v8510_v5 }
 0x350   :  { %456 = vperm.xlu2 %5025, %v6755_v13   ;;  %v647_v37 = vpop.permute.xlu2 %646 }
 0x351   :  { %v687_v38 = vmul.f32 %v6351_v30, %v647_v37 }
 0x355   :  { %v289_v2 = vpop.permute.xlu1 %288 }
 0x356   :  { %v331_v29 = vmul.f32 %v6331_v33, %v289_v2  ;;  %v477_v33 = vmul.f32 %v6338_v14, %v6712_v61 }
 0x357   :  { %5027 = vset.pattern.permute.xlu1 %v8497_v54 }
 0x358   :  { %v525_v53 = vadd.f32 %v493_v15, %v331_v29  ;;  %1168 = vperm.xlu1 %5027, %v6737_v43   ;;  %5028 = vset.pattern.permute.xlu2 %v8497_v54  ;;  %v509_v41 = vadd.f32 %v477_v33, %v315_v6 }
 0x359   :  { %1172 = vperm.xlu2 %5028, %v6743_v35   ;;  %v6823_v5 = vpop.permute.xlu2 %836 }
 0x35a   :  { %v6825_v46 = vadd.f32 %v687_v38, %v525_v53  ;;  %v703_v34 = vadd.f32 %v671_v58, %v509_v41  ;;  %v880_v29 = vmul.f32 %v6847_v7, %v6823_v5 }
 0x35c   :  { %v897_v47 = vadd.f32 %v865_v22, %v703_v34 }
 0x35e   :  { %v1161_v16 = vpop.permute.xlu1 %1160  ;;  %v1911_v9 = vpop.f32.mrf.mxu2  ;;  %v1091_v63 = vadd.f32 %v1059_v19, %v897_v47 }
 0x35f   :  { %v1252_v14 = vmul.f32 %v6387_v57, %v1161_v16  ;;  %v1912_v61 = vadd.f32 %v6784_v60, %v1911_v9 }
 0x360   :  { %5029 = vset.pattern.permute.xlu1 %v8499_v50  ;;  %v1285_v56 = vadd.f32 %v1253_v62, %v1091_v63 }
 0x361   :  { %650 = vperm.xlu1 %5029, %v6755_v13   ;;  %5030 = vset.pattern.permute.xlu2 %v8499_v50  ;;  %v1355_v50 = vpop.permute.xlu0 %1354  ;;  %v1284_v1 = vadd.f32 %v1252_v14, %v1090_v4  ;;  %v1955_v32 = vmax.f32 %v1912_v61, 0.0 }
 0x362   :  { %654 = vperm.xlu2 %5030, %v6810_v8   ;;  %v1549_v3 = vpop.permute.xlu2 %1548  ;;  %v1446_v36 = vmul.f32 %v6395_v21, %v1355_v50 }
 0x363   :  { %v1640_v21 = vmul.f32 %v6489_v31, %v1549_v3 }
 0x364   :  { %v1478_v52 = vadd.f32 %v1446_v36, %v1284_v1  ;;  %v8572_v1 = vld [vmem:[#allocation21_spill] sm:$0xff] }
 0x366   :  { %v1913_v25 = vpop.f32.mrf.mxu2 }
 0x367   :  { %v1914_v18 = vadd.f32 %v6784_v60, %v1913_v25  ;;  %v643_v30 = vpop.permute.xlu1 %642 }
 0x369   :  { %v1956_v12 = vmax.f32 %v1914_v18, 0.0  ;;  %5031 = vset.pattern.permute.xlu1 %v8500_v44  ;;  %v1423_v62 = vpop.permute.xlu0 %1422 }
 0x36a   :  { %1366 = vperm.xlu1 %5031, %v6743_v35   ;;  %5032 = vset.pattern.permute.xlu2 %v8503_v49  ;;  %v1672_v35 = vadd.f32 %v1640_v21, %v1478_v52 }
 0x36b   :  { %844 = vperm.xlu2 %5032, %v6755_v13   ;;  %v1975_v0 = vpack.c.bf16 %v1956_v12, %v1955_v32  ;;  %v6860_v20 = vpop.permute.xlu2 %1034  ;;  %v316_v32 = vmul.f32 %v6836_v11, %v8572_v1 }
 0x36c   :  { %v1708_v42 = vadd.f32 %v6513_v40, %v1672_v35  ;;  %v1075_v19 = vmul.f32 %v6894_v23, %v6860_v20 }
 0x36d   :  { %2114 = vmatmul.bf16.gmra.mxu3 %v1975_v0 }
 0x36e   :  { %v1740_v15 = vmax.f32 %v1708_v42, 0.0 }
 0x370   :  { %v1359_v4 = vpop.permute.xlu1 %1358 }
 0x371   :  { %v1447_v57 = vmul.f32 %v6867_v26, %v1359_v4  ;;  %v1463_v4 = vmul.f32 %v6867_v26, %v1423_v62 }
 0x372   :  { %5033 = vset.pattern.permute.xlu1 %v8503_v49  ;;  %v6881_v49 = vld [vmem:[%s8437_s1 + $0x2] ss:$0 sm:$0xff] }
 0x373   :  { %v1479_v10 = vadd.f32 %v1447_v57, %v1285_v56  ;;  %848 = vperm.xlu1 %5033, %v6810_v8   ;;  %5034 = vset.pattern.permute.xlu2 %v8506_v28  ;;  %v686_v38 = vmul.f32 %v6881_v49, %v643_v30 }
 0x374   :  { %1556 = vperm.xlu2 %5034, %v6737_v43   ;;  %v6876_v17 = vpop.permute.xlu2 %396 }
 0x375   :  { %v1673_v55 = vadd.f32 %v1641_v45, %v1479_v10  ;;  %v718_v53 = vadd.f32 %v686_v38, %v6797_v24 }
 0x377   :  { %v1709_v51 = vadd.f32 %v6513_v40, %v1673_v55  ;;  %v912_v33 = vadd.f32 %v880_v29, %v718_v53 }
 0x379   :  { %v841_v37 = vpop.permute.xlu1 %840  ;;  %v1741_v2 = vmax.f32 %v1709_v51, 0.0 }
 0x37a   :  { %v881_v18 = vmul.f32 %v6847_v7, %v841_v37 }
 0x37b   :  { %5036 = vset.pattern.permute.xlu1 %v8502_v59  ;;  %v1766_v43 = vpack.c.bf16 %v1741_v2, %v1740_v15 }
 0x37c   :  { %1038 = vperm.xlu1 %5036, %v6755_v13   ;;  %5037 = vset.pattern.permute.xlu2 %v8502_v59  ;;  %v6901_v59 = vld [vmem:[%s8437_s1 + $0x5] ss:$0 sm:$0xff] }
 0x37d   :  { %1880 = vmatmul.bf16.gmra.mxu0 %v1766_v43  ;;  %1042 = vperm.xlu2 %5037, %v6810_v8   ;;  %v587_v16 = vpop.permute.xlu2 %586  ;;  %v1268_v24 = vmul.f32 %v6901_v59, %v5875_v27 }
 0x37e   :  { %v672_v47 = vmul.f32 %v6881_v49, %v587_v16 }
 0x382   :  { %v1031_v9 = vpop.permute.xlu1 %1030 }
 0x383   :  { %v1074_v6 = vmul.f32 %v6894_v23, %v1031_v9 }
 0x384   :  { %5038 = vset.pattern.permute.xlu1 %v8497_v54 }
 0x385   :  { %v1106_v5 = vadd.f32 %v1074_v6, %v912_v33  ;;  %1232 = vperm.xlu1 %5038, %v6755_v13   ;;  %5039 = vset.pattern.permute.xlu2 %v8497_v54 }
 0x386   :  { %1236 = vperm.xlu2 %5039, %v6810_v8   ;;  %v1419_v3 = vpop.permute.xlu2 %1418 }
 0x387   :  { %v1300_v58 = vadd.f32 %v1268_v24, %v1106_v5  ;;  %v1462_v51 = vmul.f32 %v6867_v26, %v1419_v3 }
 0x389   :  { %v1494_v38 = vadd.f32 %v1462_v51, %v1300_v58  ;;  %v8574_v58 = vld [vmem:[#allocation30_spill] sm:$0xff] }
 0x38b   :  { %v393_v41 = vpop.permute.xlu1 %392 }
 0x38d   :  { %5040 = vset.pattern.permute.xlu1 %v8500_v44 }
 0x38e   :  { %1430 = vperm.xlu1 %5040, %v6810_v8   ;;  %v1876_v14 = vpop.f32.mrf.mxu0  ;;  %5041 = vset.pattern.permute.xlu2 %v8506_v28 }
 0x38f   :  { %1620 = vperm.xlu2 %5041, %v6755_v13   ;;  %v785_v27 = vpop.permute.xlu2 %784  ;;  %v1877_v50 = vadd.f32 %v6784_v60, %v1876_v14  ;;  %v6920_v13 = vld [vmem:[%s8437_s1 + $0x1] ss:$0 sm:$0xff] }
 0x391   :  { %v1941_v22 = vmax.f32 %v1877_v50, 0.0  ;;  %v317_v50 = vmul.f32 %v6836_v11, %v8574_v58  ;;  %v4731_v58 = vld [vmem:[%s8441_s5 + $0x44] sm:$0xf0] }
 0x394   :  { %v1229_v61 = vpop.permute.xlu1 %1228 }
 0x395   :  { %v1269_v12 = vmul.f32 %v6901_v59, %v1229_v61 }
 0x396   :  { %5042 = vset.pattern.permute.xlu1 %v8506_v28  ;;  %v1878_v54 = vpop.f32.mrf.mxu0  ;;  %v478_v28 = vmul.f32 %v6920_v13, %v393_v41 }
 0x397   :  { %v1879_v25 = vadd.f32 %v6784_v60, %v1878_v54  ;;  %1624 = vperm.xlu1 %5042, %v6810_v8   ;;  %v913_v8 = vadd.f32 %v881_v18, %v6825_v46  ;;  %v8573_v46 = vld [vmem:[#allocation60_spill] sm:$0xff] }
 0x398   :  { %v1617_v30 = vpop.permute.xlu2 %1616  ;;  %v510_v0 = vadd.f32 %v478_v28, %v316_v32  ;;  %v1060_v56 = vmul.f32 %v6894_v23, %v8573_v46 }
 0x399   :  { %v1942_v44 = vmax.f32 %v1879_v25, 0.0  ;;  %v1107_v63 = vadd.f32 %v1075_v19, %v913_v8  ;;  %v1657_v55 = vmul.f32 %v6489_v31, %v1617_v30 }
 0x39a   :  { %v704_v35 = vadd.f32 %v672_v47, %v510_v0  ;;  %v6963_v0 = vld [vmem:[%s8437_s1 + $0x7] ss:$0 sm:$0xff] }
 0x39b   :  { %v1968_v34 = vpack.c.bf16 %v1942_v44, %v1941_v22  ;;  %v1301_v21 = vadd.f32 %v1269_v12, %v1107_v63  ;;  %v1363_v44 = vpop.permute.xlu0 %1362 }
 0x39c   :  { %v1448_v8 = vmul.f32 %v6867_v26, %v1363_v44  ;;  %v4316_v44 = vld [vmem:[%s8441_s5 + $0x30] sm:$0xf] }
 0x39d   :  { %v591_v36 = vpop.permute.xlu1 %590  ;;  %2079 = vmatmul.bf16.gmra.mxu1 %v1968_v34  ;;  %v1495_v10 = vadd.f32 %v1463_v4, %v1301_v21  ;;  %v867_v34 = vmul.f32 %v6847_v7, %v785_v27 }
 0x39f   :  { %v1689_v37 = vadd.f32 %v1657_v55, %v1495_v10 }
 0x3a1   :  { %v6930_v52 = vpop.permute.xlu2 %293  ;;  %v1725_v53 = vadd.f32 %v6513_v40, %v1689_v37 }
 0x3a3   :  { %v1757_v33 = vmax.f32 %v1725_v53, 0.0 }
 0x3a6   :  { %v781_v45 = vpop.permute.xlu1 %780 }
 0x3a7   :  { %v866_v20 = vmul.f32 %v6847_v7, %v781_v45 }
 0x3a9   :  { %v898_v57 = vadd.f32 %v866_v20, %v704_v35 }
 0x3aa   :  { %v6938_v15 = vpop.permute.xlu2 %456 }
 0x3ab   :  { %v1092_v42 = vadd.f32 %v1060_v56, %v898_v57  ;;  %v1643_v57 = vmul.f32 %v6963_v0, %v6595_v48 }
 0x3af   :  { %v1613_v2 = vpop.permute.xlu1 %1612 }
 0x3b0   :  { %v1656_v43 = vmul.f32 %v6489_v31, %v1613_v2  ;;  %v479_v31 = vmul.f32 %v6920_v13, %v6876_v17  ;;  %v4348_v2 = vld [vmem:[%s8441_s5 + $0x70] sm:$0xf] }
 0x3b2   :  { %v1688_v29 = vadd.f32 %v1656_v43, %v1494_v38  ;;  %v511_v54 = vadd.f32 %v479_v31, %v317_v50  ;;  %v4737_v38 = vld [vmem:[%s8441_s5 + $0x74] sm:$0xf0]  ;;  %v4324_v31 = vld [vmem:[%s8441_s5 + $0x40] sm:$0xf] }
 0x3b3   :  { %v1173_v6 = vpop.permute.xlu2 %1172  ;;  %v4349_v43 = vor.u32 %v4737_v38, %v4348_v2 }
 0x3b4   :  { %v1724_v16 = vadd.f32 %v6513_v40, %v1688_v29  ;;  %v673_v40 = vmul.f32 %v6881_v49, %v591_v36  ;;  %v1255_v36 = vmul.f32 %v6901_v59, %v1173_v6 }
 0x3b5   :  { %2285 = vmatpush.bf16.msrb.mxu2 %v4349_v43 }
 0x3b6   :  { %v1756_v9 = vmax.f32 %v1724_v16, 0.0  ;;  %v705_v18 = vadd.f32 %v673_v40, %v511_v54  ;;  %v4340_v16 = vld [vmem:[%s8441_s5 + $0x60] sm:$0xf]  ;;  %v4325_v40 = vor.u32 %v4731_v58, %v4324_v31 }
 0x3b8   :  { %v979_v24 = vpop.permute.xlu1 %978  ;;  %v1774_v5 = vpack.c.bf16 %v1757_v33, %v1756_v9  ;;  %v899_v1 = vadd.f32 %v867_v34, %v705_v18  ;;  %v4735_v9 = vld [vmem:[%s8441_s5 + $0x64] sm:$0xf0]  ;;  %v4729_v34 = vld [vmem:[%s8441_s5 + $0x34] sm:$0xf0] }
 0x3b9   :  { %v1061_v28 = vmul.f32 %v6894_v23, %v979_v24  ;;  %v4341_v33 = vor.u32 %v4735_v9, %v4340_v16  ;;  %v4332_v24 = vld [vmem:[%s8441_s5 + $0x50] sm:$0xf] }
 0x3ba   :  { %1920 = vmatmul.bf16.gmra.mxu2 %v1774_v5  ;;  %v4733_v5 = vld [vmem:[%s8441_s5 + $0x54] sm:$0xf0] }
 0x3bb   :  { %v1093_v12 = vadd.f32 %v1061_v28, %v899_v1  ;;  %2286 = vmatpush.bf16.msrb.mxu2 %v4341_v33  ;;  %v4317_v28 = vor.u32 %v4729_v34, %v4316_v44  ;;  %v4350_v44 = vld [vmem:[%s8441_s5 + $0x78] sm:$0xf0] }
 0x3bc   :  { %v6945_v3 = vpop.permute.xlu2 %654 }
 0x3bd   :  { %v1287_v20 = vadd.f32 %v1255_v36, %v1093_v12 }
 0x3c1   :  { %v6943_v41 = vpop.permute.xlu1 %298 }
 0x3c5   :  { %v6947_v61 = vpop.permute.xlu2 %844 }
 0x3ca   :  { %v1169_v14 = vpop.permute.xlu1 %1168 }
 0x3cb   :  { %v1254_v25 = vmul.f32 %v6901_v59, %v1169_v14  ;;  %v4333_v14 = vor.u32 %v4733_v5, %v4332_v24 }
 0x3cd   :  { %v1286_v19 = vadd.f32 %v1254_v25, %v1092_v42  ;;  %v6970_v42 = vld [vmem:[#allocation2] ss:$0 sm:$0xff]  ;;  %2287 = vmatpush.bf16.msrb.mxu2 %v4333_v14  ;;  %v332_v25 = vmul.f32 %v6836_v11, %v6930_v52  ;;  %v4727_v52 = vld [vmem:[%s8441_s5 + $0x24] sm:$0xf0] }
 0x3ce   :  { %v1557_v17 = vpop.permute.xlu2 %1556 }
 0x3cf   :  { %v1480_v47 = vadd.f32 %v1448_v8, %v1286_v19  ;;  %v1642_v27 = vmul.f32 %v6963_v0, %v1557_v17  ;;  %v4308_v19 = vld [vmem:[%s8441_s5 + $0x20] sm:$0xf]  ;;  %v333_v8 = vmul.f32 %v6836_v11, %v6943_v41  ;;  %v4300_v11 = vld [vmem:[%s8441_s5 + $0x10] sm:$0xf] }
 0x3d0   :  { %v4309_v17 = vor.u32 %v4727_v52, %v4308_v19 }
 0x3d1   :  { %v1916_v22 = vpop.f32.mrf.mxu2  ;;  %v1674_v35 = vadd.f32 %v1642_v27, %v1480_v47  ;;  %2288 = vmatpush.bf16.msrb.mxu2 %v4325_v40  ;;  %v689_v47 = vmul.f32 %v6881_v49, %v6945_v3  ;;  %v4723_v3 = vld [vmem:[%s8441_s5 + $0x4] sm:$0xf0] }
 0x3d2   :  { %v1917_v32 = vadd.f32 %v6784_v60, %v1916_v22  ;;  %v494_v22 = vmul.f32 %v6920_v13, %v6938_v15 }
 0x3d3   :  { %v651_v30 = vpop.permute.xlu1 %650  ;;  %v1710_v51 = vadd.f32 %v6970_v42, %v1674_v35 }
 0x3d4   :  { %v1957_v21 = vmax.f32 %v1917_v32, 0.0  ;;  %v688_v18 = vmul.f32 %v6881_v49, %v651_v30  ;;  %v526_v15 = vadd.f32 %v494_v22, %v332_v25  ;;  %v495_v32 = vmul.f32 %v6920_v13, %v6142_v39  ;;  %v4725_v39 = vld [vmem:[%s8441_s5 + $0x14] sm:$0xf0]  ;;  %v4292_v49 = vld [vmem:[%s8441_s5] sm:$0xf] }
 0x3d5   :  { %v1742_v48 = vmax.f32 %v1710_v51, 0.0  ;;  %2289 = vmatpush.bf16.msrb.mxu2 %v4317_v28  ;;  %v882_v30 = vmul.f32 %v6847_v7, %v6947_v61  ;;  %v4293_v35 = vor.u32 %v4723_v3, %v4292_v49 }
 0x3d6   :  { %v720_v36 = vadd.f32 %v688_v18, %v526_v15  ;;  %v527_v27 = vadd.f32 %v495_v32, %v333_v8  ;;  %v7057_v18 = vld [vmem:[%s8440_s4 + $0x1] ss:$0 sm:$0xff]  ;;  %v4342_v32 = vld [vmem:[%s8441_s5 + $0x68] sm:$0xf0] }
 0x3d7   :  { %v1043_v54 = vpop.permute.xlu2 %1042 }
 0x3d8   :  { %v914_v41 = vadd.f32 %v882_v30, %v720_v36 }
 0x3d9   :  { %v1918_v62 = vpop.f32.mrf.mxu2  ;;  %2290 = vmatpush.bf16.msrb.mxu2 %v4309_v17 }
 0x3da   :  { %v1919_v63 = vadd.f32 %v6784_v60, %v1918_v62 }
 0x3dc   :  { %v1958_v4 = vmax.f32 %v1919_v63, 0.0  ;;  %v1367_v45 = vpop.permute.xlu1 %1366 }
 0x3dd   :  { %v1449_v46 = vmul.f32 %v6867_v26, %v1367_v45 }
 0x3de   :  { %v1976_v56 = vpack.c.bf16 %v1958_v4, %v1957_v21  ;;  %v4301_v21 = vor.u32 %v4725_v39, %v4300_v11  ;;  %v721_v4 = vadd.f32 %v689_v47, %v527_v27  ;;  %v4732_v11 = vld [vmem:[%s8441_s5 + $0x54] sm:$0xf]  ;;  %v4334_v39 = vld [vmem:[%s8441_s5 + $0x58] sm:$0xf0] }
 0x3df   :  { %v1481_v10 = vadd.f32 %v1449_v46, %v1287_v20  ;;  %v1427_v20 = vpop.permute.xlu0 %1426  ;;  %v1077_v46 = vmul.f32 %v6894_v23, %v1043_v54 }
 0x3e0   :  { %2119 = vmatmul.bf16.gmra.mxu3 %v1976_v56  ;;  %v1237_v12 = vpop.permute.xlu2 %1236  ;;  %2291 = vmatpush.bf16.msrb.mxu2 %v4301_v21 }
 0x3e1   :  { %v1675_v55 = vadd.f32 %v1643_v57, %v1481_v10  ;;  %v2055_v10 = vpop.f32.mrf.mxu1 }
 0x3e2   :  { %v2056_v28 = vadd.f32 %v7057_v18, %v2055_v10  ;;  %v4730_v10 = vld [vmem:[%s8441_s5 + $0x44] sm:$0xf] }
 0x3e3   :  { %v1711_v37 = vadd.f32 %v6970_v42, %v1675_v55 }
 0x3e4   :  { %2292 = vmatpush.bf16.msrb.mxu2 %v4293_v35  ;;  %v2135_v15 = vmax.f32 %v2056_v28, 0.0 }
 0x3e5   :  { %v849_v29 = vpop.permute.xlu1 %848  ;;  %v1743_v53 = vmax.f32 %v1711_v37, 0.0  ;;  %v1464_v37 = vmul.f32 %v6867_v26, %v1427_v20 }
 0x3e6   :  { %v883_v13 = vmul.f32 %v6847_v7, %v849_v29  ;;  %v1271_v29 = vmul.f32 %v6901_v59, %v1237_v12 }
 0x3e7   :  { %v1767_v6 = vpack.c.bf16 %v1743_v53, %v1742_v48 }
 0x3e8   :  { %v915_v7 = vadd.f32 %v883_v13, %v721_v4  ;;  %v4337_v13 = vor.u32 %v4732_v11, %v4334_v39  ;;  %v4396_v39 = vld [vmem:[%s8443_s7 + $0x50] sm:$0xf] }
 0x3e9   :  { %1885 = vmatmul.bf16.gmra.mxu0 %v1767_v6  ;;  %v1621_v51 = vpop.permute.xlu2 %1620  ;;  %v2057_v58 = vpop.f32.mrf.mxu1 }
 0x3ea   :  { %v1109_v43 = vadd.f32 %v1077_v46, %v915_v7  ;;  %v1658_v53 = vmul.f32 %v6963_v0, %v1621_v51 }
 0x3ec   :  { %v1303_v6 = vadd.f32 %v1271_v29, %v1109_v43 }
 0x3ee   :  { %v1039_v50 = vpop.permute.xlu1 %1038 }
 0x3ef   :  { %v1076_v62 = vmul.f32 %v6894_v23, %v1039_v50 }
 0x3f1   :  { %v1108_v45 = vadd.f32 %v1076_v62, %v914_v41  ;;  %v2060_v34 = vpop.f32.mrf.mxu1 }
 0x3f2   :  { %v2061_v12 = vadd.f32 %v7057_v18, %v2060_v34 }
 0x3f4   :  { %v2137_v27 = vmax.f32 %v2061_v12, 0.0  ;;  %v4753_v12 = vld [vmem:[%s8443_s7 + $0x74] sm:$0xf0] }
 0x3f7   :  { %v1233_v1 = vpop.permute.xlu1 %1232 }
 0x3f8   :  { %v1270_v61 = vmul.f32 %v6901_v59, %v1233_v1  ;;  %v4734_v1 = vld [vmem:[%s8441_s5 + $0x64] sm:$0xf] }
 0x3f9   :  { %v2062_v52 = vpop.f32.mrf.mxu1  ;;  %v4345_v30 = vor.u32 %v4734_v1, %v4342_v32  ;;  %v4724_v1 = vld [vmem:[%s8441_s5 + $0x14] sm:$0xf]  ;;  %v4302_v32 = vld [vmem:[%s8441_s5 + $0x18] sm:$0xf0] }
 0x3fa   :  { %v1881_v63 = vpop.f32.mrf.mxu0  ;;  %v1302_v56 = vadd.f32 %v1270_v61, %v1108_v45  ;;  %v2063_v36 = vadd.f32 %v7057_v18, %v2062_v52 }
 0x3fb   :  { %v1882_v55 = vadd.f32 %v6784_v60, %v1881_v63 }
 0x3fc   :  { %v1496_v48 = vadd.f32 %v1464_v37, %v1302_v56  ;;  %v2138_v47 = vmax.f32 %v2063_v36, 0.0  ;;  %v4305_v36 = vor.u32 %v4724_v1, %v4302_v32 }
 0x3fd   :  { %v1943_v23 = vmax.f32 %v1882_v55, 0.0  ;;  %v4326_v55 = vld [vmem:[%s8441_s5 + $0x48] sm:$0xf0] }
 0x3fe   :  { %v1690_v24 = vadd.f32 %v1658_v53, %v1496_v48  ;;  %v7072_v63 = vpack.c.bf16 %v2138_v47, %v2137_v27  ;;  %v4404_v27 = vld [vmem:[%s8443_s7 + $0x60] sm:$0xf] }
 0x400   :  { %v1431_v57 = vpop.permute.xlu1 %1430  ;;  %v1726_v40 = vadd.f32 %v6970_v42, %v1690_v24 }
 0x401   :  { %v1465_v9 = vmul.f32 %v6867_v26, %v1431_v57  ;;  %v4736_v26 = vld [vmem:[%s8441_s5 + $0x74] sm:$0xf]  ;;  %v2065_v17 = vpop.f32.mrf.mxu1 }
 0x402   :  { %v1883_v2 = vpop.f32.mrf.mxu0  ;;  %v1758_v54 = vmax.f32 %v1726_v40, 0.0  ;;  %v2066_v21 = vadd.f32 %v7057_v18, %v2065_v17 }
 0x403   :  { %v1884_v38 = vadd.f32 %v6784_v60, %v1883_v2  ;;  %v1497_v14 = vadd.f32 %v1465_v9, %v1303_v6  ;;  %v4329_v2 = vor.u32 %v4730_v10, %v4326_v55  ;;  %v4318_v9 = vld [vmem:[%s8441_s5 + $0x38] sm:$0xf0]  ;;  %v4743_v10 = vld [vmem:[%s8443_s7 + $0x24] sm:$0xf0] }
 0x404   :  { %v2139_v4 = vmax.f32 %v2066_v21, 0.0  ;;  %v4747_v21 = vld [vmem:[%s8443_s7 + $0x44] sm:$0xf0] }
 0x405   :  { %v1944_v16 = vmax.f32 %v1884_v38, 0.0 }
 0x407   :  { %v1969_v33 = vpack.c.bf16 %v1944_v16, %v1943_v23  ;;  %v4728_v16 = vld [vmem:[%s8441_s5 + $0x34] sm:$0xf] }
 0x409   :  { %v1625_v5 = vpop.permute.xlu1 %1624  ;;  %2084 = vmatmul.bf16.gmra.mxu1 %v1969_v33  ;;  %v2067_v62 = vpop.f32.mrf.mxu1  ;;  %v4321_v33 = vor.u32 %v4728_v16, %v4318_v9  ;;  %v4356_v16 = vld [vmem:[%s8443_s7] sm:$0xf]  ;;  %v4739_v9 = vld [vmem:[%s8443_s7 + $0x4] sm:$0xf0] }
 0x40a   :  { %v1659_v31 = vmul.f32 %v6963_v0, %v1625_v5  ;;  %v4353_v0 = vor.u32 %v4736_v26, %v4350_v44  ;;  %v2068_v61 = vadd.f32 %v7057_v18, %v2067_v62  ;;  %v4751_v62 = vld [vmem:[%s8443_s7 + $0x64] sm:$0xf0] }
 0x40b   :  { %v4405_v11 = vor.u32 %v4751_v62, %v4404_v27  ;;  %v4406_v27 = vld [vmem:[%s8443_s7 + $0x68] sm:$0xf0] }
 0x40c   :  { %v1691_v50 = vadd.f32 %v1659_v31, %v1497_v14  ;;  %2374 = vmatpush.bf16.msrb.mxu3 %v4353_v0  ;;  %v2140_v3 = vmax.f32 %v2068_v61, 0.0  ;;  %v4388_v61 = vld [vmem:[%s8443_s7 + $0x40] sm:$0xf] }
 0x40e   :  { %v1727_v59 = vadd.f32 %v6970_v42, %v1691_v50  ;;  %v2058_v42 = vadd.f32 %v7057_v18, %v2057_v58  ;;  %v7083_v45 = vpack.c.bf16 %v2140_v3, %v2139_v4  ;;  %v4380_v3 = vld [vmem:[%s8443_s7 + $0x30] sm:$0xf]  ;;  %v4745_v4 = vld [vmem:[%s8443_s7 + $0x34] sm:$0xf0] }
 0x410   :  { %v1759_v25 = vmax.f32 %v1727_v59, 0.0  ;;  %v2136_v19 = vmax.f32 %v2058_v42, 0.0  ;;  %2375 = vmatpush.bf16.msrb.mxu3 %v4345_v30  ;;  %v4726_v59 = vld [vmem:[%s8441_s5 + $0x24] sm:$0xf]  ;;  %v4412_v30 = vld [vmem:[%s8443_s7 + $0x70] sm:$0xf] }
 0x411   :  { %v2070_v41 = vpop.f32.mrf.mxu1  ;;  %v4413_v47 = vor.u32 %v4753_v12, %v4412_v30 }
 0x412   :  { %v1775_v22 = vpack.c.bf16 %v1759_v25, %v1758_v54  ;;  %v7061_v8 = vpack.c.bf16 %v2136_v19, %v2135_v15  ;;  %v2071_v43 = vadd.f32 %v7057_v18, %v2070_v41  ;;  %v4310_v54 = vld [vmem:[%s8441_s5 + $0x28] sm:$0xf0] }
 0x413   :  { %2757 = vmatpush.bf16.msrb.mxu0 %v4413_v47  ;;  %v4750_v47 = vld [vmem:[%s8443_s7 + $0x64] sm:$0xf] }
 0x414   :  { %1925 = vmatmul.bf16.gmra.mxu2 %v1775_v22  ;;  %2376 = vmatpush.bf16.msrb.mxu3 %v4337_v13  ;;  %v2141_v48 = vmax.f32 %v2071_v43, 0.0  ;;  %v4313_v22 = vor.u32 %v4726_v59, %v4310_v54  ;;  %v4749_v13 = vld [vmem:[%s8443_s7 + $0x54] sm:$0xf0]  ;;  %v4409_v62 = vor.u32 %v4750_v47, %v4406_v27  ;;  %v4746_v47 = vld [vmem:[%s8443_s7 + $0x44] sm:$0xf] }
 0x415   :  { %v4397_v41 = vor.u32 %v4749_v13, %v4396_v39  ;;  %v4766_v13 = vld [vmem:[%s8443_s7 + $0xe4] sm:$0xf]  ;;  %v4390_v27 = vld [vmem:[%s8443_s7 + $0x48] sm:$0xf0] }
 0x417   :  { %2758 = vmatpush.bf16.msrb.mxu0 %v4405_v11 }
 0x418   :  { %2377 = vmatpush.bf16.msrb.mxu3 %v4329_v2  ;;  %v4741_v2 = vld [vmem:[%s8443_s7 + $0x14] sm:$0xf0] }
 0x419   :  { %v2072_v35 = vpop.f32.mrf.mxu1 }
 0x41a   :  { %v2073_v51 = vadd.f32 %v7057_v18, %v2072_v35 }
 0x41b   :  { %2759 = vmatpush.bf16.msrb.mxu0 %v4397_v41  ;;  %v4470_v41 = vld [vmem:[%s8443_s7 + $0xe8] sm:$0xf0] }
 0x41c   :  { %v2142_v29 = vmax.f32 %v2073_v51, 0.0  ;;  %2378 = vmatpush.bf16.msrb.mxu3 %v4321_v33  ;;  %v4357_v33 = vor.u32 %v4739_v9, %v4356_v16  ;;  %v4748_v9 = vld [vmem:[%s8443_s7 + $0x54] sm:$0xf] }
 0x41e   :  { %v7096_v53 = vpack.c.bf16 %v2142_v29, %v2141_v48 }
 0x420   :  { %2379 = vmatpush.bf16.msrb.mxu3 %v4313_v22 }
 0x421   :  { %v2075_v38 = vpop.f32.mrf.mxu1 }
 0x422   :  { %v2076_v24 = vadd.f32 %v7057_v18, %v2075_v38 }
 0x424   :  { %2293 = vmatmul.bf16.vlgmr.msrb.gmra.mxu2 %v7061_v8  ;;  %v2143_v31 = vmax.f32 %v2076_v24, 0.0  ;;  %2380 = vmatpush.bf16.msrb.mxu3 %v4305_v36  ;;  %v4414_v24 = vld [vmem:[%s8443_s7 + $0x78] sm:$0xf0] }
 0x429   :  { %v2077_v23 = vpop.f32.mrf.mxu1 }
 0x42a   :  { %v2078_v6 = vadd.f32 %v7057_v18, %v2077_v23 }
 0x42c   :  { %v2144_v14 = vmax.f32 %v2078_v6, 0.0  ;;  %v4752_v6 = vld [vmem:[%s8443_s7 + $0x74] sm:$0xf] }
 0x42e   :  { %v7107_v58 = vpack.c.bf16 %v2144_v14, %v2143_v31  ;;  %v4417_v14 = vor.u32 %v4752_v6, %v4414_v24  ;;  %v4768_v31 = vld [vmem:[%s8443_s7 + $0xf4] sm:$0xf] }
 0x42f   :  { %v4764_v24 = vld [vmem:[%s8443_s7 + $0xd4] sm:$0xf] }
 0x430   :  { %2935 = vmatpush.bf16.msra.mxu2 %v4417_v14  ;;  %v4462_v14 = vld [vmem:[%s8443_s7 + $0xd8] sm:$0xf0] }
 0x431   :  { %v2080_v5 = vpop.f32.mrf.mxu1 }
 0x432   :  { %v2081_v26 = vadd.f32 %v7057_v18, %v2080_v5 }
 0x434   :  { %2298 = vmatmul.bf16.gmra.mxu2 %v7072_v63  ;;  %v2145_v28 = vmax.f32 %v2081_v26, 0.0 }
 0x435   :  { %2936 = vmatpush.bf16.msra.mxu2 %v4409_v62 }
 0x439   :  { %v2082_v40 = vpop.f32.mrf.mxu1 }
 0x43a   :  { %v2083_v25 = vadd.f32 %v7057_v18, %v2082_v40 }
 0x43c   :  { %v2146_v34 = vmax.f32 %v2083_v25, 0.0 }
 0x43d   :  { %v1921_v49 = vpop.f32.mrf.mxu2 }
 0x43e   :  { %v1922_v20 = vadd.f32 %v6784_v60, %v1921_v49  ;;  %v7120_v15 = vpack.c.bf16 %v2146_v34, %v2145_v28  ;;  %v4389_v49 = vor.u32 %v4747_v21, %v4388_v61  ;;  %v4473_v21 = vor.u32 %v4766_v13, %v4470_v41 }
 0x440   :  { %v1959_v56 = vmax.f32 %v1922_v20, 0.0  ;;  %2760 = vmatpush.bf16.msrb.mxu0 %v4389_v49  ;;  %v4722_v20 = vld [vmem:[%s8441_s5 + $0x4] sm:$0xf]  ;;  %v4468_v49 = vld [vmem:[%s8443_s7 + $0xe0] sm:$0xf] }
 0x444   :  { %2303 = vmatmul.bf16.gmra.mxu2 %v7083_v45 }
 0x445   :  { %v1923_v46 = vpop.f32.mrf.mxu2 }
 0x446   :  { %v1924_v7 = vadd.f32 %v6784_v60, %v1923_v46  ;;  %v4294_v46 = vld [vmem:[%s8441_s5 + $0x8] sm:$0xf0] }
 0x448   :  { %v1960_v57 = vmax.f32 %v1924_v7, 0.0  ;;  %v4381_v7 = vor.u32 %v4745_v4, %v4380_v3 }
 0x44a   :  { %v1977_v37 = vpack.c.bf16 %v1960_v57, %v1959_v56  ;;  %v4297_v56 = vor.u32 %v4722_v20, %v4294_v46  ;;  %2761 = vmatpush.bf16.msrb.mxu0 %v4381_v7  ;;  %v4372_v57 = vld [vmem:[%s8443_s7 + $0x20] sm:$0xf] }
 0x44b   :  { %v4373_v55 = vor.u32 %v4743_v10, %v4372_v57 }
 0x44c   :  { %2124 = vmatmul.bf16.gmra.mxu3 %v1977_v37  ;;  %v4364_v37 = vld [vmem:[%s8443_s7 + $0x10] sm:$0xf] }
 0x44d   :  { %2381 = vmatpush.bf16.msrb.mxu3 %v4297_v56  ;;  %v4365_v43 = vor.u32 %v4741_v2, %v4364_v37  ;;  %v4765_v37 = vld [vmem:[%s8443_s7 + $0xd4] sm:$0xf0] }
 0x44e   :  { %2762 = vmatpush.bf16.msrb.mxu0 %v4373_v55 }
 0x452   :  { %2763 = vmatpush.bf16.msrb.mxu0 %v4365_v43 }
 0x454   :  { %2308 = vmatmul.bf16.gmra.mxu2 %v7096_v53 }
 0x456   :  { %2764 = vmatpush.bf16.msrb.mxu0 %v4357_v33  ;;  %v4398_v33 = vld [vmem:[%s8443_s7 + $0x58] sm:$0xf0] }
 0x457   :  { %v4401_v6 = vor.u32 %v4748_v9, %v4398_v33 }
 0x459   :  { %2937 = vmatpush.bf16.msra.mxu2 %v4401_v6 }
 0x464   :  { %2313 = vmatmul.bf16.gmra.mxu2 %v7107_v58 }
 0x466   :  { %v1886_v50 = vpop.f32.mrf.mxu0 }
 0x467   :  { %v1887_v44 = vadd.f32 %v6784_v60, %v1886_v50  ;;  %v4478_v50 = vld [vmem:[%s8443_s7 + $0xf8] sm:$0xf0] }
 0x468   :  { %v4481_v59 = vor.u32 %v4768_v31, %v4478_v50  ;;  %v4465_v50 = vor.u32 %v4764_v24, %v4462_v14 }
 0x469   :  { %v1945_v19 = vmax.f32 %v1887_v44, 0.0 }
 0x46a   :  { %3024 = vmatpush.bf16.msra.mxu3 %v4481_v59  ;;  %v4763_v59 = vld [vmem:[%s8443_s7 + $0xc4] sm:$0xf0] }
 0x46e   :  { %v1888_v0 = vpop.f32.mrf.mxu0  ;;  %3025 = vmatpush.bf16.msra.mxu3 %v4473_v21 }
 0x46f   :  { %v1889_v42 = vadd.f32 %v6784_v60, %v1888_v0  ;;  %v7202_v0 = vld [vmem:[#allocation4] sm:$0x3] }
 0x470   :  { %v7205_v28 = vperm.slane %v7202_v0, 0 }
 0x471   :  { %v1946_v52 = vmax.f32 %v1889_v42, 0.0 }
 0x472   :  { %3026 = vmatpush.bf16.msra.mxu3 %v4465_v50  ;;  %v4757_v50 = vld [vmem:[%s8443_s7 + $0x94] sm:$0xf0] }
 0x473   :  { %v1970_v17 = vpack.c.bf16 %v1946_v52, %v1945_v19  ;;  %v4476_v19 = vld [vmem:[%s8443_s7 + $0xf0] sm:$0xf]  ;;  %v4769_v52 = vld [vmem:[%s8443_s7 + $0xf4] sm:$0xf0] }
 0x474   :  { %2318 = vmatmul.bf16.gmra.mxu2 %v7120_v15 }
 0x475   :  { %2089 = vmatmul.bf16.gmra.mxu1 %v1970_v17  ;;  %v7213_v17 = vpop.f32.mrf.mxu3 }
 0x47d   :  { %v7225_v39 = vpop.f32.mrf.mxu3 }
 0x47e   :  { %v2098_v14 = vadd.f32 %v7057_v18, %v7225_v39  ;;  %v4744_v39 = vld [vmem:[%s8443_s7 + $0x34] sm:$0xf] }
 0x485   :  { %v7241_v4 = vpop.f32.mrf.mxu3 }
 0x486   :  { %v2085_v35 = vpop.f32.mrf.mxu1 }
 0x487   :  { %v2086_v51 = vadd.f32 %v7057_v18, %v2085_v35 }
 0x489   :  { %v2147_v48 = vmax.f32 %v2086_v51, 0.0  ;;  %v4460_v51 = vld [vmem:[%s8443_s7 + $0xd0] sm:$0xf] }
 0x48a   :  { %v4461_v2 = vor.u32 %v4765_v37, %v4460_v51 }
 0x48d   :  { %v7249_v10 = vpop.f32.mrf.mxu3 }
 0x48e   :  { %v2087_v38 = vpop.f32.mrf.mxu1 }
 0x48f   :  { %v2088_v29 = vadd.f32 %v7057_v18, %v2087_v38 }
 0x491   :  { %v2148_v23 = vmax.f32 %v2088_v29, 0.0 }
 0x493   :  { %v7191_v5 = vpack.c.bf16 %v2148_v23, %v2147_v48 }
 0x495   :  { %2323 = vmatmul.bf16.gmra.mxu2 %v7191_v5  ;;  %v7258_v43 = vpop.f32.mrf.mxu3 }
 0x497   :  { %v1926_v40 = vpop.f32.mrf.mxu2 }
 0x498   :  { %v1927_v54 = vadd.f32 %v6784_v60, %v1926_v40 }
 0x49a   :  { %v1961_v26 = vmax.f32 %v1927_v54, 0.0 }
 0x49d   :  { %v7277_v40 = vpop.f32.mrf.mxu3 }
 0x49f   :  { %v1928_v25 = vpop.f32.mrf.mxu2 }
 0x4a0   :  { %v1929_v22 = vadd.f32 %v6784_v60, %v1928_v25  ;;  %v4477_v60 = vor.u32 %v4769_v52, %v4476_v19  ;;  %v4444_v52 = vld [vmem:[%s8443_s7 + $0xb0] sm:$0xf] }
 0x4a2   :  { %v1962_v44 = vmax.f32 %v1929_v22, 0.0  ;;  %2846 = vmatpush.bf16.msrb.mxu1 %v4477_v60  ;;  %v4761_v60 = vld [vmem:[%s8443_s7 + $0xb4] sm:$0xf0] }
 0x4a4   :  { %v1978_v34 = vpack.c.bf16 %v1962_v44, %v1961_v26 }
 0x4a5   :  { %v7287_v44 = vpop.f32.mrf.mxu3 }
 0x4a6   :  { %2129 = vmatmul.bf16.gmra.mxu3 %v1978_v34 }
 0x4a7   :  { %v2294_v42 = vpop.f32.mrf.mxu2 }
 0x4a8   :  { %v2295_v1 = vadd.f32 %v2294_v42, %v7205_v28 }
 0x4aa   :  { %v2463_v36 = vmax.f32 %v2295_v1, 0.0 }
 0x4af   :  { %v2296_v32 = vpop.f32.mrf.mxu2 }
 0x4b0   :  { %v2297_v30 = vadd.f32 %v2296_v32, %v7205_v28  ;;  %v4445_v32 = vor.u32 %v4761_v60, %v4444_v52  ;;  %v4420_v52 = vld [vmem:[%s8443_s7 + $0x80] sm:$0xf]  ;;  %v2103_v60 = vadd.f32 %v7057_v18, %v7249_v10 }
 0x4b2   :  { %v2465_v12 = vmax.f32 %v2297_v30, 0.0  ;;  %v7299_v30 = vpop.f32.mrf.mxu3 }
 0x4b4   :  { %v7223_v11 = vpack.c.bf16 %v2465_v12, %v2463_v36 }
 0x4b6   :  { %2382 = vmatmul.bf16.vlgmr.msrb.gmra.mxu3 %v7061_v8  ;;  %2765 = vmatmul.bf16.vlgmr.msrb.gmra.mxu0 %v7223_v11  ;;  %v4767_v8 = vld [vmem:[%s8443_s7 + $0xe4] sm:$0xf0] }
 0x4b7   :  { %v2299_v61 = vpop.f32.mrf.mxu2  ;;  %v4469_v3 = vor.u32 %v4767_v8, %v4468_v49  ;;  %v4762_v8 = vld [vmem:[%s8443_s7 + $0xc4] sm:$0xf] }
 0x4b8   :  { %v2300_v35 = vadd.f32 %v2299_v61, %v7205_v28  ;;  %v4393_v61 = vor.u32 %v4746_v47, %v4390_v27  ;;  %v2154_v47 = vmax.f32 %v2103_v60, 0.0 }
 0x4b9   :  { %2847 = vmatpush.bf16.msrb.mxu1 %v4469_v3  ;;  %v4454_v3 = vld [vmem:[%s8443_s7 + $0xc8] sm:$0xf0] }
 0x4ba   :  { %v2467_v7 = vmax.f32 %v2300_v35, 0.0  ;;  %v7309_v21 = vpop.f32.mrf.mxu3  ;;  %2938 = vmatpush.bf16.msra.mxu2 %v4393_v61 }
 0x4bd   :  { %2848 = vmatpush.bf16.msrb.mxu1 %v4461_v2 }
 0x4bf   :  { %v2301_v20 = vpop.f32.mrf.mxu2 }
 0x4c0   :  { %v2302_v46 = vadd.f32 %v2301_v20, %v7205_v28  ;;  %v4457_v20 = vor.u32 %v4762_v8, %v4454_v3 }
 0x4c2   :  { %v2469_v56 = vmax.f32 %v2302_v46, 0.0  ;;  %3027 = vmatpush.bf16.msra.mxu3 %v4457_v20  ;;  %v7329_v37 = vpop.f32.mrf.mxu3  ;;  %v4785_v20 = vld [vmem:[%s8443_s7 + $0x174] sm:$0xf0] }
 0x4c4   :  { %v7245_v57 = vpack.c.bf16 %v2469_v56, %v2467_v7 }
 0x4c6   :  { %2387 = vmatmul.bf16.gmra.mxu3 %v7072_v63  ;;  %2770 = vmatmul.bf16.gmra.mxu0 %v7245_v57 }
 0x4c7   :  { %v2304_v55 = vpop.f32.mrf.mxu2 }
 0x4c8   :  { %v2305_v38 = vadd.f32 %v2304_v55, %v7205_v28  ;;  %v4759_v55 = vld [vmem:[%s8443_s7 + $0xa4] sm:$0xf0] }
 0x4ca   :  { %v2471_v48 = vmax.f32 %v2305_v38, 0.0  ;;  %v7335_v24 = vpop.f32.mrf.mxu3 }
 0x4cf   :  { %v2306_v63 = vpop.f32.mrf.mxu2 }
 0x4d0   :  { %v2307_v29 = vadd.f32 %v2306_v63, %v7205_v28 }
 0x4d2   :  { %v2473_v23 = vmax.f32 %v2307_v29, 0.0 }
 0x4d4   :  { %v7261_v16 = vpack.c.bf16 %v2473_v23, %v2471_v48 }
 0x4d6   :  { %2392 = vmatmul.bf16.gmra.mxu3 %v7083_v45  ;;  %2775 = vmatmul.bf16.gmra.mxu0 %v7261_v16  ;;  %v4452_v45 = vld [vmem:[%s8443_s7 + $0xc0] sm:$0xf] }
 0x4d7   :  { %v2309_v31 = vpop.f32.mrf.mxu2  ;;  %v4453_v54 = vor.u32 %v4763_v59, %v4452_v45  ;;  %v2096_v59 = vadd.f32 %v7057_v18, %v7213_v17  ;;  %v4760_v17 = vld [vmem:[%s8443_s7 + $0xb4] sm:$0xf] }
 0x4d8   :  { %v2310_v25 = vadd.f32 %v2309_v31, %v7205_v28  ;;  %v4428_v31 = vld [vmem:[%s8443_s7 + $0x90] sm:$0xf] }
 0x4d9   :  { %2849 = vmatpush.bf16.msrb.mxu1 %v4453_v54  ;;  %v4429_v45 = vor.u32 %v4757_v50, %v4428_v31  ;;  %v2152_v54 = vmax.f32 %v2098_v14, 0.0  ;;  %v4742_v14 = vld [vmem:[%s8443_s7 + $0x24] sm:$0xf] }
 0x4da   :  { %v2475_v34 = vmax.f32 %v2310_v25, 0.0  ;;  %v7349_v25 = vpop.f32.mrf.mxu3  ;;  %v4758_v50 = vld [vmem:[%s8443_s7 + $0xa4] sm:$0xf] }
 0x4dd   :  { %2850 = vmatpush.bf16.msrb.mxu1 %v4445_v32 }
 0x4df   :  { %v2311_v22 = vpop.f32.mrf.mxu2 }
 0x4e0   :  { %v2312_v26 = vadd.f32 %v2311_v22, %v7205_v28 }
 0x4e2   :  { %v2477_v42 = vmax.f32 %v2312_v26, 0.0  ;;  %v4382_v26 = vld [vmem:[%s8443_s7 + $0x38] sm:$0xf0] }
 0x4e4   :  { %v7289_v19 = vpack.c.bf16 %v2477_v42, %v2475_v34  ;;  %v4385_v34 = vor.u32 %v4744_v39, %v4382_v26  ;;  %v4446_v42 = vld [vmem:[%s8443_s7 + $0xb8] sm:$0xf0]  ;;  %v2111_v39 = vadd.f32 %v7057_v18, %v7287_v44  ;;  %v4564_v44 = vld [vmem:[%s8443_s7 + $0x160] sm:$0xf] }
 0x4e5   :  { %v4449_v32 = vor.u32 %v4760_v17, %v4446_v42 }
 0x4e6   :  { %2397 = vmatmul.bf16.gmra.mxu3 %v7096_v53  ;;  %2780 = vmatmul.bf16.gmra.mxu0 %v7289_v19  ;;  %v2157_v17 = vmax.f32 %v2111_v39, 0.0  ;;  %v4620_v39 = vld [vmem:[%s8443_s7 + $0x1d0] sm:$0xf] }
 0x4e7   :  { %v2314_v1 = vpop.f32.mrf.mxu2  ;;  %2939 = vmatpush.bf16.msra.mxu2 %v4385_v34  ;;  %3028 = vmatpush.bf16.msra.mxu3 %v4449_v32  ;;  %v7420_v34 = vperm.slane %v7202_v0, 1  ;;  %v4783_v0 = vld [vmem:[%s8443_s7 + $0x164] sm:$0xf0] }
 0x4e8   :  { %v2315_v36 = vadd.f32 %v2314_v1, %v7205_v28  ;;  %v7369_v1 = vpop.f32.mrf.mxu3 }
 0x4ea   :  { %v2479_v62 = vmax.f32 %v2315_v36, 0.0 }
 0x4ef   :  { %v2316_v12 = vpop.f32.mrf.mxu2 }
 0x4f0   :  { %v2317_v53 = vadd.f32 %v2316_v12, %v7205_v28 }
 0x4f2   :  { %v2481_v13 = vmax.f32 %v2317_v53, 0.0  ;;  %v2090_v41 = vpop.f32.mrf.mxu1  ;;  %v2101_v53 = vadd.f32 %v7057_v18, %v7241_v4  ;;  %v4572_v4 = vld [vmem:[%s8443_s7 + $0x170] sm:$0xf] }
 0x4f3   :  { %v2091_v46 = vadd.f32 %v7057_v18, %v2090_v41  ;;  %v7377_v41 = vpop.f32.mrf.mxu3 }
 0x4f4   :  { %v7311_v49 = vpack.c.bf16 %v2481_v13, %v2479_v62  ;;  %v2153_v27 = vmax.f32 %v2101_v53, 0.0  ;;  %v4565_v53 = vor.u32 %v4783_v0, %v4564_v44 }
 0x4f5   :  { %v2149_v2 = vmax.f32 %v2091_v46, 0.0  ;;  %v2108_v46 = vadd.f32 %v7057_v18, %v7277_v40 }
 0x4f6   :  { %2402 = vmatmul.bf16.gmra.mxu3 %v7107_v58  ;;  %2785 = vmatmul.bf16.gmra.mxu0 %v7311_v49  ;;  %v4436_v58 = vld [vmem:[%s8443_s7 + $0xa0] sm:$0xf]  ;;  %v2176_v10 = vpack.c.bf16 %v2154_v47, %v2153_v27  ;;  %v4799_v27 = vld [vmem:[%s8443_s7 + $0x1e4] sm:$0xf0] }
 0x4f7   :  { %v2319_v35 = vpop.f32.mrf.mxu2  ;;  %v4437_v51 = vor.u32 %v4759_v55, %v4436_v58  ;;  %v4801_v58 = vld [vmem:[%s8443_s7 + $0x1f4] sm:$0xf0]  ;;  %v2106_v55 = vadd.f32 %v7057_v18, %v7258_v43  ;;  %v4374_v43 = vld [vmem:[%s8443_s7 + $0x28] sm:$0xf0]  ;;  %v4628_v47 = vld [vmem:[%s8443_s7 + $0x1e0] sm:$0xf] }
 0x4f8   :  { %v2320_v63 = vadd.f32 %v2319_v35, %v7205_v28  ;;  %v4377_v31 = vor.u32 %v4742_v14, %v4374_v43 }
 0x4f9   :  { %2851 = vmatpush.bf16.msrb.mxu1 %v4437_v51  ;;  %v2155_v40 = vmax.f32 %v2106_v55, 0.0 }
 0x4fa   :  { %v2092_v7 = vpop.f32.mrf.mxu1  ;;  %v2483_v9 = vmax.f32 %v2320_v63, 0.0  ;;  %2940 = vmatpush.bf16.msra.mxu2 %v4377_v31 }
 0x4fb   :  { %v2093_v56 = vadd.f32 %v7057_v18, %v2092_v7  ;;  %v4573_v7 = vor.u32 %v4785_v20, %v4572_v4 }
 0x4fd   :  { %v2150_v38 = vmax.f32 %v2093_v56, 0.0  ;;  %2852 = vmatpush.bf16.msrb.mxu1 %v4429_v45  ;;  %v4636_v56 = vld [vmem:[%s8443_s7 + $0x1f0] sm:$0xf]  ;;  %3409 = vmatpush.bf16.msra.mxu0 %v4573_v7  ;;  %v4438_v45 = vld [vmem:[%s8443_s7 + $0xa8] sm:$0xf0] }
 0x4ff   :  { %v2321_v29 = vpop.f32.mrf.mxu2  ;;  %v2174_v48 = vpack.c.bf16 %v2150_v38, %v2149_v2  ;;  %v4637_v2 = vor.u32 %v4801_v58, %v4636_v56  ;;  %v2156_v38 = vmax.f32 %v2108_v46, 0.0  ;;  %v4740_v56 = vld [vmem:[%s8443_s7 + $0x14] sm:$0xf] }
 0x500   :  { %v2322_v23 = vadd.f32 %v2321_v29, %v7205_v28 }
 0x501   :  { %2328 = vmatmul.bf16.gmra.mxu2 %v2174_v48  ;;  %v2177_v63 = vpack.c.bf16 %v2156_v38, %v2155_v40  ;;  %3410 = vmatpush.bf16.msra.mxu0 %v4565_v53  ;;  %v2123_v38 = vadd.f32 %v7057_v18, %v7349_v25 }
 0x502   :  { %v2485_v33 = vmax.f32 %v2322_v23, 0.0 }
 0x504   :  { %v7333_v6 = vpack.c.bf16 %v2485_v33, %v2483_v9 }
 0x506   :  { %2407 = vmatmul.bf16.gmra.mxu3 %v7120_v15  ;;  %2790 = vmatmul.bf16.gmra.mxu0 %v7333_v6  ;;  %v2151_v15 = vmax.f32 %v2096_v59, 0.0 }
 0x508   :  { %v2175_v22 = vpack.c.bf16 %v2152_v54, %v2151_v15  ;;  %v2113_v54 = vadd.f32 %v7057_v18, %v7299_v30  ;;  %v4441_v15 = vor.u32 %v4758_v50, %v4438_v45  ;;  %v2128_v45 = vadd.f32 %v7057_v18, %v7377_v41 }
 0x509   :  { %v2126_v41 = vadd.f32 %v7057_v18, %v7369_v1 }
 0x50a   :  { %3029 = vmatpush.bf16.msra.mxu3 %v4441_v15 }
 0x511   :  { %2333 = vmatmul.bf16.gmra.mxu2 %v2175_v22 }
 0x516   :  { %2412 = vmatmul.bf16.gmra.mxu3 %v7191_v5  ;;  %v4755_v5 = vld [vmem:[%s8443_s7 + $0x84] sm:$0xf0] }
 0x517   :  { %v4421_v12 = vor.u32 %v4755_v5, %v4420_v52 }
 0x518   :  { %v2324_v36 = vpop.f32.mrf.mxu2 }
 0x519   :  { %2853 = vmatpush.bf16.msrb.mxu1 %v4421_v12  ;;  %v2325_v62 = vadd.f32 %v2324_v36, %v7205_v28  ;;  %v2118_v12 = vadd.f32 %v7057_v18, %v7329_v37 }
 0x51b   :  { %v2487_v8 = vmax.f32 %v2325_v62, 0.0  ;;  %v2116_v62 = vadd.f32 %v7057_v18, %v7309_v21  ;;  %v4366_v21 = vld [vmem:[%s8443_s7 + $0x18] sm:$0xf0] }
 0x51c   :  { %v4369_v58 = vor.u32 %v4740_v56, %v4366_v21 }
 0x51d   :  { %3498 = vmatpush.bf16.msra.mxu1 %v4637_v2  ;;  %v2159_v37 = vmax.f32 %v2116_v62, 0.0  ;;  %v4430_v2 = vld [vmem:[%s8443_s7 + $0x98] sm:$0xf0] }
 0x51e   :  { %2941 = vmatpush.bf16.msra.mxu2 %v4369_v58  ;;  %v4612_v58 = vld [vmem:[%s8443_s7 + $0x1c0] sm:$0xf] }
 0x520   :  { %v2326_v13 = vpop.f32.mrf.mxu2 }
 0x521   :  { %v2327_v61 = vadd.f32 %v2326_v13, %v7205_v28  ;;  %2338 = vmatmul.bf16.gmra.mxu2 %v2176_v10  ;;  %v4629_v13 = vor.u32 %v4799_v27, %v4628_v47  ;;  %v4754_v47 = vld [vmem:[%s8443_s7 + $0x84] sm:$0xf]  ;;  %v4422_v27 = vld [vmem:[%s8443_s7 + $0x88] sm:$0xf0] }
 0x522   :  { %v4425_v62 = vor.u32 %v4754_v47, %v4422_v27 }
 0x523   :  { %v2489_v3 = vmax.f32 %v2327_v61, 0.0  ;;  %v2160_v61 = vmax.f32 %v2118_v12, 0.0  ;;  %3499 = vmatpush.bf16.msra.mxu1 %v4629_v13 }
 0x525   :  { %v7380_v35 = vpack.c.bf16 %v2489_v3, %v2487_v8  ;;  %v2179_v8 = vpack.c.bf16 %v2160_v61, %v2159_v37 }
 0x526   :  { %2417 = vmatmul.bf16.gmra.mxu3 %v2174_v48 }
 0x527   :  { %2795 = vmatmul.bf16.gmra.mxu0 %v7380_v35 }
 0x529   :  { %v2130_v51 = vpop.f32.mrf.mxu3 }
 0x52a   :  { %v2131_v29 = vadd.f32 %v7057_v18, %v2130_v51  ;;  %v4756_v51 = vld [vmem:[%s8443_s7 + $0x94] sm:$0xf] }
 0x52b   :  { %v4433_v40 = vor.u32 %v4756_v51, %v4430_v2  ;;  %v4795_v51 = vld [vmem:[%s8443_s7 + $0x1c4] sm:$0xf0] }
 0x52c   :  { %v2165_v9 = vmax.f32 %v2131_v29, 0.0 }
 0x52d   :  { %3030 = vmatpush.bf16.msra.mxu3 %v4433_v40 }
 0x531   :  { %v2132_v48 = vpop.f32.mrf.mxu3  ;;  %2343 = vmatmul.bf16.gmra.mxu2 %v2177_v63  ;;  %3031 = vmatpush.bf16.msra.mxu3 %v4425_v62 }
 0x532   :  { %v2133_v23 = vadd.f32 %v7057_v18, %v2132_v48  ;;  %v2162_v48 = vmax.f32 %v2123_v38, 0.0  ;;  %v4613_v38 = vor.u32 %v4795_v51, %v4612_v58 }
 0x533   :  { %v7513_v56 = vpop.f32.mrf.mxu0 }
 0x534   :  { %v2166_v33 = vmax.f32 %v2133_v23, 0.0 }
 0x536   :  { %2422 = vmatmul.bf16.gmra.mxu3 %v2175_v22  ;;  %v7413_v59 = vpack.c.bf16 %v2166_v33, %v2165_v9  ;;  %v2158_v22 = vmax.f32 %v2113_v54, 0.0  ;;  %v4781_v54 = vld [vmem:[%s8443_s7 + $0x154] sm:$0xf0] }
 0x538   :  { %v2178_v42 = vpack.c.bf16 %v2158_v22, %v2157_v17 }
 0x539   :  { %v2383_v26 = vpop.f32.mrf.mxu3 }
 0x53a   :  { %v2384_v52 = vadd.f32 %v2383_v26, %v7420_v34  ;;  %v4797_v26 = vld [vmem:[%s8443_s7 + $0x1d4] sm:$0xf0] }
 0x53b   :  { %v4621_v17 = vor.u32 %v4797_v26, %v4620_v39  ;;  %v4800_v26 = vld [vmem:[%s8443_s7 + $0x1f4] sm:$0xf] }
 0x53c   :  { %v2464_v30 = vmax.f32 %v2384_v52, 0.0  ;;  %v4738_v52 = vld [vmem:[%s8443_s7 + $0x4] sm:$0xf] }
 0x53d   :  { %3500 = vmatpush.bf16.msra.mxu1 %v4621_v17 }
 0x541   :  { %2348 = vmatmul.bf16.gmra.mxu2 %v2178_v42  ;;  %v2385_v60 = vpop.f32.mrf.mxu3  ;;  %3501 = vmatpush.bf16.msra.mxu1 %v4613_v38 }
 0x542   :  { %v2386_v32 = vadd.f32 %v2385_v60, %v7420_v34  ;;  %v4358_v60 = vld [vmem:[%s8443_s7 + $0x8] sm:$0xf0] }
 0x544   :  { %v2466_v5 = vmax.f32 %v2386_v32, 0.0  ;;  %v2163_v32 = vmax.f32 %v2126_v41, 0.0  ;;  %v4638_v41 = vld [vmem:[%s8443_s7 + $0x1f8] sm:$0xf0] }
 0x545   :  { %v4641_v17 = vor.u32 %v4800_v26, %v4638_v41  ;;  %v7604_v26 = vld [vmem:[#allocation6] ss:$2 sm:$0x3] }
 0x546   :  { %2427 = vmatmul.bf16.gmra.mxu3 %v2176_v10  ;;  %v7424_v36 = vpack.c.bf16 %v2466_v5, %v2464_v30  ;;  %v4361_v30 = vor.u32 %v4738_v52, %v4358_v60 }
 0x547   :  { %3676 = vmatpush.bf16.msrb.mxu3 %v4641_v17 }
 0x548   :  { %2854 = vmatmul.bf16.vlgmr.msrb.gmra.mxu1 %v7424_v36  ;;  %2942 = vmatpush.bf16.msra.mxu2 %v4361_v30 }
 0x549   :  { %v2388_v10 = vpop.f32.mrf.mxu3 }
 0x54a   :  { %v2389_v3 = vadd.f32 %v2388_v10, %v7420_v34 }
 0x54c   :  { %v2468_v46 = vmax.f32 %v2389_v3, 0.0 }
 0x551   :  { %2353 = vmatmul.bf16.gmra.mxu2 %v2179_v8  ;;  %v2390_v4 = vpop.f32.mrf.mxu3 }
 0x552   :  { %v2391_v20 = vadd.f32 %v2390_v4, %v7420_v34 }
 0x554   :  { %v2470_v7 = vmax.f32 %v2391_v20, 0.0 }
 0x556   :  { %2432 = vmatmul.bf16.gmra.mxu3 %v2177_v63  ;;  %v7451_v55 = vpack.c.bf16 %v2470_v7, %v2468_v46  ;;  %v2121_v63 = vadd.f32 %v7057_v18, %v7335_v24  ;;  %v4556_v24 = vld [vmem:[%s8443_s7 + $0x150] sm:$0xf]  ;;  %v4548_v46 = vld [vmem:[%s8443_s7 + $0x140] sm:$0xf]  ;;  %v4779_v7 = vld [vmem:[%s8443_s7 + $0x144] sm:$0xf0] }
 0x557   :  { %v4557_v15 = vor.u32 %v4781_v54, %v4556_v24  ;;  %v4549_v21 = vor.u32 %v4779_v7, %v4548_v46 }
 0x558   :  { %2859 = vmatmul.bf16.gmra.mxu1 %v7451_v55  ;;  %v2161_v23 = vmax.f32 %v2121_v63, 0.0 }
 0x559   :  { %v2393_v29 = vpop.f32.mrf.mxu3  ;;  %3411 = vmatpush.bf16.msra.mxu0 %v4557_v15  ;;  %v4784_v15 = vld [vmem:[%s8443_s7 + $0x174] sm:$0xf] }
 0x55a   :  { %v2180_v9 = vpack.c.bf16 %v2162_v48, %v2161_v23  ;;  %v2394_v33 = vadd.f32 %v2393_v29, %v7420_v34 }
 0x55c   :  { %v2472_v31 = vmax.f32 %v2394_v33, 0.0 }
 0x55d   :  { %3412 = vmatpush.bf16.msra.mxu0 %v4549_v21 }
 0x561   :  { %2358 = vmatmul.bf16.gmra.mxu2 %v2180_v9  ;;  %v2395_v14 = vpop.f32.mrf.mxu3 }
 0x562   :  { %v2396_v43 = vadd.f32 %v2395_v14, %v7420_v34 }
 0x564   :  { %v2474_v25 = vmax.f32 %v2396_v43, 0.0  ;;  %v7528_v43 = vpop.f32.mrf.mxu0 }
 0x566   :  { %2437 = vmatmul.bf16.gmra.mxu3 %v2178_v42  ;;  %v7466_v50 = vpack.c.bf16 %v2474_v25, %v2472_v31  ;;  %v2164_v42 = vmax.f32 %v2128_v45, 0.0 }
 0x568   :  { %2864 = vmatmul.bf16.gmra.mxu1 %v7466_v50  ;;  %v2181_v5 = vpack.c.bf16 %v2164_v42, %v2163_v32 }
 0x569   :  { %v2398_v22 = vpop.f32.mrf.mxu3 }
 0x56a   :  { %v2399_v44 = vadd.f32 %v2398_v22, %v7420_v34 }
 0x56c   :  { %v2476_v0 = vmax.f32 %v2399_v44, 0.0  ;;  %v7548_v52 = vpop.f32.mrf.mxu0 }
 0x571   :  { %2363 = vmatmul.bf16.gmra.mxu2 %v2181_v5  ;;  %v2400_v18 = vpop.f32.mrf.mxu3 }
 0x572   :  { %v2401_v1 = vadd.f32 %v2400_v18, %v7420_v34 }
 0x574   :  { %v2478_v12 = vmax.f32 %v2401_v1, 0.0  ;;  %v7557_v62 = vpop.f32.mrf.mxu0 }
 0x576   :  { %2442 = vmatmul.bf16.gmra.mxu3 %v2179_v8  ;;  %v7493_v53 = vpack.c.bf16 %v2478_v12, %v2476_v0 }
 0x578   :  { %2869 = vmatmul.bf16.gmra.mxu1 %v7493_v53 }
 0x579   :  { %v2403_v10 = vpop.f32.mrf.mxu3 }
 0x57a   :  { %v2404_v13 = vadd.f32 %v2403_v10, %v7420_v34 }
 0x57c   :  { %v2480_v8 = vmax.f32 %v2404_v13, 0.0  ;;  %v4777_v13 = vld [vmem:[%s8443_s7 + $0x134] sm:$0xf0]  ;;  %v7577_v51 = vpop.f32.mrf.mxu0 }
 0x581   :  { %2368 = vmatmul.bf16.gmra.mxu2 %v7413_v59  ;;  %v2405_v61 = vpop.f32.mrf.mxu3 }
 0x582   :  { %v2406_v37 = vadd.f32 %v2405_v61, %v7420_v34  ;;  %v4604_v61 = vld [vmem:[%s8443_s7 + $0x1b0] sm:$0xf] }
 0x584   :  { %v2482_v3 = vmax.f32 %v2406_v37, 0.0  ;;  %v2329_v4 = vpop.f32.mrf.mxu2 }
 0x585   :  { %v2330_v40 = vadd.f32 %v2329_v4, %v7205_v28 }
 0x586   :  { %2447 = vmatmul.bf16.gmra.mxu3 %v2180_v9  ;;  %v7505_v20 = vpack.c.bf16 %v2482_v3, %v2480_v8 }
 0x587   :  { %v2491_v48 = vmax.f32 %v2330_v40, 0.0 }
 0x588   :  { %2874 = vmatmul.bf16.gmra.mxu1 %v7505_v20 }
 0x589   :  { %v2408_v2 = vpop.f32.mrf.mxu3 }
 0x58a   :  { %v2409_v9 = vadd.f32 %v2408_v2, %v7420_v34 }
 0x58c   :  { %v2331_v63 = vpop.f32.mrf.mxu2  ;;  %v2484_v25 = vmax.f32 %v2409_v9, 0.0 }
 0x58d   :  { %v2332_v29 = vadd.f32 %v2331_v63, %v7205_v28 }
 0x58f   :  { %v2493_v23 = vmax.f32 %v2332_v29, 0.0 }
 0x591   :  { %v2410_v33 = vpop.f32.mrf.mxu3  ;;  %2943 = vmatmul.bf16.vlgmr.msra.gmra.mxu2 %v7223_v11  ;;  %v7526_v14 = vpack.c.bf16 %v2493_v23, %v2491_v48  ;;  %v4574_v11 = vld [vmem:[%s8443_s7 + $0x178] sm:$0xf0] }
 0x592   :  { %v2411_v31 = vadd.f32 %v2410_v33, %v7420_v34  ;;  %v4577_v39 = vor.u32 %v4784_v15, %v4574_v11  ;;  %v4782_v33 = vld [vmem:[%s8443_s7 + $0x164] sm:$0xf]  ;;  %v7601_v15 = vpop.f32.mrf.mxu0 }
 0x593   :  { %2800 = vmatmul.bf16.gmra.mxu0 %v7526_v14 }
 0x594   :  { %v2486_v45 = vmax.f32 %v2411_v31, 0.0  ;;  %v2334_v24 = vpop.f32.mrf.mxu2  ;;  %3587 = vmatpush.bf16.msrb.mxu2 %v4577_v39 }
 0x595   :  { %v2335_v42 = vadd.f32 %v2334_v24, %v7205_v28 }
 0x596   :  { %2452 = vmatmul.bf16.gmra.mxu3 %v2181_v5  ;;  %v7532_v54 = vpack.c.bf16 %v2486_v45, %v2484_v25  ;;  %v4798_v25 = vld [vmem:[%s8443_s7 + $0x1e4] sm:$0xf] }
 0x597   :  { %v2495_v30 = vmax.f32 %v2335_v42, 0.0  ;;  %v7608_v42 = vperm.slane %v7604_v26, 0 }
 0x598   :  { %2879 = vmatmul.bf16.gmra.mxu1 %v7532_v54 }
 0x599   :  { %v2413_v22 = vpop.f32.mrf.mxu3 }
 0x59a   :  { %v2414_v44 = vadd.f32 %v2413_v22, %v7420_v34 }
 0x59c   :  { %v2336_v60 = vpop.f32.mrf.mxu2  ;;  %v2488_v12 = vmax.f32 %v2414_v44, 0.0  ;;  %v2767_v44 = vadd.f32 %v7513_v56, %v7608_v42  ;;  %v4775_v56 = vld [vmem:[%s8443_s7 + $0x124] sm:$0xf0] }
 0x59d   :  { %v2337_v32 = vadd.f32 %v2336_v60, %v7205_v28 }
 0x59f   :  { %v2497_v5 = vmax.f32 %v2337_v32, 0.0 }
 0x5a1   :  { %v2415_v18 = vpop.f32.mrf.mxu3  ;;  %2948 = vmatmul.bf16.gmra.mxu2 %v7245_v57  ;;  %v7553_v1 = vpack.c.bf16 %v2497_v5, %v2495_v30  ;;  %v4540_v57 = vld [vmem:[%s8443_s7 + $0x130] sm:$0xf] }
 0x5a2   :  { %v2416_v0 = vadd.f32 %v2415_v18, %v7420_v34  ;;  %v4541_v8 = vor.u32 %v4777_v13, %v4540_v57  ;;  %v7618_v18 = vpop.f32.mrf.mxu0 }
 0x5a3   :  { %2805 = vmatmul.bf16.gmra.mxu0 %v7553_v1 }
 0x5a4   :  { %v2490_v47 = vmax.f32 %v2416_v0, 0.0  ;;  %v2339_v27 = vpop.f32.mrf.mxu2  ;;  %3413 = vmatpush.bf16.msra.mxu0 %v4541_v8  ;;  %v4596_v8 = vld [vmem:[%s8443_s7 + $0x1a0] sm:$0xf] }
 0x5a5   :  { %v2340_v4 = vadd.f32 %v2339_v27, %v7205_v28 }
 0x5a6   :  { %2457 = vmatmul.bf16.gmra.mxu3 %v7413_v59  ;;  %v7560_v10 = vpack.c.bf16 %v2490_v47, %v2488_v12  ;;  %v4793_v59 = vld [vmem:[%s8443_s7 + $0x1b4] sm:$0xf0] }
 0x5a7   :  { %v4605_v3 = vor.u32 %v4793_v59, %v4604_v61  ;;  %v2499_v21 = vmax.f32 %v2340_v4, 0.0  ;;  %v2769_v4 = vadd.f32 %v7528_v43, %v7608_v42 }
 0x5a8   :  { %2884 = vmatmul.bf16.gmra.mxu1 %v7560_v10 }
 0x5a9   :  { %v2418_v37 = vpop.f32.mrf.mxu3  ;;  %3502 = vmatpush.bf16.msra.mxu1 %v4605_v3 }
 0x5aa   :  { %v2419_v2 = vadd.f32 %v2418_v37, %v7420_v34 }
 0x5ac   :  { %v2341_v46 = vpop.f32.mrf.mxu2  ;;  %v2492_v29 = vmax.f32 %v2419_v2, 0.0 }
 0x5ad   :  { %v2342_v7 = vadd.f32 %v2341_v46, %v7205_v28 }
 0x5af   :  { %v2501_v58 = vmax.f32 %v2342_v7, 0.0 }
 0x5b1   :  { %v2420_v38 = vpop.f32.mrf.mxu3  ;;  %2953 = vmatmul.bf16.gmra.mxu2 %v7261_v16  ;;  %v7581_v40 = vpack.c.bf16 %v2501_v58, %v2499_v21  ;;  %v4566_v16 = vld [vmem:[%s8443_s7 + $0x168] sm:$0xf0]  ;;  %v7640_v58 = vpop.f32.mrf.mxu0 }
 0x5b2   :  { %v2421_v63 = vadd.f32 %v2420_v38, %v7420_v34  ;;  %v4569_v31 = vor.u32 %v4782_v33, %v4566_v16 }
 0x5b3   :  { %2810 = vmatmul.bf16.gmra.mxu0 %v7581_v40 }
 0x5b4   :  { %v2494_v48 = vmax.f32 %v2421_v63, 0.0  ;;  %v2344_v23 = vpop.f32.mrf.mxu2  ;;  %3588 = vmatpush.bf16.msrb.mxu2 %v4569_v31 }
 0x5b5   :  { %v2345_v11 = vadd.f32 %v2344_v23, %v7205_v28 }
 0x5b6   :  { %3032 = vmatmul.bf16.vlgmr.msra.gmra.mxu3 %v7424_v36  ;;  %v7586_v9 = vpack.c.bf16 %v2494_v48, %v2492_v29  ;;  %v4630_v36 = vld [vmem:[%s8443_s7 + $0x1e8] sm:$0xf0] }
 0x5b7   :  { %v4633_v24 = vor.u32 %v4798_v25, %v4630_v36  ;;  %v2503_v22 = vmax.f32 %v2345_v11, 0.0  ;;  %v2772_v25 = vadd.f32 %v7548_v52, %v7608_v42 }
 0x5b8   :  { %2889 = vmatmul.bf16.gmra.mxu1 %v7586_v9 }
 0x5b9   :  { %v2423_v45 = vpop.f32.mrf.mxu3  ;;  %3677 = vmatpush.bf16.msrb.mxu3 %v4633_v24 }
 0x5ba   :  { %v2424_v60 = vadd.f32 %v2423_v45, %v7420_v34 }
 0x5bc   :  { %v2346_v39 = vpop.f32.mrf.mxu2  ;;  %v2496_v0 = vmax.f32 %v2424_v60, 0.0  ;;  %v4796_v60 = vld [vmem:[%s8443_s7 + $0x1d4] sm:$0xf] }
 0x5bd   :  { %v2347_v41 = vadd.f32 %v2346_v39, %v7205_v28 }
 0x5bf   :  { %v2505_v17 = vmax.f32 %v2347_v41, 0.0 }
 0x5c1   :  { %v2425_v32 = vpop.f32.mrf.mxu3  ;;  %2958 = vmatmul.bf16.gmra.mxu2 %v7289_v19  ;;  %v7612_v30 = vpack.c.bf16 %v2505_v17, %v2503_v22  ;;  %v4532_v19 = vld [vmem:[%s8443_s7 + $0x120] sm:$0xf]  ;;  %v4558_v22 = vld [vmem:[%s8443_s7 + $0x158] sm:$0xf0]  ;;  %v7661_v17 = vpop.f32.mrf.mxu0 }
 0x5c2   :  { %v2426_v5 = vadd.f32 %v2425_v32, %v7420_v34  ;;  %v4533_v37 = vor.u32 %v4775_v56, %v4532_v19 }
 0x5c3   :  { %2815 = vmatmul.bf16.gmra.mxu0 %v7612_v30 }
 0x5c4   :  { %v2498_v12 = vmax.f32 %v2426_v5, 0.0  ;;  %v2349_v47 = vpop.f32.mrf.mxu2  ;;  %3414 = vmatpush.bf16.msra.mxu0 %v4533_v37 }
 0x5c5   :  { %v2855_v27 = vpop.f32.mrf.mxu1  ;;  %v2350_v3 = vadd.f32 %v2349_v47, %v7205_v28 }
 0x5c6   :  { %v2856_v57 = vadd.f32 %v2855_v27, %v2767_v44  ;;  %3037 = vmatmul.bf16.gmra.mxu3 %v7451_v55  ;;  %v7621_v13 = vpack.c.bf16 %v2498_v12, %v2496_v0  ;;  %v4791_v55 = vld [vmem:[%s8443_s7 + $0x1a4] sm:$0xf0]  ;;  %v2774_v0 = vadd.f32 %v7557_v62, %v7608_v42 }
 0x5c7   :  { %v4597_v59 = vor.u32 %v4791_v55, %v4596_v8  ;;  %v2507_v38 = vmax.f32 %v2350_v3, 0.0 }
 0x5c8   :  { %2894 = vmatmul.bf16.gmra.mxu1 %v7621_v13  ;;  %v3113_v29 = vmax.f32 %v2856_v57, 0.0 }
 0x5c9   :  { %v2428_v61 = vpop.f32.mrf.mxu3  ;;  %3503 = vmatpush.bf16.msra.mxu1 %v4597_v59  ;;  %v7678_v3 = vpop.f32.mrf.mxu0 }
 0x5ca   :  { %v2429_v48 = vadd.f32 %v2428_v61, %v7420_v34 }
 0x5cc   :  { %v2351_v46 = vpop.f32.mrf.mxu2  ;;  %v2500_v36 = vmax.f32 %v2429_v48, 0.0  ;;  %v4773_v48 = vld [vmem:[%s8443_s7 + $0x114] sm:$0xf0] }
 0x5cd   :  { %v2352_v7 = vadd.f32 %v2351_v46, %v7205_v28  ;;  %v2857_v21 = vpop.f32.mrf.mxu1  ;;  %v2777_v46 = vadd.f32 %v7577_v51, %v7608_v42 }
 0x5ce   :  { %v2858_v2 = vadd.f32 %v2857_v21, %v2769_v4 }
 0x5cf   :  { %v2509_v63 = vmax.f32 %v2352_v7, 0.0 }
 0x5d0   :  { %v3115_v23 = vmax.f32 %v2858_v2, 0.0 }
 0x5d1   :  { %v2430_v33 = vpop.f32.mrf.mxu3  ;;  %2963 = vmatmul.bf16.gmra.mxu2 %v7311_v49  ;;  %v7644_v16 = vpack.c.bf16 %v2509_v63, %v2507_v38  ;;  %v4780_v49 = vld [vmem:[%s8443_s7 + $0x154] sm:$0xf] }
 0x5d2   :  { %v7646_v43 = vpack.c.bf16 %v3115_v23, %v3113_v29  ;;  %v2431_v31 = vadd.f32 %v2430_v33, %v7420_v34  ;;  %v4561_v52 = vor.u32 %v4780_v49, %v4558_v22  ;;  %v4524_v29 = vld [vmem:[%s8443_s7 + $0x110] sm:$0xf] }
 0x5d3   :  { %2820 = vmatmul.bf16.gmra.mxu0 %v7644_v16  ;;  %v4525_v23 = vor.u32 %v4773_v48, %v4524_v29  ;;  %v4588_v33 = vld [vmem:[%s8443_s7 + $0x190] sm:$0xf] }
 0x5d4   :  { %v2502_v45 = vmax.f32 %v2431_v31, 0.0  ;;  %v2354_v24 = vpop.f32.mrf.mxu2  ;;  %3589 = vmatpush.bf16.msrb.mxu2 %v4561_v52 }
 0x5d5   :  { %v2860_v11 = vpop.f32.mrf.mxu1  ;;  %v2355_v44 = vadd.f32 %v2354_v24, %v7205_v28  ;;  %3415 = vmatpush.bf16.msra.mxu0 %v4525_v23  ;;  %v4771_v23 = vld [vmem:[%s8443_s7 + $0x104] sm:$0xf0] }
 0x5d6   :  { %v2861_v39 = vadd.f32 %v2860_v11, %v2772_v25  ;;  %3042 = vmatmul.bf16.gmra.mxu3 %v7466_v50  ;;  %v7653_v41 = vpack.c.bf16 %v2502_v45, %v2500_v36  ;;  %v4622_v50 = vld [vmem:[%s8443_s7 + $0x1d8] sm:$0xf0]  ;;  %v2779_v36 = vadd.f32 %v7601_v15, %v7608_v42  ;;  %v7705_v45 = vpop.f32.mrf.mxu0 }
 0x5d7   :  { %v4625_v5 = vor.u32 %v4796_v60, %v4622_v50  ;;  %v2511_v19 = vmax.f32 %v2355_v44, 0.0 }
 0x5d8   :  { %2899 = vmatmul.bf16.gmra.mxu1 %v7653_v41  ;;  %v3117_v61 = vmax.f32 %v2861_v39, 0.0 }
 0x5d9   :  { %v2433_v32 = vpop.f32.mrf.mxu3  ;;  %3678 = vmatpush.bf16.msrb.mxu3 %v4625_v5 }
 0x5da   :  { %v2434_v37 = vadd.f32 %v2433_v32, %v7420_v34 }
 0x5dc   :  { %v2356_v12 = vpop.f32.mrf.mxu2  ;;  %v2504_v7 = vmax.f32 %v2434_v37, 0.0 }
 0x5dd   :  { %v2357_v47 = vadd.f32 %v2356_v12, %v7205_v28  ;;  %v2862_v27 = vpop.f32.mrf.mxu1  ;;  %v2782_v12 = vadd.f32 %v7618_v18, %v7608_v42 }
 0x5de   :  { %v2863_v57 = vadd.f32 %v2862_v27, %v2774_v0 }
 0x5df   :  { %v2513_v56 = vmax.f32 %v2357_v47, 0.0 }
 0x5e0   :  { %v3119_v8 = vmax.f32 %v2863_v57, 0.0 }
 0x5e1   :  { %v2435_v55 = vpop.f32.mrf.mxu3  ;;  %2968 = vmatmul.bf16.gmra.mxu2 %v7333_v6  ;;  %v7676_v59 = vpack.c.bf16 %v2513_v56, %v2511_v19  ;;  %v4778_v56 = vld [vmem:[%s8443_s7 + $0x144] sm:$0xf] }
 0x5e2   :  { %v2436_v62 = vadd.f32 %v2435_v55, %v7420_v34  ;;  %v7681_v4 = vpack.c.bf16 %v3119_v8, %v3117_v61  ;;  %v7724_v61 = vpop.f32.mrf.mxu0  ;;  %v4794_v55 = vld [vmem:[%s8443_s7 + $0x1c4] sm:$0xf] }
 0x5e3   :  { %2825 = vmatmul.bf16.gmra.mxu0 %v7676_v59 }
 0x5e4   :  { %v2506_v21 = vmax.f32 %v2436_v62, 0.0  ;;  %v2359_v2 = vpop.f32.mrf.mxu2  ;;  %v4614_v62 = vld [vmem:[%s8443_s7 + $0x1c8] sm:$0xf0] }
 0x5e5   :  { %v2865_v38 = vpop.f32.mrf.mxu1  ;;  %v2360_v25 = vadd.f32 %v2359_v2, %v7205_v28 }
 0x5e6   :  { %v2866_v63 = vadd.f32 %v2865_v38, %v2777_v46  ;;  %3047 = vmatmul.bf16.gmra.mxu3 %v7493_v53  ;;  %v7687_v6 = vpack.c.bf16 %v2506_v21, %v2504_v7  ;;  %v4789_v53 = vld [vmem:[%s8443_s7 + $0x194] sm:$0xf0]  ;;  %v4617_v7 = vor.u32 %v4794_v55, %v4614_v62 }
 0x5e7   :  { %v4589_v31 = vor.u32 %v4789_v53, %v4588_v33  ;;  %v2515_v22 = vmax.f32 %v2360_v25, 0.0 }
 0x5e8   :  { %2904 = vmatmul.bf16.gmra.mxu1 %v7687_v6  ;;  %v3121_v60 = vmax.f32 %v2866_v63, 0.0  ;;  %3679 = vmatpush.bf16.msrb.mxu3 %v4617_v7 }
 0x5e9   :  { %v2438_v51 = vpop.f32.mrf.mxu3  ;;  %3504 = vmatpush.bf16.msra.mxu1 %v4589_v31 }
 0x5ea   :  { %v2439_v50 = vadd.f32 %v2438_v51, %v7420_v34  ;;  %v7740_v29 = vpop.f32.mrf.mxu0  ;;  %v4516_v51 = vld [vmem:[%s8443_s7 + $0x100] sm:$0xf] }
 0x5eb   :  { %v4517_v31 = vor.u32 %v4771_v23, %v4516_v51 }
 0x5ec   :  { %v2361_v24 = vpop.f32.mrf.mxu2  ;;  %v2508_v47 = vmax.f32 %v2439_v50, 0.0 }
 0x5ed   :  { %v2362_v11 = vadd.f32 %v2361_v24, %v7205_v28  ;;  %v2867_v39 = vpop.f32.mrf.mxu1  ;;  %3416 = vmatpush.bf16.msra.mxu0 %v4517_v31 }
 0x5ee   :  { %v2868_v49 = vadd.f32 %v2867_v39, %v2779_v36 }
 0x5ef   :  { %v2517_v52 = vmax.f32 %v2362_v11, 0.0 }
 0x5f0   :  { %v3123_v32 = vmax.f32 %v2868_v49, 0.0 }
 0x5f1   :  { %v2440_v5 = vpop.f32.mrf.mxu3  ;;  %2973 = vmatmul.bf16.gmra.mxu2 %v7380_v35  ;;  %v7710_v44 = vpack.c.bf16 %v2517_v52, %v2515_v22  ;;  %v4550_v35 = vld [vmem:[%s8443_s7 + $0x148] sm:$0xf0]  ;;  %v2787_v22 = vadd.f32 %v7661_v17, %v7608_v42  ;;  %v4787_v17 = vld [vmem:[%s8443_s7 + $0x184] sm:$0xf0] }
 0x5f2   :  { %v2441_v15 = vadd.f32 %v2440_v5, %v7420_v34  ;;  %v7713_v0 = vpack.c.bf16 %v3123_v32, %v3121_v60  ;;  %v4553_v18 = vor.u32 %v4778_v56, %v4550_v35 }
 0x5f3   :  { %2830 = vmatmul.bf16.gmra.mxu0 %v7710_v44 }
 0x5f4   :  { %v2510_v27 = vmax.f32 %v2441_v15, 0.0  ;;  %v2364_v57 = vpop.f32.mrf.mxu2  ;;  %3590 = vmatpush.bf16.msrb.mxu2 %v4553_v18  ;;  %v7761_v15 = vpop.f32.mrf.mxu0 }
 0x5f5   :  { %v2870_v19 = vpop.f32.mrf.mxu1  ;;  %v2365_v21 = vadd.f32 %v2364_v57, %v7205_v28 }
 0x5f6   :  { %v2871_v37 = vadd.f32 %v2870_v19, %v2782_v12  ;;  %3052 = vmatmul.bf16.gmra.mxu3 %v7505_v20  ;;  %v7727_v8 = vpack.c.bf16 %v2510_v27, %v2508_v47  ;;  %v2784_v20 = vadd.f32 %v7640_v58, %v7608_v42  ;;  %v4580_v47 = vld [vmem:[%s8443_s7 + $0x180] sm:$0xf] }
 0x5f7   :  { %v2519_v33 = vmax.f32 %v2365_v21, 0.0  ;;  %v4581_v27 = vor.u32 %v4787_v17, %v4580_v47 }
 0x5f8   :  { %2909 = vmatmul.bf16.gmra.mxu1 %v7727_v8  ;;  %v3125_v25 = vmax.f32 %v2871_v37, 0.0 }
 0x5f9   :  { %v2443_v46 = vpop.f32.mrf.mxu3  ;;  %3505 = vmatpush.bf16.msra.mxu1 %v4581_v27 }
 0x5fa   :  { %v2444_v58 = vadd.f32 %v2443_v46, %v7420_v34 }
 0x5fc   :  { %v2366_v2 = vpop.f32.mrf.mxu2  ;;  %v2512_v52 = vmax.f32 %v2444_v58, 0.0  ;;  %v4792_v58 = vld [vmem:[%s8443_s7 + $0x1b4] sm:$0xf] }
 0x5fd   :  { %v2367_v38 = vadd.f32 %v2366_v2, %v7205_v28  ;;  %v2872_v63 = vpop.f32.mrf.mxu1 }
 0x5fe   :  { %v2873_v48 = vadd.f32 %v2872_v63, %v2784_v20 }
 0x5ff   :  { %v2521_v53 = vmax.f32 %v2367_v38, 0.0 }
 0x600   :  { %v3127_v36 = vmax.f32 %v2873_v48, 0.0 }
 0x601   :  { %v2445_v24 = vpop.f32.mrf.mxu3  ;;  %2978 = vmatmul.bf16.gmra.mxu2 %v7526_v14  ;;  %v7750_v11 = vpack.c.bf16 %v2521_v53, %v2519_v33  ;;  %v4542_v33 = vld [vmem:[%s8443_s7 + $0x138] sm:$0xf0] }
 0x602   :  { %v2446_v39 = vadd.f32 %v2445_v24, %v7420_v34  ;;  %v7753_v49 = vpack.c.bf16 %v3127_v36, %v3125_v25  ;;  %v4606_v36 = vld [vmem:[%s8443_s7 + $0x1b8] sm:$0xf0] }
 0x603   :  { %2835 = vmatmul.bf16.gmra.mxu0 %v7750_v11 }
 0x604   :  { %v2514_v60 = vmax.f32 %v2446_v39, 0.0  ;;  %v2369_v50 = vpop.f32.mrf.mxu2  ;;  %v4609_v39 = vor.u32 %v4792_v58, %v4606_v36  ;;  %v4774_v36 = vld [vmem:[%s8443_s7 + $0x124] sm:$0xf] }
 0x605   :  { %v2875_v32 = vpop.f32.mrf.mxu1  ;;  %v2370_v57 = vadd.f32 %v2369_v50, %v7205_v28 }
 0x606   :  { %v2876_v5 = vadd.f32 %v2875_v32, %v2787_v22  ;;  %3057 = vmatmul.bf16.gmra.mxu3 %v7532_v54  ;;  %v7759_v14 = vpack.c.bf16 %v2514_v60, %v2512_v52  ;;  %v2789_v54 = vadd.f32 %v7678_v3, %v7608_v42 }
 0x607   :  { %v2523_v18 = vmax.f32 %v2370_v57, 0.0  ;;  %3680 = vmatpush.bf16.msrb.mxu3 %v4609_v39 }
 0x608   :  { %2914 = vmatmul.bf16.gmra.mxu1 %v7759_v14  ;;  %v3129_v62 = vmax.f32 %v2876_v5, 0.0 }
 0x609   :  { %v2448_v12 = vpop.f32.mrf.mxu3 }
 0x60a   :  { %v2449_v46 = vadd.f32 %v2448_v12, %v7420_v34 }
 0x60c   :  { %v2371_v19 = vpop.f32.mrf.mxu2  ;;  %v2516_v63 = vmax.f32 %v2449_v46, 0.0 }
 0x60d   :  { %v2372_v56 = vadd.f32 %v2371_v19, %v7205_v28  ;;  %v2877_v35 = vpop.f32.mrf.mxu1  ;;  %v2792_v28 = vadd.f32 %v7705_v45, %v7608_v42 }
 0x60e   :  { %v2878_v37 = vadd.f32 %v2877_v35, %v2789_v54 }
 0x60f   :  { %v2525_v55 = vmax.f32 %v2372_v56, 0.0 }
 0x610   :  { %v3131_v7 = vmax.f32 %v2878_v37, 0.0  ;;  %v7775_v21 = vpop.f32.mrf.mxu0 }
 0x611   :  { %v2450_v20 = vpop.f32.mrf.mxu3  ;;  %2983 = vmatmul.bf16.gmra.mxu2 %v7553_v1  ;;  %v7778_v2 = vpack.c.bf16 %v2525_v55, %v2523_v18  ;;  %v4776_v1 = vld [vmem:[%s8443_s7 + $0x134] sm:$0xf]  ;;  %v4809_v18 = vld [vmem:[#allocation7 + $0x38] sm:$0xff] }
 0x612   :  { %v2451_v3 = vadd.f32 %v2450_v20, %v7420_v34  ;;  %v7781_v38 = vpack.c.bf16 %v3131_v7, %v3129_v62  ;;  %v4545_v25 = vor.u32 %v4776_v1, %v4542_v33  ;;  %v4817_v62 = vld [vmem:[#allocation7 + $0x78] sm:$0xff]  ;;  %3993 = vmatpush.bf16.msrb.mxu0 %v4809_v18 }
 0x613   :  { %2840 = vmatmul.bf16.gmra.mxu0 %v7778_v2  ;;  %4082 = vmatpush.bf16.msrb.mxu1 %v4817_v62 }
 0x614   :  { %v2518_v48 = vmax.f32 %v2451_v3, 0.0  ;;  %v7786_v51 = vpop.f32.mrf.mxu2  ;;  %3591 = vmatpush.bf16.msrb.mxu2 %v4545_v25 }
 0x615   :  { %v2880_v23 = vpop.f32.mrf.mxu1 }
 0x616   :  { %v2881_v53 = vadd.f32 %v2880_v23, %v2792_v28  ;;  %3062 = vmatmul.bf16.gmra.mxu3 %v7560_v10  ;;  %v7795_v31 = vpack.c.bf16 %v2518_v48, %v2516_v63  ;;  %v2794_v10 = vadd.f32 %v7724_v61, %v7608_v42  ;;  %v2797_v61 = vadd.f32 %v7740_v29, %v7608_v42 }
 0x617   :  { %v2799_v29 = vadd.f32 %v7761_v15, %v7608_v42  ;;  %v2802_v15 = vadd.f32 %v7775_v21, %v7608_v42 }
 0x618   :  { %v7797_v45 = vpop.f32.mrf.mxu0  ;;  %2919 = vmatmul.bf16.gmra.mxu1 %v7795_v31  ;;  %v3133_v50 = vmax.f32 %v2881_v53, 0.0 }
 0x619   :  { %v2453_v24 = vpop.f32.mrf.mxu3 }
 0x61a   :  { %v2454_v32 = vadd.f32 %v2453_v24, %v7420_v34 }
 0x61c   :  { %v7808_v22 = vpop.f32.mrf.mxu2  ;;  %v2520_v57 = vmax.f32 %v2454_v32, 0.0  ;;  %v2804_v32 = vadd.f32 %v7797_v45, %v7608_v42 }
 0x61d   :  { %v2882_v52 = vpop.f32.mrf.mxu1 }
 0x61e   :  { %v2883_v60 = vadd.f32 %v2882_v52, %v2794_v10  ;;  %v4790_v10 = vld [vmem:[%s8443_s7 + $0x1a4] sm:$0xf]  ;;  %v4598_v52 = vld [vmem:[%s8443_s7 + $0x1a8] sm:$0xf0] }
 0x620   :  { %v3135_v5 = vmax.f32 %v2883_v60, 0.0  ;;  %v7811_v12 = vpop.f32.mrf.mxu0 }
 0x621   :  { %v2455_v47 = vpop.f32.mrf.mxu3  ;;  %2988 = vmatmul.bf16.gmra.mxu2 %v7581_v40 }
 0x622   :  { %v2456_v17 = vadd.f32 %v2455_v47, %v7420_v34  ;;  %v7815_v27 = vpack.c.bf16 %v3135_v5, %v3133_v50  ;;  %v4601_v50 = vor.u32 %v4790_v10, %v4598_v52 }
 0x623   :  { %3417 = vmatmul.bf16.vlgmr.msra.gmra.mxu0 %v7646_v43 }
 0x624   :  { %v2522_v54 = vmax.f32 %v2456_v17, 0.0  ;;  %v7820_v19 = vpop.f32.mrf.mxu2  ;;  %3681 = vmatpush.bf16.msrb.mxu3 %v4601_v50 }
 0x625   :  { %v2885_v56 = vpop.f32.mrf.mxu1 }
 0x626   :  { %v2886_v35 = vadd.f32 %v2885_v56, %v2797_v61  ;;  %3067 = vmatmul.bf16.gmra.mxu3 %v7586_v9  ;;  %v7823_v37 = vpack.c.bf16 %v2522_v54, %v2520_v57 }
 0x628   :  { %v7825_v40 = vpop.f32.mrf.mxu0  ;;  %2924 = vmatmul.bf16.gmra.mxu1 %v7823_v37  ;;  %v3137_v3 = vmax.f32 %v2886_v35, 0.0 }
 0x629   :  { %v2458_v55 = vpop.f32.mrf.mxu3 }
 0x62a   :  { %v2459_v9 = vadd.f32 %v2458_v55, %v7420_v34 }
 0x62c   :  { %v7830_v46 = vpop.f32.mrf.mxu2  ;;  %v2524_v33 = vmax.f32 %v2459_v9, 0.0  ;;  %v4808_v9 = vld [vmem:[#allocation7 + $0x30] sm:$0xff] }
 0x62d   :  { %v2887_v7 = vpop.f32.mrf.mxu1  ;;  %3994 = vmatpush.bf16.msrb.mxu0 %v4808_v9 }
 0x62e   :  { %v2888_v20 = vadd.f32 %v2887_v7, %v2799_v29 }
 0x630   :  { %v3139_v28 = vmax.f32 %v2888_v20, 0.0  ;;  %v7833_v63 = vpop.f32.mrf.mxu0 }
 0x631   :  { %v2460_v48 = vpop.f32.mrf.mxu3  ;;  %2993 = vmatmul.bf16.gmra.mxu2 %v7612_v30 }
 0x632   :  { %v2461_v23 = vadd.f32 %v2460_v48, %v7420_v34  ;;  %v7837_v1 = vpack.c.bf16 %v3139_v28, %v3137_v3  ;;  %v4534_v34 = vld [vmem:[%s8443_s7 + $0x128] sm:$0xf0]  ;;  %v4816_v48 = vld [vmem:[#allocation7 + $0x70] sm:$0xff] }
 0x633   :  { %3422 = vmatmul.bf16.gmra.mxu0 %v7681_v4  ;;  %v4537_v39 = vor.u32 %v4774_v36, %v4534_v34  ;;  %4083 = vmatpush.bf16.msrb.mxu1 %v4816_v48 }
 0x634   :  { %v2526_v53 = vmax.f32 %v2461_v23, 0.0  ;;  %v7842_v25 = vpop.f32.mrf.mxu2 }
 0x635   :  { %v2890_v58 = vpop.f32.mrf.mxu1  ;;  %3592 = vmatpush.bf16.msrb.mxu2 %v4537_v39 }
 0x636   :  { %v2891_v30 = vadd.f32 %v2890_v58, %v2802_v15  ;;  %3072 = vmatmul.bf16.gmra.mxu3 %v7621_v13  ;;  %v7851_v24 = vpack.c.bf16 %v2526_v53, %v2524_v33  ;;  %v7863_v13 = vperm.slane %v7604_v26, 1 }
 0x638   :  { %v7853_v21 = vpop.f32.mrf.mxu0  ;;  %2929 = vmatmul.bf16.gmra.mxu1 %v7851_v24  ;;  %v2945_v17 = vadd.f32 %v7786_v51, %v7863_v13  ;;  %v2947_v57 = vadd.f32 %v7808_v22, %v7863_v13  ;;  %v3141_v54 = vmax.f32 %v2891_v30, 0.0  ;;  %v2807_v51 = vadd.f32 %v7811_v12, %v7608_v42 }
 0x639   :  { %v3033_v60 = vpop.f32.mrf.mxu3  ;;  %v2809_v12 = vadd.f32 %v7825_v40, %v7608_v42  ;;  %v2950_v33 = vadd.f32 %v7820_v19, %v7863_v13  ;;  %v2812_v19 = vadd.f32 %v7833_v63, %v7608_v42 }
 0x63a   :  { %v3034_v56 = vadd.f32 %v3033_v60, %v2945_v17 }
 0x63c   :  { %v7867_v5 = vpop.f32.mrf.mxu2  ;;  %v3114_v62 = vmax.f32 %v3034_v56, 0.0 }
 0x63d   :  { %v2892_v47 = vpop.f32.mrf.mxu1 }
 0x63e   :  { %v2893_v61 = vadd.f32 %v2892_v47, %v2804_v32  ;;  %v4772_v32 = vld [vmem:[%s8443_s7 + $0x114] sm:$0xf] }
 0x640   :  { %v3143_v35 = vmax.f32 %v2893_v61, 0.0  ;;  %v7873_v18 = vpop.f32.mrf.mxu0 }
 0x641   :  { %2998 = vmatmul.bf16.gmra.mxu2 %v7644_v16  ;;  %v3035_v26 = vpop.f32.mrf.mxu3 }
 0x642   :  { %v3036_v55 = vadd.f32 %v3035_v26, %v2947_v57  ;;  %v7876_v45 = vpack.c.bf16 %v3143_v35, %v3141_v54  ;;  %v4788_v57 = vld [vmem:[%s8443_s7 + $0x194] sm:$0xf]  ;;  %v4590_v54 = vld [vmem:[%s8443_s7 + $0x198] sm:$0xf0] }
 0x643   :  { %3427 = vmatmul.bf16.gmra.mxu0 %v7713_v0  ;;  %v4593_v35 = vor.u32 %v4788_v57, %v4590_v54 }
 0x644   :  { %v3116_v29 = vmax.f32 %v3036_v55, 0.0  ;;  %v7881_v7 = vpop.f32.mrf.mxu2 }
 0x645   :  { %v2895_v22 = vpop.f32.mrf.mxu1  ;;  %3682 = vmatpush.bf16.msrb.mxu3 %v4593_v35 }
 0x646   :  { %v7883_v20 = vpack.c.bf16 %v3116_v29, %v3114_v62  ;;  %v2896_v3 = vadd.f32 %v2895_v22, %v2807_v51  ;;  %3077 = vmatmul.bf16.gmra.mxu3 %v7653_v41  ;;  %v2952_v41 = vadd.f32 %v7830_v46, %v7863_v13  ;;  %v2955_v51 = vadd.f32 %v7842_v25, %v7863_v13 }
 0x647   :  { %v2957_v29 = vadd.f32 %v7867_v5, %v7863_v13  ;;  %v2817_v25 = vadd.f32 %v7873_v18, %v7608_v42 }
 0x648   :  { %v7886_v16 = vpop.f32.mrf.mxu0  ;;  %3506 = vmatmul.bf16.vlgmr.msra.gmra.mxu1 %v7883_v20  ;;  %v3145_v58 = vmax.f32 %v2896_v3, 0.0 }
 0x649   :  { %v3038_v28 = vpop.f32.mrf.mxu3  ;;  %v2819_v18 = vadd.f32 %v7886_v16, %v7608_v42 }
 0x64a   :  { %v3039_v36 = vadd.f32 %v3038_v28, %v2950_v33 }
 0x64c   :  { %v7891_v23 = vpop.f32.mrf.mxu2  ;;  %v3118_v52 = vmax.f32 %v3039_v36, 0.0  ;;  %v4807_v36 = vld [vmem:[#allocation7 + $0x28] sm:$0xff] }
 0x64d   :  { %v2897_v15 = vpop.f32.mrf.mxu1  ;;  %3995 = vmatpush.bf16.msrb.mxu0 %v4807_v36  ;;  %v2962_v16 = vadd.f32 %v7891_v23, %v7863_v13 }
 0x64e   :  { %v2898_v53 = vadd.f32 %v2897_v15, %v2809_v12 }
 0x650   :  { %v3147_v34 = vmax.f32 %v2898_v53, 0.0  ;;  %v7897_v30 = vpop.f32.mrf.mxu0 }
 0x651   :  { %3003 = vmatmul.bf16.gmra.mxu2 %v7676_v59  ;;  %v3040_v39 = vpop.f32.mrf.mxu3  ;;  %v4526_v59 = vld [vmem:[%s8443_s7 + $0x118] sm:$0xf0] }
 0x652   :  { %v3041_v10 = vadd.f32 %v3040_v39, %v2952_v41  ;;  %v7900_v40 = vpack.c.bf16 %v3147_v34, %v3145_v58  ;;  %v4529_v61 = vor.u32 %v4772_v32, %v4526_v59  ;;  %v4815_v39 = vld [vmem:[#allocation7 + $0x68] sm:$0xff] }
 0x653   :  { %3432 = vmatmul.bf16.gmra.mxu0 %v7753_v49  ;;  %4084 = vmatpush.bf16.msrb.mxu1 %v4815_v39 }
 0x654   :  { %v3120_v60 = vmax.f32 %v3041_v10, 0.0  ;;  %v7905_v50 = vpop.f32.mrf.mxu2  ;;  %3593 = vmatpush.bf16.msrb.mxu2 %v4529_v61 }
 0x655   :  { %v2900_v46 = vpop.f32.mrf.mxu1 }
 0x656   :  { %v2901_v47 = vadd.f32 %v2900_v46, %v2812_v19  ;;  %3082 = vmatmul.bf16.gmra.mxu3 %v7687_v6  ;;  %v7914_v17 = vpack.c.bf16 %v3120_v60, %v3118_v52  ;;  %v2814_v6 = vadd.f32 %v7853_v21, %v7608_v42  ;;  %v4518_v19 = vld [vmem:[%s8443_s7 + $0x108] sm:$0xf0]  ;;  %v2960_v46 = vadd.f32 %v7881_v7, %v7863_v13 }
 0x657   :  { %v2822_v7 = vadd.f32 %v7897_v30, %v7608_v42  ;;  %v4582_v30 = vld [vmem:[%s8443_s7 + $0x188] sm:$0xf0] }
 0x658   :  { %v7916_v63 = vpop.f32.mrf.mxu0  ;;  %3511 = vmatmul.bf16.gmra.mxu1 %v7914_v17  ;;  %v3149_v22 = vmax.f32 %v2901_v47, 0.0 }
 0x659   :  { %v3043_v56 = vpop.f32.mrf.mxu3 }
 0x65a   :  { %v3044_v3 = vadd.f32 %v3043_v56, %v2955_v51 }
 0x65c   :  { %v7927_v26 = vpop.f32.mrf.mxu2  ;;  %v3122_v15 = vmax.f32 %v3044_v3, 0.0 }
 0x65d   :  { %v2902_v55 = vpop.f32.mrf.mxu1 }
 0x65e   :  { %v2903_v62 = vadd.f32 %v2902_v55, %v2814_v6 }
 0x660   :  { %v3151_v9 = vmax.f32 %v2903_v62, 0.0  ;;  %v7933_v28 = vpop.f32.mrf.mxu0 }
 0x661   :  { %3008 = vmatmul.bf16.gmra.mxu2 %v7710_v44  ;;  %v3045_v48 = vpop.f32.mrf.mxu3 }
 0x662   :  { %v3046_v12 = vadd.f32 %v3045_v48, %v2957_v29  ;;  %v7936_v21 = vpack.c.bf16 %v3151_v9, %v3149_v22  ;;  %v4786_v22 = vld [vmem:[%s8443_s7 + $0x184] sm:$0xf] }
 0x663   :  { %3437 = vmatmul.bf16.gmra.mxu0 %v7781_v38  ;;  %v4585_v9 = vor.u32 %v4786_v22, %v4582_v30 }
 0x664   :  { %v3124_v33 = vmax.f32 %v3046_v12, 0.0  ;;  %v7941_v53 = vpop.f32.mrf.mxu2 }
 0x665   :  { %v2905_v5 = vpop.f32.mrf.mxu1  ;;  %3683 = vmatpush.bf16.msrb.mxu3 %v4585_v9 }
 0x666   :  { %v2906_v41 = vadd.f32 %v2905_v5, %v2817_v25  ;;  %3087 = vmatmul.bf16.gmra.mxu3 %v7727_v8  ;;  %v7944_v58 = vpack.c.bf16 %v3124_v33, %v3122_v15  ;;  %v4770_v8 = vld [vmem:[%s8443_s7 + $0x104] sm:$0xf]  ;;  %v2965_v25 = vadd.f32 %v7905_v50, %v7863_v13  ;;  %v2967_v33 = vadd.f32 %v7927_v26, %v7863_v13 }
 0x667   :  { %v4521_v60 = vor.u32 %v4770_v8, %v4518_v19 }
 0x668   :  { %v7946_v44 = vpop.f32.mrf.mxu0  ;;  %3516 = vmatmul.bf16.gmra.mxu1 %v7944_v58  ;;  %v3153_v59 = vmax.f32 %v2906_v41, 0.0 }
 0x669   :  { %v3048_v34 = vpop.f32.mrf.mxu3  ;;  %3594 = vmatpush.bf16.msrb.mxu2 %v4521_v60 }
 0x66a   :  { %v3049_v47 = vadd.f32 %v3048_v34, %v2960_v46 }
 0x66c   :  { %v7951_v10 = vpop.f32.mrf.mxu2  ;;  %v3126_v6 = vmax.f32 %v3049_v47, 0.0 }
 0x66d   :  { %v2907_v52 = vpop.f32.mrf.mxu1 }
 0x66e   :  { %v2908_v32 = vadd.f32 %v2907_v52, %v2819_v18 }
 0x670   :  { %v3155_v61 = vmax.f32 %v2908_v32, 0.0  ;;  %v7963_v57 = vpop.f32.mrf.mxu0  ;;  %v4806_v32 = vld [vmem:[#allocation7 + $0x20] sm:$0xff] }
 0x671   :  { %3013 = vmatmul.bf16.gmra.mxu2 %v7750_v11  ;;  %v3050_v54 = vpop.f32.mrf.mxu3  ;;  %3996 = vmatpush.bf16.msrb.mxu0 %v4806_v32 }
 0x672   :  { %v3051_v56 = vadd.f32 %v3050_v54, %v2962_v16  ;;  %v7966_v35 = vpack.c.bf16 %v3155_v61, %v3153_v59  ;;  %v4814_v59 = vld [vmem:[#allocation7 + $0x60] sm:$0xff]  ;;  %v2970_v54 = vadd.f32 %v7941_v53, %v7863_v13 }
 0x673   :  { %3442 = vmatmul.bf16.gmra.mxu0 %v7815_v27  ;;  %4085 = vmatpush.bf16.msrb.mxu1 %v4814_v59 }
 0x674   :  { %v3128_v55 = vmax.f32 %v3051_v56, 0.0  ;;  %v7971_v51 = vpop.f32.mrf.mxu2  ;;  %v2972_v56 = vadd.f32 %v7951_v10, %v7863_v13 }
 0x675   :  { %v2910_v23 = vpop.f32.mrf.mxu1 }
 0x676   :  { %v2911_v62 = vadd.f32 %v2910_v23, %v2822_v7  ;;  %3092 = vmatmul.bf16.gmra.mxu3 %v7759_v14  ;;  %v7974_v29 = vpack.c.bf16 %v3128_v55, %v3126_v6  ;;  %v2824_v14 = vadd.f32 %v7916_v63, %v7608_v42  ;;  %v2827_v63 = vadd.f32 %v7933_v28, %v7608_v42 }
 0x677   :  { %v2829_v28 = vadd.f32 %v7946_v44, %v7608_v42  ;;  %v2832_v44 = vadd.f32 %v7963_v57, %v7608_v42  ;;  %v2975_v57 = vadd.f32 %v7971_v51, %v7863_v13 }
 0x678   :  { %v7976_v11 = vpop.f32.mrf.mxu0  ;;  %3521 = vmatmul.bf16.gmra.mxu1 %v7974_v29  ;;  %v3157_v5 = vmax.f32 %v2911_v62, 0.0 }
 0x679   :  { %v3053_v3 = vpop.f32.mrf.mxu3 }
 0x67a   :  { %v3054_v41 = vadd.f32 %v3053_v3, %v2965_v25 }
 0x67c   :  { %v2976_v48 = vpop.f32.mrf.mxu2  ;;  %v3130_v50 = vmax.f32 %v3054_v41, 0.0 }
 0x67d   :  { %v2912_v12 = vpop.f32.mrf.mxu1 }
 0x67e   :  { %v2913_v15 = vadd.f32 %v2912_v12, %v2824_v14 }
 0x680   :  { %v3159_v36 = vmax.f32 %v2913_v15, 0.0  ;;  %v2836_v34 = vpop.f32.mrf.mxu0  ;;  %v2834_v15 = vadd.f32 %v7976_v11, %v7608_v42 }
 0x681   :  { %3018 = vmatmul.bf16.gmra.mxu2 %v7778_v2  ;;  %v3055_v39 = vpop.f32.mrf.mxu3  ;;  %v2837_v11 = vadd.f32 %v2836_v34, %v7608_v42 }
 0x682   :  { %v3056_v18 = vadd.f32 %v3055_v39, %v2967_v33  ;;  %v7992_v8 = vpack.c.bf16 %v3159_v36, %v3157_v5  ;;  %v2977_v36 = vadd.f32 %v2976_v48, %v7863_v13 }
 0x683   :  { %3447 = vmatmul.bf16.gmra.mxu0 %v7837_v1 }
 0x684   :  { %v3132_v19 = vmax.f32 %v3056_v18, 0.0  ;;  %v7997_v52 = vpop.f32.mrf.mxu2 }
 0x685   :  { %v2915_v26 = vpop.f32.mrf.mxu1 }
 0x686   :  { %v2916_v60 = vadd.f32 %v2915_v26, %v2827_v63  ;;  %3097 = vmatmul.bf16.gmra.mxu3 %v7795_v31  ;;  %v8000_v46 = vpack.c.bf16 %v3132_v19, %v3130_v50 }
 0x688   :  { %v8002_v2 = vpop.f32.mrf.mxu0  ;;  %3526 = vmatmul.bf16.gmra.mxu1 %v8000_v46  ;;  %v3161_v7 = vmax.f32 %v2916_v60, 0.0 }
 0x689   :  { %v3058_v16 = vpop.f32.mrf.mxu3  ;;  %v2839_v34 = vadd.f32 %v8002_v2, %v7608_v42 }
 0x68a   :  { %v3059_v6 = vadd.f32 %v3058_v16, %v2970_v54  ;;  %v4813_v54 = vld [vmem:[#allocation7 + $0x58] sm:$0xff] }
 0x68b   :  { %4086 = vmatpush.bf16.msrb.mxu1 %v4813_v54 }
 0x68c   :  { %v2981_v47 = vpop.f32.mrf.mxu2  ;;  %v3134_v53 = vmax.f32 %v3059_v6, 0.0 }
 0x68d   :  { %v2917_v61 = vpop.f32.mrf.mxu1  ;;  %v2982_v6 = vadd.f32 %v2981_v47, %v7863_v13 }
 0x68e   :  { %v2918_v31 = vadd.f32 %v2917_v61, %v2829_v28 }
 0x690   :  { %v3163_v55 = vmax.f32 %v2918_v31, 0.0  ;;  %v2841_v23 = vpop.f32.mrf.mxu0 }
 0x691   :  { %v3060_v62 = vpop.f32.mrf.mxu3  ;;  %3595 = vmatmul.bf16.vlgmr.msrb.gmra.mxu2 %v7646_v43  ;;  %v2842_v2 = vadd.f32 %v2841_v23, %v7608_v42 }
 0x692   :  { %v3061_v22 = vadd.f32 %v3060_v62, %v2972_v56  ;;  %v8012_v30 = vpack.c.bf16 %v3163_v55, %v3161_v7  ;;  %v2980_v7 = vadd.f32 %v7997_v52, %v7863_v13 }
 0x693   :  { %3452 = vmatmul.bf16.gmra.mxu0 %v7876_v45 }
 0x694   :  { %v3136_v3 = vmax.f32 %v3061_v22, 0.0  ;;  %v8017_v9 = vpop.f32.mrf.mxu2 }
 0x695   :  { %v2920_v10 = vpop.f32.mrf.mxu1 }
 0x696   :  { %v2921_v14 = vadd.f32 %v2920_v10, %v2832_v44  ;;  %3102 = vmatmul.bf16.gmra.mxu3 %v7823_v37  ;;  %v8020_v12 = vpack.c.bf16 %v3136_v3, %v3134_v53 }
 0x698   :  { %v2843_v25 = vpop.f32.mrf.mxu0  ;;  %3531 = vmatmul.bf16.gmra.mxu1 %v8020_v12  ;;  %v3165_v39 = vmax.f32 %v2921_v14, 0.0 }
 0x699   :  { %v3063_v43 = vpop.f32.mrf.mxu3 }
 0x69a   :  { %v3064_v18 = vadd.f32 %v3063_v43, %v2975_v57 }
 0x69c   :  { %v2986_v33 = vpop.f32.mrf.mxu2  ;;  %v3138_v60 = vmax.f32 %v3064_v18, 0.0  ;;  %v2985_v18 = vadd.f32 %v8017_v9, %v7863_v13 }
 0x69d   :  { %v2922_v5 = vpop.f32.mrf.mxu1 }
 0x69e   :  { %v2923_v41 = vadd.f32 %v2922_v5, %v2834_v15 }
 0x6a0   :  { %v3167_v37 = vmax.f32 %v2923_v41, 0.0  ;;  %v8028_v63 = vpop.f32.mrf.mxu0  ;;  %v2844_v41 = vadd.f32 %v2843_v25, %v7608_v42 }
 0x6a1   :  { %v3065_v50 = vpop.f32.mrf.mxu3  ;;  %3600 = vmatmul.bf16.gmra.mxu2 %v7681_v4  ;;  %v4805_v4 = vld [vmem:[#allocation7 + $0x18] sm:$0xff] }
 0x6a2   :  { %v3066_v19 = vadd.f32 %v3065_v50, %v2977_v36  ;;  %v8031_v26 = vpack.c.bf16 %v3167_v37, %v3165_v39  ;;  %3997 = vmatpush.bf16.msrb.mxu0 %v4805_v4  ;;  %v8062_v36 = vld [vmem:[#allocation6 + $0x1] ss:$2 sm:$0x3] }
 0x6a3   :  { %3457 = vmatmul.bf16.gmra.mxu0 %v7900_v40  ;;  %v8067_v50 = vperm.slane %v8062_v36, 0 }
 0x6a4   :  { %v3140_v51 = vmax.f32 %v3066_v19, 0.0  ;;  %v8035_v32 = vpop.f32.mrf.mxu2 }
 0x6a5   :  { %v2925_v48 = vpop.f32.mrf.mxu1  ;;  %v3419_v9 = vadd.f32 %v8028_v63, %v8067_v50 }
 0x6a6   :  { %v2926_v16 = vadd.f32 %v2925_v48, %v2837_v11  ;;  %3107 = vmatmul.bf16.gmra.mxu3 %v7851_v24  ;;  %v8038_v59 = vpack.c.bf16 %v3140_v51, %v3138_v60 }
 0x6a8   :  { %v8040_v28 = vpop.f32.mrf.mxu0  ;;  %3536 = vmatmul.bf16.gmra.mxu1 %v8038_v59  ;;  %v3169_v55 = vmax.f32 %v2926_v16, 0.0 }
 0x6a9   :  { %v3068_v61 = vpop.f32.mrf.mxu3  ;;  %v3421_v63 = vadd.f32 %v8040_v28, %v8067_v50 }
 0x6aa   :  { %v3069_v62 = vadd.f32 %v3068_v61, %v2980_v7 }
 0x6ac   :  { %v2991_v31 = vpop.f32.mrf.mxu2  ;;  %v3142_v14 = vmax.f32 %v3069_v62, 0.0  ;;  %v2990_v62 = vadd.f32 %v8035_v32, %v7863_v13 }
 0x6ad   :  { %v2927_v56 = vpop.f32.mrf.mxu1 }
 0x6ae   :  { %v2928_v24 = vadd.f32 %v2927_v56, %v2839_v34 }
 0x6b0   :  { %v3171_v22 = vmax.f32 %v2928_v24, 0.0  ;;  %v8048_v44 = vpop.f32.mrf.mxu0  ;;  %v4812_v24 = vld [vmem:[#allocation7 + $0x50] sm:$0xff] }
 0x6b1   :  { %v3070_v53 = vpop.f32.mrf.mxu3  ;;  %3605 = vmatmul.bf16.gmra.mxu2 %v7713_v0  ;;  %4087 = vmatpush.bf16.msrb.mxu1 %v4812_v24  ;;  %v3424_v28 = vadd.f32 %v8048_v44, %v8067_v50 }
 0x6b2   :  { %v3071_v3 = vadd.f32 %v3070_v53, %v2982_v6  ;;  %v8051_v10 = vpack.c.bf16 %v3171_v22, %v3169_v55  ;;  %v2992_v22 = vadd.f32 %v2991_v31, %v7863_v13 }
 0x6b3   :  { %3462 = vmatmul.bf16.gmra.mxu0 %v7936_v21 }
 0x6b4   :  { %v3144_v52 = vmax.f32 %v3071_v3, 0.0  ;;  %v8055_v43 = vpop.f32.mrf.mxu2 }
 0x6b5   :  { %v2930_v47 = vpop.f32.mrf.mxu1  ;;  %v2995_v44 = vadd.f32 %v8055_v43, %v7863_v13 }
 0x6b6   :  { %v2931_v15 = vadd.f32 %v2930_v47, %v2842_v2  ;;  %3684 = vmatmul.bf16.vlgmr.msrb.gmra.mxu3 %v7883_v20  ;;  %v8058_v5 = vpack.c.bf16 %v3144_v52, %v3142_v14  ;;  %v2987_v20 = vadd.f32 %v2986_v33, %v7863_v13 }
 0x6b8   :  { %v3425_v57 = vpop.f32.mrf.mxu0  ;;  %3541 = vmatmul.bf16.gmra.mxu1 %v8058_v5  ;;  %v3173_v19 = vmax.f32 %v2931_v15, 0.0 }
 0x6b9   :  { %v3073_v0 = vpop.f32.mrf.mxu3 }
 0x6ba   :  { %v3074_v11 = vadd.f32 %v3073_v0, %v2985_v18 }
 0x6bc   :  { %v2996_v39 = vpop.f32.mrf.mxu2  ;;  %v3146_v16 = vmax.f32 %v3074_v11, 0.0 }
 0x6bd   :  { %v2932_v23 = vpop.f32.mrf.mxu1 }
 0x6be   :  { %v2933_v37 = vadd.f32 %v2932_v23, %v2844_v41 }
 0x6c0   :  { %v3175_v60 = vmax.f32 %v2933_v37, 0.0  ;;  %v3428_v51 = vpop.f32.mrf.mxu0 }
 0x6c1   :  { %v3075_v48 = vpop.f32.mrf.mxu3  ;;  %3610 = vmatmul.bf16.gmra.mxu2 %v7753_v49  ;;  %v4804_v49 = vld [vmem:[#allocation7 + $0x10] sm:$0xff] }
 0x6c2   :  { %v3076_v42 = vadd.f32 %v3075_v48, %v2987_v20  ;;  %v8071_v25 = vpack.c.bf16 %v3175_v60, %v3173_v19  ;;  %3998 = vmatpush.bf16.msrb.mxu0 %v4804_v49  ;;  %v3426_v20 = vadd.f32 %v3425_v57, %v8067_v50  ;;  %v2997_v48 = vadd.f32 %v2996_v39, %v7863_v13 }
 0x6c3   :  { %3467 = vmatmul.bf16.gmra.mxu0 %v7966_v35  ;;  %v3429_v57 = vadd.f32 %v3428_v51, %v8067_v50 }
 0x6c4   :  { %v3148_v4 = vmax.f32 %v3076_v42, 0.0  ;;  %v8076_v61 = vpop.f32.mrf.mxu2 }
 0x6c5   :  { %v3507_v33 = vpop.f32.mrf.mxu1 }
 0x6c6   :  { %v3508_v54 = vadd.f32 %v3507_v33, %v3419_v9  ;;  %3689 = vmatmul.bf16.gmra.mxu3 %v7914_v17  ;;  %v8079_v34 = vpack.c.bf16 %v3148_v4, %v3146_v16 }
 0x6c8   :  { %v8081_v56 = vpop.f32.mrf.mxu0  ;;  %3546 = vmatmul.bf16.gmra.mxu1 %v8079_v34  ;;  %v3765_v53 = vmax.f32 %v3508_v54, 0.0 }
 0x6c9   :  { %v3078_v7 = vpop.f32.mrf.mxu3  ;;  %v3431_v51 = vadd.f32 %v8081_v56, %v8067_v50 }
 0x6ca   :  { %v3079_v3 = vadd.f32 %v3078_v7, %v2990_v62 }
 0x6cc   :  { %v3001_v6 = vpop.f32.mrf.mxu2  ;;  %v3150_v0 = vmax.f32 %v3079_v3, 0.0  ;;  %v3000_v3 = vadd.f32 %v8076_v61, %v7863_v13 }
 0x6cd   :  { %v3509_v55 = vpop.f32.mrf.mxu1 }
 0x6ce   :  { %v3510_v17 = vadd.f32 %v3509_v55, %v3421_v63 }
 0x6d0   :  { %v3767_v2 = vmax.f32 %v3510_v17, 0.0  ;;  %v3433_v14 = vpop.f32.mrf.mxu0  ;;  %v4811_v17 = vld [vmem:[#allocation7 + $0x48] sm:$0xff] }
 0x6d1   :  { %v3080_v52 = vpop.f32.mrf.mxu3  ;;  %3615 = vmatmul.bf16.gmra.mxu2 %v7781_v38  ;;  %4088 = vmatpush.bf16.msrb.mxu1 %v4811_v17  ;;  %v3434_v56 = vadd.f32 %v3433_v14, %v8067_v50 }
 0x6d2   :  { %v8090_v47 = vpack.c.bf16 %v3767_v2, %v3765_v53  ;;  %v3081_v15 = vadd.f32 %v3080_v52, %v2992_v22  ;;  %v3002_v2 = vadd.f32 %v3001_v6, %v7863_v13 }
 0x6d3   :  { %3472 = vmatmul.bf16.gmra.mxu0 %v7992_v8 }
 0x6d4   :  { %v3152_v32 = vmax.f32 %v3081_v15, 0.0  ;;  %v8095_v41 = vpop.f32.mrf.mxu2 }
 0x6d5   :  { %v3512_v31 = vpop.f32.mrf.mxu1  ;;  %v3005_v14 = vadd.f32 %v8095_v41, %v7863_v13 }
 0x6d6   :  { %v3513_v23 = vadd.f32 %v3512_v31, %v3424_v28  ;;  %3694 = vmatmul.bf16.gmra.mxu3 %v7944_v58  ;;  %v8098_v18 = vpack.c.bf16 %v3152_v32, %v3150_v0 }
 0x6d8   :  { %v3435_v37 = vpop.f32.mrf.mxu0  ;;  %3551 = vmatmul.bf16.gmra.mxu1 %v8098_v18  ;;  %v3769_v42 = vmax.f32 %v3513_v23, 0.0 }
 0x6d9   :  { %v3083_v38 = vpop.f32.mrf.mxu3 }
 0x6da   :  { %v3084_v9 = vadd.f32 %v3083_v38, %v2995_v44 }
 0x6dc   :  { %v3006_v19 = vpop.f32.mrf.mxu2  ;;  %v3154_v49 = vmax.f32 %v3084_v9, 0.0 }
 0x6dd   :  { %v3514_v11 = vpop.f32.mrf.mxu1 }
 0x6de   :  { %v3515_v60 = vadd.f32 %v3514_v11, %v3426_v20 }
 0x6e0   :  { %v3771_v16 = vmax.f32 %v3515_v60, 0.0  ;;  %v8105_v58 = vpop.f32.mrf.mxu0 }
 0x6e1   :  { %v3085_v4 = vpop.f32.mrf.mxu3  ;;  %3620 = vmatmul.bf16.gmra.mxu2 %v7815_v27  ;;  %v4803_v27 = vld [vmem:[#allocation7 + $0x8] sm:$0xff]  ;;  %v3439_v41 = vadd.f32 %v8105_v58, %v8067_v50 }
 0x6e2   :  { %v3086_v33 = vadd.f32 %v3085_v4, %v2997_v48  ;;  %v8108_v54 = vpack.c.bf16 %v3771_v16, %v3769_v42  ;;  %3999 = vmatpush.bf16.msrb.mxu0 %v4803_v27  ;;  %v3436_v48 = vadd.f32 %v3435_v37, %v8067_v50  ;;  %v4802_v4 = vld [vmem:[#allocation7] sm:$0xff] }
 0x6e3   :  { %3477 = vmatmul.bf16.gmra.mxu0 %v8012_v30 }
 0x6e4   :  { %v3156_v43 = vmax.f32 %v3086_v33, 0.0  ;;  %v8112_v7 = vpop.f32.mrf.mxu2  ;;  %v3007_v33 = vadd.f32 %v3006_v19, %v7863_v13 }
 0x6e5   :  { %v3517_v39 = vpop.f32.mrf.mxu1 }
 0x6e6   :  { %v3518_v24 = vadd.f32 %v3517_v39, %v3429_v57  ;;  %3699 = vmatmul.bf16.gmra.mxu3 %v7974_v29  ;;  %v8115_v63 = vpack.c.bf16 %v3156_v43, %v3154_v49  ;;  %4000 = vmatpush.bf16.msrb.mxu0 %v4802_v4 }
 0x6e8   :  { %v8117_v55 = vpop.f32.mrf.mxu0  ;;  %3556 = vmatmul.bf16.gmra.mxu1 %v8115_v63  ;;  %v3773_v52 = vmax.f32 %v3518_v24, 0.0 }
 0x6e9   :  { %v3088_v62 = vpop.f32.mrf.mxu3 }
 0x6ea   :  { %v3089_v15 = vadd.f32 %v3088_v62, %v3000_v3 }
 0x6ec   :  { %v3011_v22 = vpop.f32.mrf.mxu2  ;;  %v3158_v38 = vmax.f32 %v3089_v15, 0.0  ;;  %v3010_v15 = vadd.f32 %v8112_v7, %v7863_v13 }
 0x6ed   :  { %v3519_v53 = vpop.f32.mrf.mxu1 }
 0x6ee   :  { %v3520_v29 = vadd.f32 %v3519_v53, %v3431_v51 }
 0x6f0   :  { %v3775_v28 = vmax.f32 %v3520_v29, 0.0  ;;  %v3443_v0 = vpop.f32.mrf.mxu0  ;;  %v4810_v29 = vld [vmem:[#allocation7 + $0x40] sm:$0xff] }
 0x6f1   :  { %v3090_v32 = vpop.f32.mrf.mxu3  ;;  %3625 = vmatmul.bf16.gmra.mxu2 %v7837_v1  ;;  %4089 = vmatpush.bf16.msrb.mxu1 %v4810_v29 }
 0x6f2   :  { %v3091_v31 = vadd.f32 %v3090_v32, %v3002_v2  ;;  %v8126_v23 = vpack.c.bf16 %v3775_v28, %v3773_v52  ;;  %v3441_v2 = vadd.f32 %v8117_v55, %v8067_v50  ;;  %v3012_v32 = vadd.f32 %v3011_v22, %v7863_v13 }
 0x6f3   :  { %3482 = vmatmul.bf16.gmra.mxu0 %v8031_v26  ;;  %v3444_v55 = vadd.f32 %v3443_v0, %v8067_v50 }
 0x6f4   :  { %v3160_v20 = vmax.f32 %v3091_v31, 0.0  ;;  %v8130_v61 = vpop.f32.mrf.mxu2 }
 0x6f5   :  { %v3522_v11 = vpop.f32.mrf.mxu1  ;;  %v3015_v0 = vadd.f32 %v8130_v61, %v7863_v13 }
 0x6f6   :  { %v3523_v6 = vadd.f32 %v3522_v11, %v3434_v56  ;;  %3704 = vmatmul.bf16.gmra.mxu3 %v8000_v46  ;;  %v8133_v44 = vpack.c.bf16 %v3160_v20, %v3158_v38 }
 0x6f8   :  { %v3445_v60 = vpop.f32.mrf.mxu0  ;;  %3561 = vmatmul.bf16.gmra.mxu1 %v8133_v44  ;;  %v3777_v57 = vmax.f32 %v3523_v6, 0.0 }
 0x6f9   :  { %v3093_v1 = vpop.f32.mrf.mxu3  ;;  %v3446_v4 = vadd.f32 %v3445_v60, %v8067_v50 }
 0x6fa   :  { %v3094_v49 = vadd.f32 %v3093_v1, %v3005_v14 }
 0x6fc   :  { %v3016_v42 = vpop.f32.mrf.mxu2  ;;  %v3162_v37 = vmax.f32 %v3094_v49, 0.0 }
 0x6fd   :  { %v3524_v9 = vpop.f32.mrf.mxu1 }
 0x6fe   :  { %v3525_v16 = vadd.f32 %v3524_v9, %v3436_v48 }
 0x700   :  { %v3779_v46 = vmax.f32 %v3525_v16, 0.0  ;;  %v3448_v43 = vpop.f32.mrf.mxu0 }
 0x701   :  { %v3095_v39 = vpop.f32.mrf.mxu3  ;;  %3630 = vmatmul.bf16.gmra.mxu2 %v7876_v45  ;;  %v3449_v60 = vadd.f32 %v3448_v43, %v8067_v50 }
 0x702   :  { %v3096_v24 = vadd.f32 %v3095_v39, %v3007_v33  ;;  %v8141_v27 = vpack.c.bf16 %v3779_v46, %v3777_v57  ;;  %v3017_v46 = vadd.f32 %v3016_v42, %v7863_v13 }
 0x703   :  { %3487 = vmatmul.bf16.gmra.mxu0 %v8051_v10 }
 0x704   :  { %v3164_v62 = vmax.f32 %v3096_v24, 0.0  ;;  %v8146_v17 = vpop.f32.mrf.mxu2 }
 0x705   :  { %v3527_v19 = vpop.f32.mrf.mxu1  ;;  %v3020_v43 = vadd.f32 %v8146_v17, %v7863_v13 }
 0x706   :  { %v3528_v51 = vadd.f32 %v3527_v19, %v3439_v41  ;;  %3709 = vmatmul.bf16.gmra.mxu3 %v8020_v12  ;;  %v8149_v53 = vpack.c.bf16 %v3164_v62, %v3162_v37 }
 0x708   :  { %v3450_v45 = vpop.f32.mrf.mxu0  ;;  %3566 = vmatmul.bf16.gmra.mxu1 %v8149_v53  ;;  %v3781_v12 = vmax.f32 %v3528_v51, 0.0 }
 0x709   :  { %v3098_v3 = vpop.f32.mrf.mxu3 }
 0x70a   :  { %v3099_v31 = vadd.f32 %v3098_v3, %v3010_v15  ;;  %v3451_v15 = vadd.f32 %v3450_v45, %v8067_v50 }
 0x70c   :  { %v3021_v58 = vpop.f32.mrf.mxu2  ;;  %v3166_v1 = vmax.f32 %v3099_v31, 0.0 }
 0x70d   :  { %v3529_v52 = vpop.f32.mrf.mxu1 }
 0x70e   :  { %v3530_v28 = vadd.f32 %v3529_v52, %v3441_v2 }
 0x710   :  { %v3783_v56 = vmax.f32 %v3530_v28, 0.0  ;;  %v3453_v38 = vpop.f32.mrf.mxu0 }
 0x711   :  { %v3100_v20 = vpop.f32.mrf.mxu3  ;;  %3635 = vmatmul.bf16.gmra.mxu2 %v7900_v40  ;;  %v3454_v45 = vadd.f32 %v3453_v38, %v8067_v50 }
 0x712   :  { %v3101_v11 = vadd.f32 %v3100_v20, %v3012_v32  ;;  %v8158_v6 = vpack.c.bf16 %v3783_v56, %v3781_v12  ;;  %v3022_v12 = vadd.f32 %v3021_v58, %v7863_v13 }
 0x713   :  { %3492 = vmatmul.bf16.gmra.mxu0 %v8071_v25 }
 0x714   :  { %v3168_v48 = vmax.f32 %v3101_v11, 0.0  ;;  %v8162_v7 = vpop.f32.mrf.mxu2 }
 0x715   :  { %v3532_v9 = vpop.f32.mrf.mxu1 }
 0x716   :  { %v3533_v22 = vadd.f32 %v3532_v9, %v3444_v55  ;;  %3714 = vmatmul.bf16.gmra.mxu3 %v8038_v59  ;;  %v8165_v14 = vpack.c.bf16 %v3168_v48, %v3166_v1 }
 0x718   :  { %v3455_v16 = vpop.f32.mrf.mxu0  ;;  %3571 = vmatmul.bf16.gmra.mxu1 %v8165_v14  ;;  %v3785_v39 = vmax.f32 %v3533_v22, 0.0 }
 0x719   :  { %v3103_v40 = vpop.f32.mrf.mxu3 }
 0x71a   :  { %v3104_v24 = vadd.f32 %v3103_v40, %v3015_v0 }
 0x71c   :  { %v3598_v33 = vpop.f32.mrf.mxu2  ;;  %v3170_v51 = vmax.f32 %v3104_v24, 0.0 }
 0x71d   :  { %v3534_v57 = vpop.f32.mrf.mxu1 }
 0x71e   :  { %v3535_v49 = vadd.f32 %v3534_v57, %v3446_v4  ;;  %v8199_v4 = vperm.slane %v8062_v36, 1 }
 0x720   :  { %v3787_v41 = vmax.f32 %v3535_v49, 0.0  ;;  %v3458_v59 = vpop.f32.mrf.mxu0  ;;  %v3597_v0 = vadd.f32 %v8162_v7, %v8199_v4 }
 0x721   :  { %v3105_v37 = vpop.f32.mrf.mxu3  ;;  %3640 = vmatmul.bf16.gmra.mxu2 %v7936_v21 }
 0x722   :  { %v3106_v62 = vadd.f32 %v3105_v37, %v3017_v46  ;;  %v8173_v19 = vpack.c.bf16 %v3787_v41, %v3785_v39  ;;  %v3599_v46 = vadd.f32 %v3598_v33, %v8199_v4 }
 0x723   :  { %4001 = vmatmul.bf16.vlgmr.msrb.gmra.mxu0 %v8090_v47 }
 0x724   :  { %v3172_v3 = vmax.f32 %v3106_v62, 0.0  ;;  %v8177_v61 = vpop.f32.mrf.mxu2 }
 0x725   :  { %v3537_v29 = vpop.f32.mrf.mxu1 }
 0x726   :  { %v3538_v42 = vadd.f32 %v3537_v29, %v3449_v60  ;;  %3719 = vmatmul.bf16.gmra.mxu3 %v8058_v5  ;;  %v8180_v2 = vpack.c.bf16 %v3172_v3, %v3170_v51 }
 0x728   :  { %v3460_v52 = vpop.f32.mrf.mxu0  ;;  %3576 = vmatmul.bf16.gmra.mxu1 %v8180_v2  ;;  %v3789_v31 = vmax.f32 %v3538_v42, 0.0 }
 0x729   :  { %v3108_v21 = vpop.f32.mrf.mxu3 }
 0x72a   :  { %v3109_v56 = vadd.f32 %v3108_v21, %v3020_v43  ;;  %v3461_v21 = vadd.f32 %v3460_v52, %v8067_v50 }
 0x72c   :  { %v3603_v28 = vpop.f32.mrf.mxu2  ;;  %v3174_v48 = vmax.f32 %v3109_v56, 0.0 }
 0x72d   :  { %v3539_v47 = vpop.f32.mrf.mxu1  ;;  %v3604_v43 = vadd.f32 %v3603_v28, %v8199_v4 }
 0x72e   :  { %v3540_v32 = vadd.f32 %v3539_v47, %v3451_v15 }
 0x730   :  { %v3791_v20 = vmax.f32 %v3540_v32, 0.0  ;;  %v3463_v5 = vpop.f32.mrf.mxu0 }
 0x731   :  { %v3110_v11 = vpop.f32.mrf.mxu3  ;;  %3645 = vmatmul.bf16.gmra.mxu2 %v7966_v35  ;;  %v3464_v52 = vadd.f32 %v3463_v5, %v8067_v50 }
 0x732   :  { %v3111_v55 = vadd.f32 %v3110_v11, %v3022_v12  ;;  %v8188_v1 = vpack.c.bf16 %v3791_v20, %v3789_v31 }
 0x733   :  { %4006 = vmatmul.bf16.gmra.mxu0 %v8108_v54  ;;  %v3456_v54 = vadd.f32 %v3455_v16, %v8067_v50  ;;  %v3459_v16 = vadd.f32 %v3458_v59, %v8067_v50 }
 0x734   :  { %v3176_v9 = vmax.f32 %v3111_v55, 0.0  ;;  %v8192_v17 = vpop.f32.mrf.mxu2 }
 0x735   :  { %v3542_v22 = vpop.f32.mrf.mxu1 }
 0x736   :  { %v3543_v13 = vadd.f32 %v3542_v22, %v3454_v45  ;;  %3724 = vmatmul.bf16.gmra.mxu3 %v8079_v34  ;;  %v8195_v58 = vpack.c.bf16 %v3176_v9, %v3174_v48 }
 0x738   :  { %v3465_v40 = vpop.f32.mrf.mxu0  ;;  %3581 = vmatmul.bf16.gmra.mxu1 %v8195_v58  ;;  %v3793_v34 = vmax.f32 %v3543_v13, 0.0 }
 0x739   :  { %v3685_v35 = vpop.f32.mrf.mxu3  ;;  %v3466_v13 = vadd.f32 %v3465_v40, %v8067_v50 }
 0x73a   :  { %v3686_v39 = vadd.f32 %v3685_v35, %v3597_v0 }
 0x73c   :  { %v3608_v38 = vpop.f32.mrf.mxu2  ;;  %v3766_v60 = vmax.f32 %v3686_v39, 0.0 }
 0x73d   :  { %v3544_v57 = vpop.f32.mrf.mxu1 }
 0x73e   :  { %v3545_v49 = vadd.f32 %v3544_v57, %v3456_v54  ;;  %v3609_v57 = vadd.f32 %v3608_v38, %v8199_v4 }
 0x740   :  { %v3795_v24 = vmax.f32 %v3545_v49, 0.0  ;;  %v3468_v41 = vpop.f32.mrf.mxu0 }
 0x741   :  { %3650 = vmatmul.bf16.gmra.mxu2 %v7992_v8  ;;  %v3687_v37 = vpop.f32.mrf.mxu3  ;;  %v3469_v40 = vadd.f32 %v3468_v41, %v8067_v50 }
 0x742   :  { %v3688_v62 = vadd.f32 %v3687_v37, %v3599_v46  ;;  %v8206_v36 = vpack.c.bf16 %v3795_v24, %v3793_v34 }
 0x743   :  { %4011 = vmatmul.bf16.gmra.mxu0 %v8126_v23  ;;  %v3602_v23 = vadd.f32 %v8177_v61, %v8199_v4 }
 0x744   :  { %v3768_v51 = vmax.f32 %v3688_v62, 0.0  ;;  %v8210_v7 = vpop.f32.mrf.mxu2 }
 0x745   :  { %v3547_v3 = vpop.f32.mrf.mxu1 }
 0x746   :  { %v3830_v33 = vpack.c.bf16 %v3768_v51, %v3766_v60  ;;  %v3548_v29 = vadd.f32 %v3547_v3, %v3459_v16  ;;  %3729 = vmatmul.bf16.gmra.mxu3 %v8098_v18 }
 0x748   :  { %v3470_v42 = vpop.f32.mrf.mxu0  ;;  %4090 = vmatmul.bf16.vlgmr.msrb.gmra.mxu1 %v3830_v33  ;;  %v3797_v32 = vmax.f32 %v3548_v29, 0.0 }
 0x749   :  { %v3690_v8 = vpop.f32.mrf.mxu3  ;;  %v3471_v3 = vadd.f32 %v3470_v42, %v8067_v50 }
 0x74a   :  { %v3691_v12 = vadd.f32 %v3690_v8, %v3602_v23 }
 0x74c   :  { %v3613_v15 = vpop.f32.mrf.mxu2  ;;  %v3770_v55 = vmax.f32 %v3691_v12, 0.0 }
 0x74d   :  { %v3549_v47 = vpop.f32.mrf.mxu1  ;;  %v3614_v8 = vadd.f32 %v3613_v15, %v8199_v4 }
 0x74e   :  { %v3550_v59 = vadd.f32 %v3549_v47, %v3461_v21 }
 0x750   :  { %v3799_v31 = vmax.f32 %v3550_v59, 0.0  ;;  %v3473_v56 = vpop.f32.mrf.mxu0 }
 0x751   :  { %3655 = vmatmul.bf16.gmra.mxu2 %v8012_v30  ;;  %v3692_v18 = vpop.f32.mrf.mxu3  ;;  %v3474_v42 = vadd.f32 %v3473_v56, %v8067_v50 }
 0x752   :  { %v3693_v20 = vadd.f32 %v3692_v18, %v3604_v43  ;;  %v8218_v11 = vpack.c.bf16 %v3799_v31, %v3797_v32 }
 0x753   :  { %4016 = vmatmul.bf16.gmra.mxu0 %v8141_v27  ;;  %v3607_v27 = vadd.f32 %v8192_v17, %v8199_v4 }
 0x754   :  { %v3772_v45 = vmax.f32 %v3693_v20, 0.0  ;;  %v8222_v61 = vpop.f32.mrf.mxu2 }
 0x755   :  { %v3552_v48 = vpop.f32.mrf.mxu1 }
 0x756   :  { %v3553_v28 = vadd.f32 %v3552_v48, %v3464_v52  ;;  %3734 = vmatmul.bf16.gmra.mxu3 %v8115_v63  ;;  %v3832_v9 = vpack.c.bf16 %v3772_v45, %v3770_v55 }
 0x758   :  { %v3475_v22 = vpop.f32.mrf.mxu0  ;;  %4095 = vmatmul.bf16.gmra.mxu1 %v3832_v9  ;;  %v3801_v0 = vmax.f32 %v3553_v28, 0.0 }
 0x759   :  { %v3695_v30 = vpop.f32.mrf.mxu3 }
 0x75a   :  { %v3696_v49 = vadd.f32 %v3695_v30, %v3607_v27 }
 0x75c   :  { %v3618_v35 = vpop.f32.mrf.mxu2  ;;  %v3774_v37 = vmax.f32 %v3696_v49, 0.0 }
 0x75d   :  { %v3554_v54 = vpop.f32.mrf.mxu1  ;;  %v3619_v56 = vadd.f32 %v3618_v35, %v8199_v4 }
 0x75e   :  { %v3555_v5 = vadd.f32 %v3554_v54, %v3466_v13 }
 0x760   :  { %v3803_v46 = vmax.f32 %v3555_v5, 0.0  ;;  %v3478_v34 = vpop.f32.mrf.mxu0 }
 0x761   :  { %3660 = vmatmul.bf16.gmra.mxu2 %v8031_v26  ;;  %v3697_v63 = vpop.f32.mrf.mxu3 }
 0x762   :  { %v3698_v39 = vadd.f32 %v3697_v63, %v3609_v57  ;;  %v8230_v24 = vpack.c.bf16 %v3803_v46, %v3801_v0 }
 0x763   :  { %4021 = vmatmul.bf16.gmra.mxu0 %v8158_v6  ;;  %v3612_v6 = vadd.f32 %v8210_v7, %v8199_v4 }
 0x764   :  { %v3776_v62 = vmax.f32 %v3698_v39, 0.0  ;;  %v8234_v17 = vpop.f32.mrf.mxu2 }
 0x765   :  { %v3557_v16 = vpop.f32.mrf.mxu1 }
 0x766   :  { %v3558_v38 = vadd.f32 %v3557_v16, %v3469_v40  ;;  %3739 = vmatmul.bf16.gmra.mxu3 %v8133_v44  ;;  %v3834_v60 = vpack.c.bf16 %v3776_v62, %v3774_v37 }
 0x768   :  { %v3480_v51 = vpop.f32.mrf.mxu0  ;;  %4100 = vmatmul.bf16.gmra.mxu1 %v3834_v60  ;;  %v3805_v21 = vmax.f32 %v3558_v38, 0.0 }
 0x769   :  { %v3700_v26 = vpop.f32.mrf.mxu3 }
 0x76a   :  { %v3701_v47 = vadd.f32 %v3700_v26, %v3612_v6 }
 0x76c   :  { %v3623_v33 = vpop.f32.mrf.mxu2  ;;  %v3778_v12 = vmax.f32 %v3701_v47, 0.0 }
 0x76d   :  { %v3559_v29 = vpop.f32.mrf.mxu1 }
 0x76e   :  { %v3560_v41 = vadd.f32 %v3559_v29, %v3471_v3 }
 0x770   :  { %v3807_v23 = vmax.f32 %v3560_v41, 0.0  ;;  %v3483_v59 = vpop.f32.mrf.mxu0 }
 0x771   :  { %3665 = vmatmul.bf16.gmra.mxu2 %v8051_v10  ;;  %v3702_v44 = vpop.f32.mrf.mxu3  ;;  %v3476_v10 = vadd.f32 %v3475_v22, %v8067_v50  ;;  %v3479_v22 = vadd.f32 %v3478_v34, %v8067_v50  ;;  %v3624_v34 = vadd.f32 %v3623_v33, %v8199_v4 }
 0x772   :  { %v3703_v43 = vadd.f32 %v3702_v44, %v3614_v8  ;;  %v8242_v32 = vpack.c.bf16 %v3807_v23, %v3805_v21 }
 0x773   :  { %4026 = vmatmul.bf16.gmra.mxu0 %v8173_v19  ;;  %v3617_v19 = vadd.f32 %v8222_v61, %v8199_v4 }
 0x774   :  { %v3780_v31 = vmax.f32 %v3703_v43, 0.0  ;;  %v3626_v7 = vpop.f32.mrf.mxu2 }
 0x775   :  { %v3562_v18 = vpop.f32.mrf.mxu1 }
 0x776   :  { %v3563_v20 = vadd.f32 %v3562_v18, %v3474_v42  ;;  %3744 = vmatmul.bf16.gmra.mxu3 %v8149_v53  ;;  %v3836_v15 = vpack.c.bf16 %v3780_v31, %v3778_v12  ;;  %v3627_v42 = vadd.f32 %v3626_v7, %v8199_v4 }
 0x778   :  { %v3485_v52 = vpop.f32.mrf.mxu0  ;;  %4105 = vmatmul.bf16.gmra.mxu1 %v3836_v15  ;;  %v3809_v9 = vmax.f32 %v3563_v20, 0.0 }
 0x779   :  { %v3705_v55 = vpop.f32.mrf.mxu3  ;;  %v3486_v44 = vadd.f32 %v3485_v52, %v8067_v50 }
 0x77a   :  { %v3706_v30 = vadd.f32 %v3705_v55, %v3617_v19 }
 0x77c   :  { %v3628_v45 = vpop.f32.mrf.mxu2  ;;  %v3782_v57 = vmax.f32 %v3706_v30, 0.0 }
 0x77d   :  { %v3564_v48 = vpop.f32.mrf.mxu1 }
 0x77e   :  { %v3565_v28 = vadd.f32 %v3564_v48, %v3476_v10 }
 0x780   :  { %v3811_v13 = vmax.f32 %v3565_v28, 0.0  ;;  %v3488_v54 = vpop.f32.mrf.mxu0 }
 0x781   :  { %3670 = vmatmul.bf16.gmra.mxu2 %v8071_v25  ;;  %v3707_v53 = vpop.f32.mrf.mxu3  ;;  %v3481_v25 = vadd.f32 %v3480_v51, %v8067_v50  ;;  %v3484_v51 = vadd.f32 %v3483_v59, %v8067_v50 }
 0x782   :  { %v3708_v27 = vadd.f32 %v3707_v53, %v3619_v56  ;;  %v8252_v5 = vpack.c.bf16 %v3811_v13, %v3809_v9 }
 0x783   :  { %4031 = vmatmul.bf16.gmra.mxu0 %v8188_v1  ;;  %v3622_v1 = vadd.f32 %v8234_v17, %v8199_v4 }
 0x784   :  { %v3784_v0 = vmax.f32 %v3708_v27, 0.0  ;;  %v3631_v61 = vpop.f32.mrf.mxu2 }
 0x785   :  { %v3567_v49 = vpop.f32.mrf.mxu1  ;;  %v3632_v27 = vadd.f32 %v3631_v61, %v8199_v4 }
 0x786   :  { %v3838_v46 = vpack.c.bf16 %v3784_v0, %v3782_v57  ;;  %v3568_v35 = vadd.f32 %v3567_v49, %v3479_v22  ;;  %3749 = vmatmul.bf16.gmra.mxu3 %v8165_v14 }
 0x788   :  { %v3490_v63 = vpop.f32.mrf.mxu0  ;;  %4110 = vmatmul.bf16.gmra.mxu1 %v3838_v46  ;;  %v3813_v16 = vmax.f32 %v3568_v35, 0.0 }
 0x789   :  { %v3710_v39 = vpop.f32.mrf.mxu3  ;;  %v3491_v13 = vadd.f32 %v3490_v63, %v8067_v50 }
 0x78a   :  { %v3711_v38 = vadd.f32 %v3710_v39, %v3622_v1 }
 0x78c   :  { %v3633_v40 = vpop.f32.mrf.mxu2  ;;  %v3786_v6 = vmax.f32 %v3711_v38, 0.0 }
 0x78d   :  { %v3569_v37 = vpop.f32.mrf.mxu1 }
 0x78e   :  { %v3570_v62 = vadd.f32 %v3569_v37, %v3481_v25 }
 0x790   :  { %v3815_v60 = vmax.f32 %v3570_v62, 0.0  ;;  %v3493_v26 = vpop.f32.mrf.mxu0 }
 0x791   :  { %v3712_v3 = vpop.f32.mrf.mxu3 }
 0x792   :  { %v3713_v29 = vadd.f32 %v3712_v3, %v3624_v34  ;;  %v8261_v14 = vpack.c.bf16 %v3815_v60, %v3813_v16 }
 0x793   :  { %4036 = vmatmul.bf16.gmra.mxu0 %v8206_v36  ;;  %v3629_v36 = vadd.f32 %v3628_v45, %v8199_v4 }
 0x794   :  { %v3788_v41 = vmax.f32 %v3713_v29, 0.0  ;;  %v3636_v17 = vpop.f32.mrf.mxu2 }
 0x795   :  { %v3572_v8 = vpop.f32.mrf.mxu1  ;;  %v3637_v60 = vadd.f32 %v3636_v17, %v8199_v4 }
 0x796   :  { %v3840_v21 = vpack.c.bf16 %v3788_v41, %v3786_v6  ;;  %v3573_v47 = vadd.f32 %v3572_v8, %v3484_v51  ;;  %3754 = vmatmul.bf16.gmra.mxu3 %v8180_v2  ;;  %v3489_v2 = vadd.f32 %v3488_v54, %v8067_v50  ;;  %v8284_v51 = vld [vmem:[#allocation9] ss:$0 sm:$0xff] }
 0x798   :  { %v3495_v33 = vpop.f32.mrf.mxu0  ;;  %4115 = vmatmul.bf16.gmra.mxu1 %v3840_v21  ;;  %v3817_v59 = vmax.f32 %v3573_v47, 0.0 }
 0x799   :  { %v3715_v23 = vpop.f32.mrf.mxu3  ;;  %v3496_v16 = vadd.f32 %v3495_v33, %v8067_v50 }
 0x79a   :  { %v3716_v31 = vadd.f32 %v3715_v23, %v3627_v42 }
 0x79c   :  { %v3638_v18 = vpop.f32.mrf.mxu2  ;;  %v3790_v52 = vmax.f32 %v3716_v31, 0.0 }
 0x79d   :  { %v3574_v43 = vpop.f32.mrf.mxu1 }
 0x79e   :  { %v3575_v12 = vadd.f32 %v3574_v43, %v3486_v44 }
 0x7a0   :  { %v3819_v20 = vmax.f32 %v3575_v12, 0.0  ;;  %v4002_v15 = vpop.f32.mrf.mxu0 }
 0x7a1   :  { %v3717_v55 = vpop.f32.mrf.mxu3 }
 0x7a2   :  { %v3718_v10 = vadd.f32 %v3717_v55, %v3629_v36  ;;  %v8269_v48 = vpack.c.bf16 %v3819_v20, %v3817_v59 }
 0x7a3   :  { %4041 = vmatmul.bf16.gmra.mxu0 %v8218_v11  ;;  %v3634_v11 = vadd.f32 %v3633_v40, %v8199_v4 }
 0x7a4   :  { %v3792_v19 = vmax.f32 %v3718_v10, 0.0  ;;  %v3641_v30 = vpop.f32.mrf.mxu2 }
 0x7a5   :  { %v3577_v28 = vpop.f32.mrf.mxu1 }
 0x7a6   :  { %v3842_v7 = vpack.c.bf16 %v3792_v19, %v3790_v52  ;;  %v3578_v56 = vadd.f32 %v3577_v28, %v3489_v2  ;;  %3759 = vmatmul.bf16.gmra.mxu3 %v8195_v58  ;;  %v3494_v58 = vadd.f32 %v3493_v26, %v8067_v50  ;;  %v4003_v50 = vadd.f32 %v8284_v51, %v4002_v15 }
 0x7a8   :  { %v4004_v45 = vpop.f32.mrf.mxu0  ;;  %4120 = vmatmul.bf16.gmra.mxu1 %v3842_v7  ;;  %v3821_v54 = vmax.f32 %v3578_v56, 0.0 }
 0x7a9   :  { %v3720_v9 = vpop.f32.mrf.mxu3  ;;  %v4005_v31 = vadd.f32 %v8284_v51, %v4004_v45 }
 0x7aa   :  { %v3721_v57 = vadd.f32 %v3720_v9, %v3632_v27 }
 0x7ac   :  { %v3794_v25 = vmax.f32 %v3721_v57, 0.0  ;;  %v3643_v63 = vpop.f32.mrf.mxu2 }
 0x7ad   :  { %v3579_v53 = vpop.f32.mrf.mxu1  ;;  %v3644_v15 = vadd.f32 %v3643_v63, %v8199_v4 }
 0x7ae   :  { %v3580_v22 = vadd.f32 %v3579_v53, %v3491_v13 }
 0x7b0   :  { %v3823_v0 = vmax.f32 %v3580_v22, 0.0  ;;  %v4007_v49 = vpop.f32.mrf.mxu0 }
 0x7b1   :  { %v3722_v46 = vpop.f32.mrf.mxu3  ;;  %v4008_v28 = vadd.f32 %v8284_v51, %v4007_v49 }
 0x7b2   :  { %v3723_v35 = vadd.f32 %v3722_v46, %v3634_v11  ;;  %v8277_v39 = vpack.c.bf16 %v3823_v0, %v3821_v54 }
 0x7b3   :  { %4046 = vmatmul.bf16.gmra.mxu0 %v8230_v24  ;;  %v3639_v24 = vadd.f32 %v3638_v18, %v8199_v4 }
 0x7b4   :  { %v3796_v37 = vmax.f32 %v3723_v35, 0.0  ;;  %v3646_v3 = vpop.f32.mrf.mxu2 }
 0x7b5   :  { %v3582_v1 = vpop.f32.mrf.mxu1 }
 0x7b6   :  { %v3844_v61 = vpack.c.bf16 %v3796_v37, %v3794_v25  ;;  %v3583_v62 = vadd.f32 %v3582_v1, %v3494_v58 }
 0x7b8   :  { %v4009_v34 = vpop.f32.mrf.mxu0  ;;  %4125 = vmatmul.bf16.gmra.mxu1 %v3844_v61  ;;  %v3825_v26 = vmax.f32 %v3583_v62, 0.0 }
 0x7b9   :  { %v3725_v40 = vpop.f32.mrf.mxu3  ;;  %v4010_v27 = vadd.f32 %v8284_v51, %v4009_v34 }
 0x7ba   :  { %v3726_v6 = vadd.f32 %v3725_v40, %v3637_v60 }
 0x7bc   :  { %v3798_v33 = vmax.f32 %v3726_v6, 0.0  ;;  %v3648_v12 = vpop.f32.mrf.mxu2 }
 0x7bd   :  { %v3584_v38 = vpop.f32.mrf.mxu1  ;;  %v3649_v57 = vadd.f32 %v3648_v12, %v8199_v4 }
 0x7be   :  { %v3585_v29 = vadd.f32 %v3584_v38, %v3496_v16 }
 0x7c0   :  { %v3827_v41 = vmax.f32 %v3585_v29, 0.0  ;;  %v4012_v8 = vpop.f32.mrf.mxu0 }
 0x7c1   :  { %v3727_v21 = vpop.f32.mrf.mxu3  ;;  %v4013_v58 = vadd.f32 %v8284_v51, %v4012_v8 }
 0x7c2   :  { %v3728_v47 = vadd.f32 %v3727_v21, %v3639_v24  ;;  %v8286_v23 = vpack.c.bf16 %v3827_v41, %v3825_v26 }
 0x7c3   :  { %4051 = vmatmul.bf16.gmra.mxu0 %v8242_v32  ;;  %v3642_v32 = vadd.f32 %v3641_v30, %v8199_v4 }
 0x7c4   :  { %v3800_v17 = vmax.f32 %v3728_v47, 0.0  ;;  %v3651_v52 = vpop.f32.mrf.mxu2 }
 0x7c5   :  { %v4091_v44 = vpop.f32.mrf.mxu1 }
 0x7c6   :  { %v3846_v43 = vpack.c.bf16 %v3800_v17, %v3798_v33  ;;  %v4092_v42 = vadd.f32 %v4091_v44, %v4003_v50 }
 0x7c8   :  { %4171 = vst [vmem:[%s8447_s11] sm:$0xff] %v4092_v42  ;;  %v4014_v36 = vpop.f32.mrf.mxu0  ;;  %4130 = vmatmul.bf16.gmra.mxu1 %v3846_v43 }
 0x7c9   :  { %v3730_v59 = vpop.f32.mrf.mxu3  ;;  %v4015_v16 = vadd.f32 %v8284_v51, %v4014_v36 }
 0x7ca   :  { %v3731_v55 = vadd.f32 %v3730_v59, %v3642_v32 }
 0x7cc   :  { %v3802_v7 = vmax.f32 %v3731_v55, 0.0  ;;  %v3653_v22 = vpop.f32.mrf.mxu2 }
 0x7cd   :  { %v4093_v18 = vpop.f32.mrf.mxu1 }
 0x7ce   :  { %v4094_v20 = vadd.f32 %v4093_v18, %v4005_v31 }
 0x7d0   :  { %4172 = vst [vmem:[%s8447_s11 + $0x8] sm:$0xff] %v4094_v20  ;;  %v4017_v10 = vpop.f32.mrf.mxu0 }
 0x7d1   :  { %v3732_v2 = vpop.f32.mrf.mxu3  ;;  %v4018_v8 = vadd.f32 %v8284_v51, %v4017_v10 }
 0x7d2   :  { %v3733_v19 = vadd.f32 %v3732_v2, %v3644_v15 }
 0x7d3   :  { %4056 = vmatmul.bf16.gmra.mxu0 %v8252_v5  ;;  %v3647_v5 = vadd.f32 %v3646_v3, %v8199_v4  ;;  %v3654_v3 = vadd.f32 %v3653_v22, %v8199_v4 }
 0x7d4   :  { %v3804_v56 = vmax.f32 %v3733_v19, 0.0  ;;  %v3656_v1 = vpop.f32.mrf.mxu2 }
 0x7d5   :  { %v4096_v45 = vpop.f32.mrf.mxu1 }
 0x7d6   :  { %v3848_v9 = vpack.c.bf16 %v3804_v56, %v3802_v7  ;;  %v4097_v30 = vadd.f32 %v4096_v45, %v4008_v28 }
 0x7d8   :  { %4173 = vst [vmem:[%s8447_s11 + $0x10] sm:$0xff] %v4097_v30  ;;  %v4019_v13 = vpop.f32.mrf.mxu0  ;;  %4135 = vmatmul.bf16.gmra.mxu1 %v3848_v9 }
 0x7d9   :  { %v3735_v53 = vpop.f32.mrf.mxu3  ;;  %v4020_v12 = vadd.f32 %v8284_v51, %v4019_v13 }
 0x7da   :  { %v3736_v0 = vadd.f32 %v3735_v53, %v3647_v5 }
 0x7dc   :  { %v3806_v25 = vmax.f32 %v3736_v0, 0.0  ;;  %v3658_v29 = vpop.f32.mrf.mxu2 }
 0x7dd   :  { %v4098_v11 = vpop.f32.mrf.mxu1  ;;  %v3659_v31 = vadd.f32 %v3658_v29, %v8199_v4 }
 0x7de   :  { %v4099_v54 = vadd.f32 %v4098_v11, %v4010_v27 }
 0x7e0   :  { %4174 = vst [vmem:[%s8447_s11 + $0x18] sm:$0xff] %v4099_v54  ;;  %v4022_v49 = vpop.f32.mrf.mxu0 }
 0x7e1   :  { %v3737_v46 = vpop.f32.mrf.mxu3  ;;  %v4023_v55 = vadd.f32 %v8284_v51, %v4022_v49 }
 0x7e2   :  { %v3738_v35 = vadd.f32 %v3737_v46, %v3649_v57 }
 0x7e3   :  { %4061 = vmatmul.bf16.gmra.mxu0 %v8261_v14  ;;  %v3652_v14 = vadd.f32 %v3651_v52, %v8199_v4 }
 0x7e4   :  { %v3808_v63 = vmax.f32 %v3738_v35, 0.0  ;;  %v3661_v42 = vpop.f32.mrf.mxu2 }
 0x7e5   :  { %v4101_v37 = vpop.f32.mrf.mxu1 }
 0x7e6   :  { %v3850_v61 = vpack.c.bf16 %v3808_v63, %v3806_v25  ;;  %v4102_v62 = vadd.f32 %v4101_v37, %v4013_v58 }
 0x7e8   :  { %4175 = vst [vmem:[%s8447_s11 + $0x20] sm:$0xff] %v4102_v62  ;;  %v4024_v34 = vpop.f32.mrf.mxu0  ;;  %4140 = vmatmul.bf16.gmra.mxu1 %v3850_v61 }
 0x7e9   :  { %v3740_v40 = vpop.f32.mrf.mxu3  ;;  %v4025_v9 = vadd.f32 %v8284_v51, %v4024_v34 }
 0x7ea   :  { %v3741_v24 = vadd.f32 %v3740_v40, %v3652_v14 }
 0x7ec   :  { %v3810_v21 = vmax.f32 %v3741_v24, 0.0  ;;  %v3663_v10 = vpop.f32.mrf.mxu2 }
 0x7ed   :  { %v4103_v38 = vpop.f32.mrf.mxu1  ;;  %v3664_v27 = vadd.f32 %v3663_v10, %v8199_v4 }
 0x7ee   :  { %v4104_v60 = vadd.f32 %v4103_v38, %v4015_v16 }
 0x7f0   :  { %4176 = vst [vmem:[%s8447_s11 + $0x28] sm:$0xff] %v4104_v60  ;;  %v4027_v26 = vpop.f32.mrf.mxu0 }
 0x7f1   :  { %v3742_v6 = vpop.f32.mrf.mxu3  ;;  %v4028_v57 = vadd.f32 %v8284_v51, %v4027_v26 }
 0x7f2   :  { %v3743_v41 = vadd.f32 %v3742_v6, %v3654_v3 }
 0x7f3   :  { %4066 = vmatmul.bf16.gmra.mxu0 %v8269_v48  ;;  %v3657_v48 = vadd.f32 %v3656_v1, %v8199_v4 }
 0x7f4   :  { %v3812_v47 = vmax.f32 %v3743_v41, 0.0  ;;  %v3666_v13 = vpop.f32.mrf.mxu2 }
 0x7f5   :  { %v4106_v50 = vpop.f32.mrf.mxu1 }
 0x7f6   :  { %v3852_v33 = vpack.c.bf16 %v3812_v47, %v3810_v21  ;;  %v4107_v17 = vadd.f32 %v4106_v50, %v4018_v8 }
 0x7f8   :  { %4177 = vst [vmem:[%s8447_s11 + $0x30] sm:$0xff] %v4107_v17  ;;  %v4029_v44 = vpop.f32.mrf.mxu0  ;;  %4145 = vmatmul.bf16.gmra.mxu1 %v3852_v33 }
 0x7f9   :  { %v3745_v43 = vpop.f32.mrf.mxu3  ;;  %v4030_v1 = vadd.f32 %v8284_v51, %v4029_v44 }
 0x7fa   :  { %v3746_v18 = vadd.f32 %v3745_v43, %v3657_v48 }
 0x7fc   :  { %v3814_v2 = vmax.f32 %v3746_v18, 0.0  ;;  %v3668_v25 = vpop.f32.mrf.mxu2 }
 0x7fd   :  { %v4108_v36 = vpop.f32.mrf.mxu1  ;;  %v3669_v34 = vadd.f32 %v3668_v25, %v8199_v4 }
 0x7fe   :  { %v4109_v59 = vadd.f32 %v4108_v36, %v4020_v12 }
 0x800   :  { %4178 = vst [vmem:[%s8447_s11 + $0x38] sm:$0xff] %v4109_v59  ;;  %v4032_v32 = vpop.f32.mrf.mxu0 }
 0x801   :  { %v3747_v20 = vpop.f32.mrf.mxu3  ;;  %v4033_v3 = vadd.f32 %v8284_v51, %v4032_v32 }
 0x802   :  { %v3748_v15 = vadd.f32 %v3747_v20, %v3659_v31 }
 0x803   :  { %4071 = vmatmul.bf16.gmra.mxu0 %v8277_v39  ;;  %v3662_v39 = vadd.f32 %v3661_v42, %v8199_v4 }
 0x804   :  { %v3816_v52 = vmax.f32 %v3748_v15, 0.0  ;;  %v3671_v38 = vpop.f32.mrf.mxu2 }
 0x805   :  { %v4111_v19 = vpop.f32.mrf.mxu1  ;;  %v3672_v17 = vadd.f32 %v3671_v38, %v8199_v4 }
 0x806   :  { %v3854_v28 = vpack.c.bf16 %v3816_v52, %v3814_v2  ;;  %v4112_v7 = vadd.f32 %v4111_v19, %v4023_v55 }
 0x808   :  { %4179 = vst [vmem:[%s8447_s11 + $0x40] sm:$0xff] %v4112_v7  ;;  %v4034_v56 = vpop.f32.mrf.mxu0  ;;  %4150 = vmatmul.bf16.gmra.mxu1 %v3854_v28 }
 0x809   :  { %v3750_v45 = vpop.f32.mrf.mxu3  ;;  %v4035_v21 = vadd.f32 %v8284_v51, %v4034_v56 }
 0x80a   :  { %v3751_v22 = vadd.f32 %v3750_v45, %v3662_v39 }
 0x80c   :  { %v3818_v0 = vmax.f32 %v3751_v22, 0.0  ;;  %v3673_v47 = vpop.f32.mrf.mxu2 }
 0x80d   :  { %v4113_v30 = vpop.f32.mrf.mxu1  ;;  %v3674_v43 = vadd.f32 %v3673_v47, %v8199_v4 }
 0x80e   :  { %v4114_v53 = vadd.f32 %v4113_v30, %v4025_v9 }
 0x810   :  { %4180 = vst [vmem:[%s8447_s11 + $0x48] sm:$0xff] %v4114_v53  ;;  %v4037_v11 = vpop.f32.mrf.mxu0 }
 0x811   :  { %v3752_v5 = vpop.f32.mrf.mxu3  ;;  %v4038_v48 = vadd.f32 %v8284_v51, %v4037_v11 }
 0x812   :  { %v3753_v54 = vadd.f32 %v3752_v5, %v3664_v27 }
 0x813   :  { %4076 = vmatmul.bf16.gmra.mxu0 %v8286_v23  ;;  %v3667_v23 = vadd.f32 %v3666_v13, %v8199_v4 }
 0x814   :  { %v3820_v49 = vmax.f32 %v3753_v54, 0.0 }
 0x815   :  { %v4116_v46 = vpop.f32.mrf.mxu1 }
 0x816   :  { %v3856_v35 = vpack.c.bf16 %v3820_v49, %v3818_v0  ;;  %v4117_v58 = vadd.f32 %v4116_v46, %v4028_v57 }
 0x818   :  { %4181 = vst [vmem:[%s8447_s11 + $0x50] sm:$0xff] %v4117_v58  ;;  %4155 = vmatmul.bf16.gmra.mxu1 %v3856_v35  ;;  %v4039_v63 = vpop.f32.mrf.mxu0 }
 0x819   :  { %v3755_v37 = vpop.f32.mrf.mxu3  ;;  %v4040_v4 = vadd.f32 %v8284_v51, %v4039_v63 }
 0x81a   :  { %v3756_v40 = vadd.f32 %v3755_v37, %v3667_v23 }
 0x81c   :  { %v3822_v29 = vmax.f32 %v3756_v40, 0.0 }
 0x81d   :  { %v4118_v61 = vpop.f32.mrf.mxu1 }
 0x81e   :  { %v4119_v62 = vadd.f32 %v4118_v61, %v4030_v1 }
 0x820   :  { %4182 = vst [vmem:[%s8447_s11 + $0x58] sm:$0xff] %v4119_v62  ;;  %v4042_v60 = vpop.f32.mrf.mxu0 }
 0x821   :  { %v3757_v16 = vpop.f32.mrf.mxu3  ;;  %v4043_v52 = vadd.f32 %v8284_v51, %v4042_v60 }
 0x822   :  { %v3758_v14 = vadd.f32 %v3757_v16, %v3669_v34 }
 0x824   :  { %v3824_v24 = vmax.f32 %v3758_v14, 0.0 }
 0x825   :  { %v4121_v26 = vpop.f32.mrf.mxu1 }
 0x826   :  { %v3858_v6 = vpack.c.bf16 %v3824_v24, %v3822_v29  ;;  %v4122_v41 = vadd.f32 %v4121_v26, %v4033_v3 }
 0x828   :  { %4183 = vst [vmem:[%s8447_s11 + $0x60] sm:$0xff] %v4122_v41  ;;  %4160 = vmatmul.bf16.gmra.mxu1 %v3858_v6  ;;  %v4044_v50 = vpop.f32.mrf.mxu0 }
 0x829   :  { %v3760_v8 = vpop.f32.mrf.mxu3  ;;  %v4045_v56 = vadd.f32 %v8284_v51, %v4044_v50 }
 0x82a   :  { %v3761_v42 = vadd.f32 %v3760_v8, %v3672_v17 }
 0x82c   :  { %v3826_v59 = vmax.f32 %v3761_v42, 0.0 }
 0x82d   :  { %v4123_v33 = vpop.f32.mrf.mxu1 }
 0x82e   :  { %v4124_v44 = vadd.f32 %v4123_v33, %v4035_v21 }
 0x830   :  { %4184 = vst [vmem:[%s8447_s11 + $0x68] sm:$0xff] %v4124_v44  ;;  %v4047_v15 = vpop.f32.mrf.mxu0 }
 0x831   :  { %v3762_v12 = vpop.f32.mrf.mxu3  ;;  %v4048_v30 = vadd.f32 %v8284_v51, %v4047_v15 }
 0x832   :  { %v3763_v36 = vadd.f32 %v3762_v12, %v3674_v43 }
 0x834   :  { %v3828_v31 = vmax.f32 %v3763_v36, 0.0 }
 0x835   :  { %v4126_v18 = vpop.f32.mrf.mxu1 }
 0x836   :  { %v3860_v32 = vpack.c.bf16 %v3828_v31, %v3826_v59  ;;  %v4127_v20 = vadd.f32 %v4126_v18, %v4038_v48 }
 0x838   :  { %4185 = vst [vmem:[%s8447_s11 + $0x70] sm:$0xff] %v4127_v20  ;;  %4165 = vmatmul.bf16.gmra.mxu1 %v3860_v32  ;;  %v4049_v2 = vpop.f32.mrf.mxu0 }
 0x839   :  { %v4050_v27 = vadd.f32 %v8284_v51, %v4049_v2 }
 0x83d   :  { %v4128_v55 = vpop.f32.mrf.mxu1 }
 0x83e   :  { %v4129_v10 = vadd.f32 %v4128_v55, %v4040_v4 }
 0x840   :  { %4186 = vst [vmem:[%s8447_s11 + $0x78] sm:$0xff] %v4129_v10  ;;  %v4052_v7 = vpop.f32.mrf.mxu0 }
 0x841   :  { %v4053_v54 = vadd.f32 %v8284_v51, %v4052_v7 }
 0x845   :  { %v4131_v19 = vpop.f32.mrf.mxu1 }
 0x846   :  { %v4132_v28 = vadd.f32 %v4131_v19, %v4043_v52 }
 0x848   :  { %4187 = vst [vmem:[%s8447_s11 + $0x80] sm:$0xff] %v4132_v28  ;;  %v4054_v39 = vpop.f32.mrf.mxu0 }
 0x849   :  { %v4055_v46 = vadd.f32 %v8284_v51, %v4054_v39 }
 0x84d   :  { %v4133_v45 = vpop.f32.mrf.mxu1 }
 0x84e   :  { %v4134_v9 = vadd.f32 %v4133_v45, %v4045_v56 }
 0x850   :  { %4188 = vst [vmem:[%s8447_s11 + $0x88] sm:$0xff] %v4134_v9  ;;  %v4057_v5 = vpop.f32.mrf.mxu0 }
 0x851   :  { %v4058_v63 = vadd.f32 %v8284_v51, %v4057_v5 }
 0x855   :  { %v4136_v13 = vpop.f32.mrf.mxu1 }
 0x856   :  { %v4137_v53 = vadd.f32 %v4136_v13, %v4048_v30 }
 0x858   :  { %4189 = vst [vmem:[%s8447_s11 + $0x90] sm:$0xff] %v4137_v53  ;;  %v4059_v49 = vpop.f32.mrf.mxu0 }
 0x859   :  { %v4060_v61 = vadd.f32 %v8284_v51, %v4059_v49 }
 0x85d   :  { %v4138_v22 = vpop.f32.mrf.mxu1 }
 0x85e   :  { %v4139_v11 = vadd.f32 %v4138_v22, %v4050_v27 }
 0x860   :  { %4190 = vst [vmem:[%s8447_s11 + $0x98] sm:$0xff] %v4139_v11  ;;  %v4062_v25 = vpop.f32.mrf.mxu0 }
 0x861   :  { %v4063_v40 = vadd.f32 %v8284_v51, %v4062_v25 }
 0x865   :  { %v4141_v57 = vpop.f32.mrf.mxu1 }
 0x866   :  { %v4142_v0 = vadd.f32 %v4141_v57, %v4053_v54 }
 0x868   :  { %4191 = vst [vmem:[%s8447_s11 + $0xa0] sm:$0xff] %v4142_v0  ;;  %v4064_v23 = vpop.f32.mrf.mxu0 }
 0x869   :  { %v4065_v60 = vadd.f32 %v8284_v51, %v4064_v23 }
 0x86d   :  { %v4143_v35 = vpop.f32.mrf.mxu1 }
 0x86e   :  { %v4144_v58 = vadd.f32 %v4143_v35, %v4055_v46 }
 0x870   :  { %4192 = vst [vmem:[%s8447_s11 + $0xa8] sm:$0xff] %v4144_v58  ;;  %v4067_v14 = vpop.f32.mrf.mxu0 }
 0x871   :  { %v4068_v26 = vadd.f32 %v8284_v51, %v4067_v14 }
 0x875   :  { %v4146_v37 = vpop.f32.mrf.mxu1 }
 0x876   :  { %v4147_v1 = vadd.f32 %v4146_v37, %v4058_v63 }
 0x878   :  { %4193 = vst [vmem:[%s8447_s11 + $0xb0] sm:$0xff] %v4147_v1  ;;  %v4069_v24 = vpop.f32.mrf.mxu0 }
 0x879   :  { %v4070_v21 = vadd.f32 %v8284_v51, %v4069_v24 }
 0x87d   :  { %v4148_v62 = vpop.f32.mrf.mxu1 }
 0x87e   :  { %v4149_v34 = vadd.f32 %v4148_v62, %v4060_v61 }
 0x880   :  { %4194 = vst [vmem:[%s8447_s11 + $0xb8] sm:$0xff] %v4149_v34  ;;  %v4072_v8 = vpop.f32.mrf.mxu0 }
 0x881   :  { %v4073_v33 = vadd.f32 %v8284_v51, %v4072_v8 }
 0x885   :  { %v4151_v16 = vpop.f32.mrf.mxu1 }
 0x886   :  { %v4152_v38 = vadd.f32 %v4151_v16, %v4063_v40 }
 0x888   :  { %4195 = vst [vmem:[%s8447_s11 + $0xc0] sm:$0xff] %v4152_v38  ;;  %v4074_v17 = vpop.f32.mrf.mxu0 }
 0x889   :  { %v4075_v42 = vadd.f32 %v8284_v51, %v4074_v17 }
 0x88d   :  { %v4153_v3 = vpop.f32.mrf.mxu1 }
 0x88e   :  { %v4154_v29 = vadd.f32 %v4153_v3, %v4065_v60 }
 0x890   :  { %4196 = vst [vmem:[%s8447_s11 + $0xc8] sm:$0xff] %v4154_v29  ;;  %v4077_v48 = vpop.f32.mrf.mxu0 }
 0x891   :  { %v4078_v59 = vadd.f32 %v8284_v51, %v4077_v48 }
 0x895   :  { %v4156_v6 = vpop.f32.mrf.mxu1 }
 0x896   :  { %v4157_v41 = vadd.f32 %v4156_v6, %v4068_v26 }
 0x898   :  { %4197 = vst [vmem:[%s8447_s11 + $0xd0] sm:$0xff] %v4157_v41  ;;  %v4079_v32 = vpop.f32.mrf.mxu0 }
 0x899   :  { %v4080_v20 = vadd.f32 %v8284_v51, %v4079_v32 }
 0x89d   :  { %v4158_v47 = vpop.f32.mrf.mxu1 }
 0x89e   :  { %v4159_v50 = vadd.f32 %v4158_v47, %v4070_v21 }
 0x8a0   :  { %4198 = vst [vmem:[%s8447_s11 + $0xd8] sm:$0xff] %v4159_v50 }
 0x8a5   :  { %v4161_v44 = vpop.f32.mrf.mxu1 }
 0x8a6   :  { %v4162_v43 = vadd.f32 %v4161_v44, %v4073_v33 }
 0x8a8   :  { %4199 = vst [vmem:[%s8447_s11 + $0xe0] sm:$0xff] %v4162_v43 }
 0x8ad   :  { %v4163_v12 = vpop.f32.mrf.mxu1 }
 0x8ae   :  { %v4164_v36 = vadd.f32 %v4163_v12, %v4075_v42 }
 0x8b0   :  { %4200 = vst [vmem:[%s8447_s11 + $0xe8] sm:$0xff] %v4164_v36 }
 0x8b5   :  { %v4166_v31 = vpop.f32.mrf.mxu1 }
 0x8b6   :  { %v4167_v18 = vadd.f32 %v4166_v31, %v4078_v59 }
 0x8b8   :  { %4201 = vst [vmem:[%s8447_s11 + $0xf0] sm:$0xff] %v4167_v18 }
 0x8bd   :  { %v4168_v15 = vpop.f32.mrf.mxu1 }
 0x8be   :  { %v4169_v4 = vadd.f32 %v4168_v15, %v4080_v20 }
 0x8c0   :  { %4202 = vst [vmem:[%s8447_s11 + $0xf8] sm:$0xff] %v4169_v4 }
 0x8c1   :  { %4207 = vsyncpa [#allocation3], 1 }
 0x8c2   :  { %4208 = vsyncpa [#allocation5], 1 }
 0x8c3   :  { %4209 = vsyncpa [#allocation8], 1 }

</bundles_post_ra>
